<compile_context>
chip_gen: v6e
topology: v6e:2x2x1
jax: 0.10.0
libtpu: 0.0.40
codegen_flags: <defaults>
</compile_context>

<pallas_src>
import functools

import jax
import jax.numpy as jnp
from jax.experimental import pallas as pl
from jax.experimental.pallas import tpu as pltpu

K = 5            # conv kernel size
PAD = 2          # conv padding
C = 32           # hidden channels
POOL_K = 5
POOL_S = 2
N_STAGES = 5
N_CLASSES = 5
FC_HIDDEN = 32


def _pool_len(L):
    return (L - POOL_K) // POOL_S + 1


# ----------------------------------------------------------------------------
# Fused kernel: one grid step == one sample, everything resident in VMEM.
# ----------------------------------------------------------------------------
def _fused_kernel(x_ref, w_in_ref, b_in_ref, w_rec_ref, b_rec_ref,
                  w1_ref, b1_ref, w2_ref, b2_ref, o_ref, buf, *, L0):
    # buf: (L0 + 2*PAD, C) padded-activation scratch. Zeroed once per sample;
    # left-pad rows [0, PAD) are never written afterwards so they stay zero.
    buf[...] = jnp.zeros_like(buf)

    # ---- input_conv: Conv1d(1, 32, 5, padding=2), no activation -------------
    # Replicate the single input channel across all 32 lanes: the Cin=1 conv is
    # then 5 shifted broadcast-multiplies on the VPU (no matmul needed).
    buf[pl.ds(PAD, L0), :] = jnp.broadcast_to(x_ref[...], (L0, C))
    acc = jnp.zeros((L0, C), jnp.float32)
    for k in range(K):
        acc = acc + buf[pl.ds(k, L0), :] * w_in_ref[k]        # (L0,C)*(1,C)
    prev = acc + b_in_ref[...]
    L = L0

    def conv32(x_val, L, layer, residual=None):
        # Write x into the padded scratch; re-zero the right pad rows (stale
        # data from a longer previous stage may still sit there).
        buf[pl.ds(PAD + L, PAD), :] = jnp.zeros((PAD, C), jnp.float32)
        buf[pl.ds(PAD, L), :] = x_val
        # im2col: concat the K shifted windows along lanes -> one deep matmul.
        slab = jnp.concatenate(
            [buf[pl.ds(k, L), :] for k in range(K)], axis=1)   # (L, K*C)
        out = jnp.dot(slab, w_rec_ref[layer],
                      preferred_element_type=jnp.float32)
        out = out + b_rec_ref[layer]
        if residual is not None:
            out = out + residual
        return jnp.maximum(out, 0.0)

    def maxpool(x_val, L):
        Lp = _pool_len(L)
        buf[pl.ds(PAD, L), :] = x_val
        m = buf[pl.ds(PAD, Lp, stride=POOL_S), :]
        for k in range(1, POOL_K):
            m = jnp.maximum(m, buf[pl.ds(PAD + k, Lp, stride=POOL_S), :])
        return m, Lp

    # ---- 5 residual stages ---------------------------------------------------
    for s in range(N_STAGES):
        t = conv32(prev, L, 2 * s)                       # relu(conv(prev))
        u = conv32(t, L, 2 * s + 1, residual=prev)       # relu(conv(t)+prev)
        prev, L = maxpool(u, L)

    # ---- head: fc1 -> ReLU -> fc2 -> softmax(dim=1) --------------------------
    # fc1 weight rows were pre-permuted so row index = l*C + c matches the
    # (L, C) activation layout (== torch.flatten of (N, C, L), C-major).
    h = b1_ref[...]                                      # (1, FC_HIDDEN)
    for l in range(L):                                   # L == 2 (static)
        h = h + jnp.dot(prev[l:l + 1, :], w1_ref[pl.ds(l * C, C), :],
                        preferred_element_type=jnp.float32)
    h = jnp.maximum(h, 0.0)
    logits = jnp.dot(h, w2_ref[...],
                     preferred_element_type=jnp.float32) + b2_ref[...]
    m = jnp.max(logits, axis=1, keepdims=True)
    e = jnp.exp(logits - m)
    o_ref[...] = e / jnp.sum(e, axis=1, keepdims=True)


# ----------------------------------------------------------------------------
# Wrapper
# ----------------------------------------------------------------------------
def cnn_net_forward(x_ncl, params):
    # x_ncl: PyTorch layout (N, Cin=1, L) -> channels-last (N, L, 1).
    N, _, L0 = x_ncl.shape
    x = jnp.transpose(x_ncl, (0, 2, 1)).astype(jnp.float32)

    kernel = functools.partial(_fused_kernel, L0=L0)
    out = pl.pallas_call(
        kernel,
        grid=(N,),
        in_specs=[
            pl.BlockSpec((None, L0, 1), lambda n: (n, 0, 0)),             # x
            pl.BlockSpec((K, 1, C), lambda n: (0, 0, 0)),                  # w_in
            pl.BlockSpec((1, C), lambda n: (0, 0)),                        # b_in
            pl.BlockSpec((2 * N_STAGES, K * C, C), lambda n: (0, 0, 0)),   # w_rec
            pl.BlockSpec((2 * N_STAGES, 1, C), lambda n: (0, 0, 0)),       # b_rec
            pl.BlockSpec((2 * C, FC_HIDDEN), lambda n: (0, 0)),            # w1
            pl.BlockSpec((1, FC_HIDDEN), lambda n: (0, 0)),                # b1
            pl.BlockSpec((FC_HIDDEN, N_CLASSES), lambda n: (0, 0)),        # w2
            pl.BlockSpec((1, N_CLASSES), lambda n: (0, 0)),                # b2
        ],
        out_specs=pl.BlockSpec((None, 1, N_CLASSES), lambda n: (n, 0, 0)),
        out_shape=jax.ShapeDtypeStruct((N, 1, N_CLASSES), jnp.float32),
        scratch_shapes=[pltpu.VMEM((L0 + 2 * PAD, C), jnp.float32)],
        compiler_params=pltpu.CompilerParams(
            dimension_semantics=("parallel",)),
    )(x, params["w_in"], params["b_in"], params["w_rec"], params["b_rec"],
      params["w1"], params["b1"], params["w2"], params["b2"])
    return out.reshape(N, N_CLASSES)


# ----------------------------------------------------------------------------
# Parameters (deterministic synthetic init; PyTorch shapes -> kernel layout)
# ----------------------------------------------------------------------------
def init_params(key):
    ks = jax.random.split(key, 26)
    p = {}
    # input_conv: torch weight (Cout=32, Cin=1, K=5), bias (32,)
    w_in = 0.30 * jax.random.normal(ks[0], (C, 1, K), jnp.float32)
    b_in = 0.10 * jax.random.normal(ks[1], (C,), jnp.float32)
    p["w_in"] = jnp.transpose(w_in, (2, 1, 0))            # (K, Cin=1, Cout)
    p["b_in"] = b_in.reshape(1, C)
    # rec_convs[0..9]: torch weight (32, 32, 5) -> (K*Cin, Cout), row = k*Cin+c
    w_rec, b_rec = [], []
    for i in range(10):
        w = 0.08 * jax.random.normal(ks[2 + 2 * i], (C, C, K), jnp.float32)
        b = 0.05 * jax.random.normal(ks[3 + 2 * i], (C,), jnp.float32)
        w_rec.append(jnp.transpose(w, (2, 1, 0)).reshape(K * C, C))
        b_rec.append(b.reshape(1, C))
    p["w_rec"] = jnp.stack(w_rec)                         # (10, K*C, C)
    p["b_rec"] = jnp.stack(b_rec)                         # (10, 1, C)
    # fc1: torch Linear(64, 32) weight (32, 64). torch flatten of (N, C, L) is
    # C-major (index c*Lf + l); the kernel's activation is (Lf, C) so permute
    # fc1 input rows to index l*C + c.
    L_final = 2
    w1 = 0.10 * jax.random.normal(ks[22], (FC_HIDDEN, C * L_final), jnp.float32)
    b1 = 0.05 * jax.random.normal(ks[23], (FC_HIDDEN,), jnp.float32)
    w1_t = w1.T                                           # (64, H), row = c*Lf+l
    p["w1"] = (w1_t.reshape(C, L_final, FC_HIDDEN)
               .transpose(1, 0, 2).reshape(C * L_final, FC_HIDDEN))
    p["b1"] = b1.reshape(1, FC_HIDDEN)
    # fc2: torch Linear(32, 5) weight (5, 32)
    w2 = 0.10 * jax.random.normal(ks[24], (N_CLASSES, FC_HIDDEN), jnp.float32)
    b2 = 0.05 * jax.random.normal(ks[25], (N_CLASSES,), jnp.float32)
    p["w2"] = w2.T
    p["b2"] = b2.reshape(1, N_CLASSES)
    return p


# ----------------------------------------------------------------------------
# Pure-jnp reference (same parameter layout) for correctness checking
# ----------------------------------------------------------------------------
def _reference_forward(x_ncl, params):
    N = x_ncl.shape[0]
    outs = []
    for n in range(N):
        xl = x_ncl[n, 0, :].astype(jnp.float32)                 # (L,)
        L = xl.shape[0]
        xp = jnp.pad(xl, (PAD, PAD))
        w_in = params["w_in"][:, 0, :]                          # (K, C)
        prev = sum(xp[k:k + L, None] * w_in[k][None, :] for k in range(K))
        prev = prev + params["b_in"]

        def rconv(v, layer, res=None):
            Lc = v.shape[0]
            vp = jnp.pad(v, ((PAD, PAD), (0, 0)))
            slab = jnp.concatenate([vp[k:k + Lc] for k in range(K)], axis=1)
            o = slab @ params["w_rec"][layer] + params["b_rec"][layer]
            if res is not None:
                o = o + res
            return jnp.maximum(o, 0.0)

        for s in range(N_STAGES):
            t = rconv(prev, 2 * s)
            u = rconv(t, 2 * s + 1, prev)
            Lp = _pool_len(u.shape[0])
            prev = jnp.stack(
                [jnp.max(u[POOL_S * i:POOL_S * i + POOL_K], axis=0)
                 for i in range(Lp)])
        h = jnp.maximum(prev.reshape(1, -1) @ params["w1"] + params["b1"], 0.0)
        logits = h @ params["w2"] + params["b2"]
        outs.append(jax.nn.softmax(logits, axis=1)[0])
    return jnp.stack(outs)


if __name__ == "__main__":
    key = jax.random.PRNGKey(0)
    pkey, xkey = jax.random.split(key)
    params = init_params(pkey)
    # L=160 -> pooled lengths 78, 37, 17, 7, 2  => flatten dim 32*2 = 64 (fc1 in)
    x = jax.random.normal(xkey, (2, 1, 160), jnp.float32)   # (N, Cin, L)

    fwd = jax.jit(cnn_net_forward)
    out = jax.block_until_ready(fwd(x, params))
    ref = _reference_forward(x, params)

    assert out.shape == (2, N_CLASSES), out.shape
    assert bool(jnp.all(jnp.isfinite(out)))
    assert bool(jnp.allclose(jnp.sum(out, axis=1), 1.0, atol=1e-5))
    assert bool(jnp.allclose(out, ref, atol=2e-3, rtol=2e-3))
    print("KERNEL_OK")
</pallas_src>

<mosaic_0001>
module attributes {stable_mosaic.version = 11 : i64} {
  func.func @_fused_kernel(%arg0: i32, %arg1: memref<1x160x1xf32, #tpu.memory_space<vmem>>, %arg2: memref<5x1x32xf32, #tpu.memory_space<vmem>>, %arg3: memref<1x32xf32, #tpu.memory_space<vmem>>, %arg4: memref<10x160x32xf32, #tpu.memory_space<vmem>>, %arg5: memref<10x1x32xf32, #tpu.memory_space<vmem>>, %arg6: memref<64x32xf32, #tpu.memory_space<vmem>>, %arg7: memref<1x32xf32, #tpu.memory_space<vmem>>, %arg8: memref<32x5xf32, #tpu.memory_space<vmem>>, %arg9: memref<1x5xf32, #tpu.memory_space<vmem>>, %arg10: memref<1x1x5xf32, #tpu.memory_space<vmem>>, %arg11: memref<164x32xf32, #tpu.memory_space<vmem>>) attributes {dimension_semantics = [#tpu.dimension_semantics<parallel>], iteration_bounds = array<i64: 2>, scalar_prefetch = 0 : i64, scratch_operands = 1 : i64, tpu.core_type = #tpu.core_type<tc>, window_params = [{transform_indices = @transform_0, window_bounds = array<i64: 1, 160, 1>}, {pipeline_mode = #tpu.pipeline_mode<synchronous>, transform_indices = @transform_1, window_bounds = array<i64: 5, 1, 32>}, {pipeline_mode = #tpu.pipeline_mode<synchronous>, transform_indices = @transform_2, window_bounds = array<i64: 1, 32>}, {pipeline_mode = #tpu.pipeline_mode<synchronous>, transform_indices = @transform_3, window_bounds = array<i64: 10, 160, 32>}, {pipeline_mode = #tpu.pipeline_mode<synchronous>, transform_indices = @transform_4, window_bounds = array<i64: 10, 1, 32>}, {pipeline_mode = #tpu.pipeline_mode<synchronous>, transform_indices = @transform_5, window_bounds = array<i64: 64, 32>}, {pipeline_mode = #tpu.pipeline_mode<synchronous>, transform_indices = @transform_6, window_bounds = array<i64: 1, 32>}, {pipeline_mode = #tpu.pipeline_mode<synchronous>, transform_indices = @transform_7, window_bounds = array<i64: 32, 5>}, {pipeline_mode = #tpu.pipeline_mode<synchronous>, transform_indices = @transform_8, window_bounds = array<i64: 1, 5>}, {transform_indices = @transform_9, window_bounds = array<i64: 1, 1, 5>}]} {
    %cst = arith.constant 0.000000e+00 : f32
    %0 = vector.broadcast %cst : f32 to vector<164x32xf32>
    %c0 = arith.constant 0 : index
    %c0_0 = arith.constant 0 : index
    %1 = vector.load %arg11[%c0, %c0_0] : memref<164x32xf32, #tpu.memory_space<vmem>>, vector<164x32xf32>
    tpu.vector_store %arg11[%c0, %c0_0], %0 {strides = array<i32>} : memref<164x32xf32, #tpu.memory_space<vmem>>, vector<164x32xf32>,
    %c0_1 = arith.constant 0 : index
    %c0_2 = arith.constant 0 : index
    %c0_3 = arith.constant 0 : index
    %2 = vector.load %arg1[%c0_1, %c0_2, %c0_3] : memref<1x160x1xf32, #tpu.memory_space<vmem>>, vector<1x160x1xf32>
    %3 = vector.shape_cast %2 : vector<1x160x1xf32> to vector<160x1xf32>
    %4 = vector.shape_cast %3 : vector<160x1xf32> to vector<160x1xf32>
    %5 = vector.broadcast %4 : vector<160x1xf32> to vector<160x32xf32>
    %c2 = arith.constant 2 : index
    %c0_4 = arith.constant 0 : index
    %6 = vector.load %arg11[%c2, %c0_4] : memref<164x32xf32, #tpu.memory_space<vmem>>, vector<160x32xf32>
    tpu.vector_store %arg11[%c2, %c0_4], %5 {strides = array<i32>} : memref<164x32xf32, #tpu.memory_space<vmem>>, vector<160x32xf32>,
    %cst_5 = arith.constant 0.000000e+00 : f32
    %7 = vector.broadcast %cst_5 : f32 to vector<160x32xf32>
    %c0_6 = arith.constant 0 : index
    %c0_7 = arith.constant 0 : index
    %8 = vector.load %arg11[%c0_6, %c0_7] : memref<164x32xf32, #tpu.memory_space<vmem>>, vector<160x32xf32>
    %c0_8 = arith.constant 0 : index
    %c0_9 = arith.constant 0 : index
    %c0_10 = arith.constant 0 : index
    %9 = vector.load %arg2[%c0_8, %c0_9, %c0_10] : memref<5x1x32xf32, #tpu.memory_space<vmem>>, vector<1x1x32xf32>
    %10 = vector.shape_cast %9 : vector<1x1x32xf32> to vector<1x32xf32>
    %11 = vector.broadcast %10 : vector<1x32xf32> to vector<160x32xf32>
    %12 = arith.mulf %8, %11 : vector<160x32xf32>
    %13 = arith.addf %7, %12 : vector<160x32xf32>
    %c1 = arith.constant 1 : index
    %c0_11 = arith.constant 0 : index
    %14 = vector.load %arg11[%c1, %c0_11] : memref<164x32xf32, #tpu.memory_space<vmem>>, vector<160x32xf32>
    %c1_12 = arith.constant 1 : index
    %c0_13 = arith.constant 0 : index
    %c0_14 = arith.constant 0 : index
    %15 = vector.load %arg2[%c1_12, %c0_13, %c0_14] : memref<5x1x32xf32, #tpu.memory_space<vmem>>, vector<1x1x32xf32>
    %16 = vector.shape_cast %15 : vector<1x1x32xf32> to vector<1x32xf32>
    %17 = vector.broadcast %16 : vector<1x32xf32> to vector<160x32xf32>
    %18 = arith.mulf %14, %17 : vector<160x32xf32>
    %19 = arith.addf %13, %18 : vector<160x32xf32>
    %c2_15 = arith.constant 2 : index
    %c0_16 = arith.constant 0 : index
    %20 = vector.load %arg11[%c2_15, %c0_16] : memref<164x32xf32, #tpu.memory_space<vmem>>, vector<160x32xf32>
    %c2_17 = arith.constant 2 : index
    %c0_18 = arith.constant 0 : index
    %c0_19 = arith.constant 0 : index
    %21 = vector.load %arg2[%c2_17, %c0_18, %c0_19] : memref<5x1x32xf32, #tpu.memory_space<vmem>>, vector<1x1x32xf32>
    %22 = vector.shape_cast %21 : vector<1x1x32xf32> to vector<1x32xf32>
    %23 = vector.broadcast %22 : vector<1x32xf32> to vector<160x32xf32>
    %24 = arith.mulf %20, %23 : vector<160x32xf32>
    %25 = arith.addf %19, %24 : vector<160x32xf32>
    %c3 = arith.constant 3 : index
    %c0_20 = arith.constant 0 : index
    %26 = vector.load %arg11[%c3, %c0_20] : memref<164x32xf32, #tpu.memory_space<vmem>>, vector<160x32xf32>
    %c3_21 = arith.constant 3 : index
    %c0_22 = arith.constant 0 : index
    %c0_23 = arith.constant 0 : index
    %27 = vector.load %arg2[%c3_21, %c0_22, %c0_23] : memref<5x1x32xf32, #tpu.memory_space<vmem>>, vector<1x1x32xf32>
    %28 = vector.shape_cast %27 : vector<1x1x32xf32> to vector<1x32xf32>
    %29 = vector.broadcast %28 : vector<1x32xf32> to vector<160x32xf32>
    %30 = arith.mulf %26, %29 : vector<160x32xf32>
    %31 = arith.addf %25, %30 : vector<160x32xf32>
    %c4 = arith.constant 4 : index
    %c0_24 = arith.constant 0 : index
    %32 = vector.load %arg11[%c4, %c0_24] : memref<164x32xf32, #tpu.memory_space<vmem>>, vector<160x32xf32>
    %c4_25 = arith.constant 4 : index
    %c0_26 = arith.constant 0 : index
    %c0_27 = arith.constant 0 : index
    %33 = vector.load %arg2[%c4_25, %c0_26, %c0_27] : memref<5x1x32xf32, #tpu.memory_space<vmem>>, vector<1x1x32xf32>
    %34 = vector.shape_cast %33 : vector<1x1x32xf32> to vector<1x32xf32>
    %35 = vector.broadcast %34 : vector<1x32xf32> to vector<160x32xf32>
    %36 = arith.mulf %32, %35 : vector<160x32xf32>
    %37 = arith.addf %31, %36 : vector<160x32xf32>
    %c0_28 = arith.constant 0 : index
    %c0_29 = arith.constant 0 : index
    %38 = vector.load %arg3[%c0_28, %c0_29] : memref<1x32xf32, #tpu.memory_space<vmem>>, vector<1x32xf32>
    %39 = vector.broadcast %38 : vector<1x32xf32> to vector<160x32xf32>
    %40 = arith.addf %37, %39 : vector<160x32xf32>
    %cst_30 = arith.constant 0.000000e+00 : f32
    %41 = vector.broadcast %cst_30 : f32 to vector<2x32xf32>
    %c162 = arith.constant 162 : index
    %c0_31 = arith.constant 0 : index
    %42 = vector.load %arg11[%c162, %c0_31] : memref<164x32xf32, #tpu.memory_space<vmem>>, vector<2x32xf32>
    tpu.vector_store %arg11[%c162, %c0_31], %41 {strides = array<i32>} : memref<164x32xf32, #tpu.memory_space<vmem>>, vector<2x32xf32>,
    %c2_32 = arith.constant 2 : index
    %c0_33 = arith.constant 0 : index
    %43 = vector.load %arg11[%c2_32, %c0_33] : memref<164x32xf32, #tpu.memory_space<vmem>>, vector<160x32xf32>
    tpu.vector_store %arg11[%c2_32, %c0_33], %40 {strides = array<i32>} : memref<164x32xf32, #tpu.memory_space<vmem>>, vector<160x32xf32>,
    %c0_34 = arith.constant 0 : index
    %c0_35 = arith.constant 0 : index
    %44 = vector.load %arg11[%c0_34, %c0_35] : memref<164x32xf32, #tpu.memory_space<vmem>>, vector<160x32xf32>
    %c1_36 = arith.constant 1 : index
    %c0_37 = arith.constant 0 : index
    %45 = vector.load %arg11[%c1_36, %c0_37] : memref<164x32xf32, #tpu.memory_space<vmem>>, vector<160x32xf32>
    %c2_38 = arith.constant 2 : index
    %c0_39 = arith.constant 0 : index
    %46 = vector.load %arg11[%c2_38, %c0_39] : memref<164x32xf32, #tpu.memory_space<vmem>>, vector<160x32xf32>
    %c3_40 = arith.constant 3 : index
    %c0_41 = arith.constant 0 : index
    %47 = vector.load %arg11[%c3_40, %c0_41] : memref<164x32xf32, #tpu.memory_space<vmem>>, vector<160x32xf32>
    %c4_42 = arith.constant 4 : index
    %c0_43 = arith.constant 0 : index
    %48 = vector.load %arg11[%c4_42, %c0_43] : memref<164x32xf32, #tpu.memory_space<vmem>>, vector<160x32xf32>
    %49 = tpu.concatenate %44, %45, %46, %47, %48 in 1 : vector<160x32xf32>, vector<160x32xf32>, vector<160x32xf32>, vector<160x32xf32>, vector<160x32xf32> -> vector<160x160xf32>
    %c0_44 = arith.constant 0 : index
    %c0_45 = arith.constant 0 : index
    %c0_46 = arith.constant 0 : index
    %50 = vector.load %arg4[%c0_44, %c0_45, %c0_46] : memref<10x160x32xf32, #tpu.memory_space<vmem>>, vector<1x160x32xf32>
    %51 = vector.shape_cast %50 : vector<1x160x32xf32> to vector<160x32xf32>
    %cst_47 = arith.constant dense<0.000000e+00> : vector<160x32xf32>
    %52 = tpu.matmul %49, %51, %cst_47 {dimension_numbers = #tpu.dot_dimension_numbers<[1], [0], [0], [1], [0, 0, 1, 1], [], []>} : vector<160x160xf32>, vector<160x32xf32>, vector<160x32xf32> -> vector<160x32xf32>
    %c0_48 = arith.constant 0 : index
    %c0_49 = arith.constant 0 : index
    %c0_50 = arith.constant 0 : index
    %53 = vector.load %arg5[%c0_48, %c0_49, %c0_50] : memref<10x1x32xf32, #tpu.memory_space<vmem>>, vector<1x1x32xf32>
    %54 = vector.shape_cast %53 : vector<1x1x32xf32> to vector<1x32xf32>
    %55 = vector.broadcast %54 : vector<1x32xf32> to vector<160x32xf32>
    %56 = arith.addf %52, %55 : vector<160x32xf32>
    %cst_51 = arith.constant 0.000000e+00 : f32
    %57 = vector.broadcast %cst_51 : f32 to vector<160x32xf32>
    %58 = arith.maximumf %56, %57 : vector<160x32xf32>
    %cst_52 = arith.constant 0.000000e+00 : f32
    %59 = vector.broadcast %cst_52 : f32 to vector<2x32xf32>
    %c162_53 = arith.constant 162 : index
    %c0_54 = arith.constant 0 : index
    %60 = vector.load %arg11[%c162_53, %c0_54] : memref<164x32xf32, #tpu.memory_space<vmem>>, vector<2x32xf32>
    tpu.vector_store %arg11[%c162_53, %c0_54], %59 {strides = array<i32>} : memref<164x32xf32, #tpu.memory_space<vmem>>, vector<2x32xf32>,
    %c2_55 = arith.constant 2 : index
    %c0_56 = arith.constant 0 : index
    %61 = vector.load %arg11[%c2_55, %c0_56] : memref<164x32xf32, #tpu.memory_space<vmem>>, vector<160x32xf32>
    tpu.vector_store %arg11[%c2_55, %c0_56], %58 {strides = array<i32>} : memref<164x32xf32, #tpu.memory_space<vmem>>, vector<160x32xf32>,
    %c0_57 = arith.constant 0 : index
    %c0_58 = arith.constant 0 : index
    %62 = vector.load %arg11[%c0_57, %c0_58] : memref<164x32xf32, #tpu.memory_space<vmem>>, vector<160x32xf32>
    %c1_59 = arith.constant 1 : index
    %c0_60 = arith.constant 0 : index
    %63 = vector.load %arg11[%c1_59, %c0_60] : memref<164x32xf32, #tpu.memory_space<vmem>>, vector<160x32xf32>
    %c2_61 = arith.constant 2 : index
    %c0_62 = arith.constant 0 : index
    %64 = vector.load %arg11[%c2_61, %c0_62] : memref<164x32xf32, #tpu.memory_space<vmem>>, vector<160x32xf32>
    %c3_63 = arith.constant 3 : index
    %c0_64 = arith.constant 0 : index
    %65 = vector.load %arg11[%c3_63, %c0_64] : memref<164x32xf32, #tpu.memory_space<vmem>>, vector<160x32xf32>
    %c4_65 = arith.constant 4 : index
    %c0_66 = arith.constant 0 : index
    %66 = vector.load %arg11[%c4_65, %c0_66] : memref<164x32xf32, #tpu.memory_space<vmem>>, vector<160x32xf32>
    %67 = tpu.concatenate %62, %63, %64, %65, %66 in 1 : vector<160x32xf32>, vector<160x32xf32>, vector<160x32xf32>, vector<160x32xf32>, vector<160x32xf32> -> vector<160x160xf32>
    %c1_67 = arith.constant 1 : index
    %c0_68 = arith.constant 0 : index
    %c0_69 = arith.constant 0 : index
    %68 = vector.load %arg4[%c1_67, %c0_68, %c0_69] : memref<10x160x32xf32, #tpu.memory_space<vmem>>, vector<1x160x32xf32>
    %69 = vector.shape_cast %68 : vector<1x160x32xf32> to vector<160x32xf32>
    %cst_70 = arith.constant dense<0.000000e+00> : vector<160x32xf32>
    %70 = tpu.matmul %67, %69, %cst_70 {dimension_numbers = #tpu.dot_dimension_numbers<[1], [0], [0], [1], [0, 0, 1, 1], [], []>} : vector<160x160xf32>, vector<160x32xf32>, vector<160x32xf32> -> vector<160x32xf32>
    %c1_71 = arith.constant 1 : index
    %c0_72 = arith.constant 0 : index
    %c0_73 = arith.constant 0 : index
    %71 = vector.load %arg5[%c1_71, %c0_72, %c0_73] : memref<10x1x32xf32, #tpu.memory_space<vmem>>, vector<1x1x32xf32>
    %72 = vector.shape_cast %71 : vector<1x1x32xf32> to vector<1x32xf32>
    %73 = vector.broadcast %72 : vector<1x32xf32> to vector<160x32xf32>
    %74 = arith.addf %70, %73 : vector<160x32xf32>
    %75 = arith.addf %74, %40 : vector<160x32xf32>
    %cst_74 = arith.constant 0.000000e+00 : f32
    %76 = vector.broadcast %cst_74 : f32 to vector<160x32xf32>
    %77 = arith.maximumf %75, %76 : vector<160x32xf32>
    %c2_75 = arith.constant 2 : index
    %c0_76 = arith.constant 0 : index
    %78 = vector.load %arg11[%c2_75, %c0_76] : memref<164x32xf32, #tpu.memory_space<vmem>>, vector<160x32xf32>
    tpu.vector_store %arg11[%c2_75, %c0_76], %77 {strides = array<i32>} : memref<164x32xf32, #tpu.memory_space<vmem>>, vector<160x32xf32>,
    %c2_77 = arith.constant 2 : index
    %c0_78 = arith.constant 0 : index
    %79 = tpu.strided_load %arg11[%c2_77, %c0_78] {strides = array<i32: 2, 1>} : memref<164x32xf32, #tpu.memory_space<vmem>>, vector<78x32xf32>
    %c3_79 = arith.constant 3 : index
    %c0_80 = arith.constant 0 : index
    %80 = tpu.strided_load %arg11[%c3_79, %c0_80] {strides = array<i32: 2, 1>} : memref<164x32xf32, #tpu.memory_space<vmem>>, vector<78x32xf32>
    %81 = arith.maximumf %79, %80 : vector<78x32xf32>
    %c4_81 = arith.constant 4 : index
    %c0_82 = arith.constant 0 : index
    %82 = tpu.strided_load %arg11[%c4_81, %c0_82] {strides = array<i32: 2, 1>} : memref<164x32xf32, #tpu.memory_space<vmem>>, vector<78x32xf32>
    %83 = arith.maximumf %81, %82 : vector<78x32xf32>
    %c5 = arith.constant 5 : index
    %c0_83 = arith.constant 0 : index
    %84 = tpu.strided_load %arg11[%c5, %c0_83] {strides = array<i32: 2, 1>} : memref<164x32xf32, #tpu.memory_space<vmem>>, vector<78x32xf32>
    %85 = arith.maximumf %83, %84 : vector<78x32xf32>
    %c6 = arith.constant 6 : index
    %c0_84 = arith.constant 0 : index
    %86 = tpu.strided_load %arg11[%c6, %c0_84] {strides = array<i32: 2, 1>} : memref<164x32xf32, #tpu.memory_space<vmem>>, vector<78x32xf32>
    %87 = arith.maximumf %85, %86 : vector<78x32xf32>
    %cst_85 = arith.constant 0.000000e+00 : f32
    %88 = vector.broadcast %cst_85 : f32 to vector<2x32xf32>
    %c80 = arith.constant 80 : index
    %c0_86 = arith.constant 0 : index
    %89 = vector.load %arg11[%c80, %c0_86] : memref<164x32xf32, #tpu.memory_space<vmem>>, vector<2x32xf32>
    tpu.vector_store %arg11[%c80, %c0_86], %88 {strides = array<i32>} : memref<164x32xf32, #tpu.memory_space<vmem>>, vector<2x32xf32>,
    %c2_87 = arith.constant 2 : index
    %c0_88 = arith.constant 0 : index
    %90 = vector.load %arg11[%c2_87, %c0_88] : memref<164x32xf32, #tpu.memory_space<vmem>>, vector<78x32xf32>
    tpu.vector_store %arg11[%c2_87, %c0_88], %87 {strides = array<i32>} : memref<164x32xf32, #tpu.memory_space<vmem>>, vector<78x32xf32>,
    %c0_89 = arith.constant 0 : index
    %c0_90 = arith.constant 0 : index
    %91 = vector.load %arg11[%c0_89, %c0_90] : memref<164x32xf32, #tpu.memory_space<vmem>>, vector<78x32xf32>
    %c1_91 = arith.constant 1 : index
    %c0_92 = arith.constant 0 : index
    %92 = vector.load %arg11[%c1_91, %c0_92] : memref<164x32xf32, #tpu.memory_space<vmem>>, vector<78x32xf32>
    %c2_93 = arith.constant 2 : index
    %c0_94 = arith.constant 0 : index
    %93 = vector.load %arg11[%c2_93, %c0_94] : memref<164x32xf32, #tpu.memory_space<vmem>>, vector<78x32xf32>
    %c3_95 = arith.constant 3 : index
    %c0_96 = arith.constant 0 : index
    %94 = vector.load %arg11[%c3_95, %c0_96] : memref<164x32xf32, #tpu.memory_space<vmem>>, vector<78x32xf32>
    %c4_97 = arith.constant 4 : index
    %c0_98 = arith.constant 0 : index
    %95 = vector.load %arg11[%c4_97, %c0_98] : memref<164x32xf32, #tpu.memory_space<vmem>>, vector<78x32xf32>
    %96 = tpu.concatenate %91, %92, %93, %94, %95 in 1 : vector<78x32xf32>, vector<78x32xf32>, vector<78x32xf32>, vector<78x32xf32>, vector<78x32xf32> -> vector<78x160xf32>
    %c2_99 = arith.constant 2 : index
    %c0_100 = arith.constant 0 : index
    %c0_101 = arith.constant 0 : index
    %97 = vector.load %arg4[%c2_99, %c0_100, %c0_101] : memref<10x160x32xf32, #tpu.memory_space<vmem>>, vector<1x160x32xf32>
    %98 = vector.shape_cast %97 : vector<1x160x32xf32> to vector<160x32xf32>
    %cst_102 = arith.constant dense<0.000000e+00> : vector<78x32xf32>
    %99 = tpu.matmul %96, %98, %cst_102 {dimension_numbers = #tpu.dot_dimension_numbers<[1], [0], [0], [1], [0, 0, 1, 1], [], []>} : vector<78x160xf32>, vector<160x32xf32>, vector<78x32xf32> -> vector<78x32xf32>
    %c2_103 = arith.constant 2 : index
    %c0_104 = arith.constant 0 : index
    %c0_105 = arith.constant 0 : index
    %100 = vector.load %arg5[%c2_103, %c0_104, %c0_105] : memref<10x1x32xf32, #tpu.memory_space<vmem>>, vector<1x1x32xf32>
    %101 = vector.shape_cast %100 : vector<1x1x32xf32> to vector<1x32xf32>
    %102 = vector.broadcast %101 : vector<1x32xf32> to vector<78x32xf32>
    %103 = arith.addf %99, %102 : vector<78x32xf32>
    %cst_106 = arith.constant 0.000000e+00 : f32
    %104 = vector.broadcast %cst_106 : f32 to vector<78x32xf32>
    %105 = arith.maximumf %103, %104 : vector<78x32xf32>
    %cst_107 = arith.constant 0.000000e+00 : f32
    %106 = vector.broadcast %cst_107 : f32 to vector<2x32xf32>
    %c80_108 = arith.constant 80 : index
    %c0_109 = arith.constant 0 : index
    %107 = vector.load %arg11[%c80_108, %c0_109] : memref<164x32xf32, #tpu.memory_space<vmem>>, vector<2x32xf32>
    tpu.vector_store %arg11[%c80_108, %c0_109], %106 {strides = array<i32>} : memref<164x32xf32, #tpu.memory_space<vmem>>, vector<2x32xf32>,
    %c2_110 = arith.constant 2 : index
    %c0_111 = arith.constant 0 : index
    %108 = vector.load %arg11[%c2_110, %c0_111] : memref<164x32xf32, #tpu.memory_space<vmem>>, vector<78x32xf32>
    tpu.vector_store %arg11[%c2_110, %c0_111], %105 {strides = array<i32>} : memref<164x32xf32, #tpu.memory_space<vmem>>, vector<78x32xf32>,
    %c0_112 = arith.constant 0 : index
    %c0_113 = arith.constant 0 : index
    %109 = vector.load %arg11[%c0_112, %c0_113] : memref<164x32xf32, #tpu.memory_space<vmem>>, vector<78x32xf32>
    %c1_114 = arith.constant 1 : index
    %c0_115 = arith.constant 0 : index
    %110 = vector.load %arg11[%c1_114, %c0_115] : memref<164x32xf32, #tpu.memory_space<vmem>>, vector<78x32xf32>
    %c2_116 = arith.constant 2 : index
    %c0_117 = arith.constant 0 : index
    %111 = vector.load %arg11[%c2_116, %c0_117] : memref<164x32xf32, #tpu.memory_space<vmem>>, vector<78x32xf32>
    %c3_118 = arith.constant 3 : index
    %c0_119 = arith.constant 0 : index
    %112 = vector.load %arg11[%c3_118, %c0_119] : memref<164x32xf32, #tpu.memory_space<vmem>>, vector<78x32xf32>
    %c4_120 = arith.constant 4 : index
    %c0_121 = arith.constant 0 : index
    %113 = vector.load %arg11[%c4_120, %c0_121] : memref<164x32xf32, #tpu.memory_space<vmem>>, vector<78x32xf32>
    %114 = tpu.concatenate %109, %110, %111, %112, %113 in 1 : vector<78x32xf32>, vector<78x32xf32>, vector<78x32xf32>, vector<78x32xf32>, vector<78x32xf32> -> vector<78x160xf32>
    %c3_122 = arith.constant 3 : index
    %c0_123 = arith.constant 0 : index
    %c0_124 = arith.constant 0 : index
    %115 = vector.load %arg4[%c3_122, %c0_123, %c0_124] : memref<10x160x32xf32, #tpu.memory_space<vmem>>, vector<1x160x32xf32>
    %116 = vector.shape_cast %115 : vector<1x160x32xf32> to vector<160x32xf32>
    %cst_125 = arith.constant dense<0.000000e+00> : vector<78x32xf32>
    %117 = tpu.matmul %114, %116, %cst_125 {dimension_numbers = #tpu.dot_dimension_numbers<[1], [0], [0], [1], [0, 0, 1, 1], [], []>} : vector<78x160xf32>, vector<160x32xf32>, vector<78x32xf32> -> vector<78x32xf32>
    %c3_126 = arith.constant 3 : index
    %c0_127 = arith.constant 0 : index
    %c0_128 = arith.constant 0 : index
    %118 = vector.load %arg5[%c3_126, %c0_127, %c0_128] : memref<10x1x32xf32, #tpu.memory_space<vmem>>, vector<1x1x32xf32>
    %119 = vector.shape_cast %118 : vector<1x1x32xf32> to vector<1x32xf32>
    %120 = vector.broadcast %119 : vector<1x32xf32> to vector<78x32xf32>
    %121 = arith.addf %117, %120 : vector<78x32xf32>
    %122 = arith.addf %121, %87 : vector<78x32xf32>
    %cst_129 = arith.constant 0.000000e+00 : f32
    %123 = vector.broadcast %cst_129 : f32 to vector<78x32xf32>
    %124 = arith.maximumf %122, %123 : vector<78x32xf32>
    %c2_130 = arith.constant 2 : index
    %c0_131 = arith.constant 0 : index
    %125 = vector.load %arg11[%c2_130, %c0_131] : memref<164x32xf32, #tpu.memory_space<vmem>>, vector<78x32xf32>
    tpu.vector_store %arg11[%c2_130, %c0_131], %124 {strides = array<i32>} : memref<164x32xf32, #tpu.memory_space<vmem>>, vector<78x32xf32>,
    %c2_132 = arith.constant 2 : index
    %c0_133 = arith.constant 0 : index
    %126 = tpu.strided_load %arg11[%c2_132, %c0_133] {strides = array<i32: 2, 1>} : memref<164x32xf32, #tpu.memory_space<vmem>>, vector<37x32xf32>
    %c3_134 = arith.constant 3 : index
    %c0_135 = arith.constant 0 : index
    %127 = tpu.strided_load %arg11[%c3_134, %c0_135] {strides = array<i32: 2, 1>} : memref<164x32xf32, #tpu.memory_space<vmem>>, vector<37x32xf32>
    %128 = arith.maximumf %126, %127 : vector<37x32xf32>
    %c4_136 = arith.constant 4 : index
    %c0_137 = arith.constant 0 : index
    %129 = tpu.strided_load %arg11[%c4_136, %c0_137] {strides = array<i32: 2, 1>} : memref<164x32xf32, #tpu.memory_space<vmem>>, vector<37x32xf32>
    %130 = arith.maximumf %128, %129 : vector<37x32xf32>
    %c5_138 = arith.constant 5 : index
    %c0_139 = arith.constant 0 : index
    %131 = tpu.strided_load %arg11[%c5_138, %c0_139] {strides = array<i32: 2, 1>} : memref<164x32xf32, #tpu.memory_space<vmem>>, vector<37x32xf32>
    %132 = arith.maximumf %130, %131 : vector<37x32xf32>
    %c6_140 = arith.constant 6 : index
    %c0_141 = arith.constant 0 : index
    %133 = tpu.strided_load %arg11[%c6_140, %c0_141] {strides = array<i32: 2, 1>} : memref<164x32xf32, #tpu.memory_space<vmem>>, vector<37x32xf32>
    %134 = arith.maximumf %132, %133 : vector<37x32xf32>
    %cst_142 = arith.constant 0.000000e+00 : f32
    %135 = vector.broadcast %cst_142 : f32 to vector<2x32xf32>
    %c39 = arith.constant 39 : index
    %c0_143 = arith.constant 0 : index
    %136 = vector.load %arg11[%c39, %c0_143] : memref<164x32xf32, #tpu.memory_space<vmem>>, vector<2x32xf32>
    tpu.vector_store %arg11[%c39, %c0_143], %135 {strides = array<i32>} : memref<164x32xf32, #tpu.memory_space<vmem>>, vector<2x32xf32>,
    %c2_144 = arith.constant 2 : index
    %c0_145 = arith.constant 0 : index
    %137 = vector.load %arg11[%c2_144, %c0_145] : memref<164x32xf32, #tpu.memory_space<vmem>>, vector<37x32xf32>
    tpu.vector_store %arg11[%c2_144, %c0_145], %134 {strides = array<i32>} : memref<164x32xf32, #tpu.memory_space<vmem>>, vector<37x32xf32>,
    %c0_146 = arith.constant 0 : index
    %c0_147 = arith.constant 0 : index
    %138 = vector.load %arg11[%c0_146, %c0_147] : memref<164x32xf32, #tpu.memory_space<vmem>>, vector<37x32xf32>
    %c1_148 = arith.constant 1 : index
    %c0_149 = arith.constant 0 : index
    %139 = vector.load %arg11[%c1_148, %c0_149] : memref<164x32xf32, #tpu.memory_space<vmem>>, vector<37x32xf32>
    %c2_150 = arith.constant 2 : index
    %c0_151 = arith.constant 0 : index
    %140 = vector.load %arg11[%c2_150, %c0_151] : memref<164x32xf32, #tpu.memory_space<vmem>>, vector<37x32xf32>
    %c3_152 = arith.constant 3 : index
    %c0_153 = arith.constant 0 : index
    %141 = vector.load %arg11[%c3_152, %c0_153] : memref<164x32xf32, #tpu.memory_space<vmem>>, vector<37x32xf32>
    %c4_154 = arith.constant 4 : index
    %c0_155 = arith.constant 0 : index
    %142 = vector.load %arg11[%c4_154, %c0_155] : memref<164x32xf32, #tpu.memory_space<vmem>>, vector<37x32xf32>
    %143 = tpu.concatenate %138, %139, %140, %141, %142 in 1 : vector<37x32xf32>, vector<37x32xf32>, vector<37x32xf32>, vector<37x32xf32>, vector<37x32xf32> -> vector<37x160xf32>
    %c4_156 = arith.constant 4 : index
    %c0_157 = arith.constant 0 : index
    %c0_158 = arith.constant 0 : index
    %144 = vector.load %arg4[%c4_156, %c0_157, %c0_158] : memref<10x160x32xf32, #tpu.memory_space<vmem>>, vector<1x160x32xf32>
    %145 = vector.shape_cast %144 : vector<1x160x32xf32> to vector<160x32xf32>
    %cst_159 = arith.constant dense<0.000000e+00> : vector<37x32xf32>
    %146 = tpu.matmul %143, %145, %cst_159 {dimension_numbers = #tpu.dot_dimension_numbers<[1], [0], [0], [1], [0, 0, 1, 1], [], []>} : vector<37x160xf32>, vector<160x32xf32>, vector<37x32xf32> -> vector<37x32xf32>
    %c4_160 = arith.constant 4 : index
    %c0_161 = arith.constant 0 : index
    %c0_162 = arith.constant 0 : index
    %147 = vector.load %arg5[%c4_160, %c0_161, %c0_162] : memref<10x1x32xf32, #tpu.memory_space<vmem>>, vector<1x1x32xf32>
    %148 = vector.shape_cast %147 : vector<1x1x32xf32> to vector<1x32xf32>
    %149 = vector.broadcast %148 : vector<1x32xf32> to vector<37x32xf32>
    %150 = arith.addf %146, %149 : vector<37x32xf32>
    %cst_163 = arith.constant 0.000000e+00 : f32
    %151 = vector.broadcast %cst_163 : f32 to vector<37x32xf32>
    %152 = arith.maximumf %150, %151 : vector<37x32xf32>
    %cst_164 = arith.constant 0.000000e+00 : f32
    %153 = vector.broadcast %cst_164 : f32 to vector<2x32xf32>
    %c39_165 = arith.constant 39 : index
    %c0_166 = arith.constant 0 : index
    %154 = vector.load %arg11[%c39_165, %c0_166] : memref<164x32xf32, #tpu.memory_space<vmem>>, vector<2x32xf32>
    tpu.vector_store %arg11[%c39_165, %c0_166], %153 {strides = array<i32>} : memref<164x32xf32, #tpu.memory_space<vmem>>, vector<2x32xf32>,
    %c2_167 = arith.constant 2 : index
    %c0_168 = arith.constant 0 : index
    %155 = vector.load %arg11[%c2_167, %c0_168] : memref<164x32xf32, #tpu.memory_space<vmem>>, vector<37x32xf32>
    tpu.vector_store %arg11[%c2_167, %c0_168], %152 {strides = array<i32>} : memref<164x32xf32, #tpu.memory_space<vmem>>, vector<37x32xf32>,
    %c0_169 = arith.constant 0 : index
    %c0_170 = arith.constant 0 : index
    %156 = vector.load %arg11[%c0_169, %c0_170] : memref<164x32xf32, #tpu.memory_space<vmem>>, vector<37x32xf32>
    %c1_171 = arith.constant 1 : index
    %c0_172 = arith.constant 0 : index
    %157 = vector.load %arg11[%c1_171, %c0_172] : memref<164x32xf32, #tpu.memory_space<vmem>>, vector<37x32xf32>
    %c2_173 = arith.constant 2 : index
    %c0_174 = arith.constant 0 : index
    %158 = vector.load %arg11[%c2_173, %c0_174] : memref<164x32xf32, #tpu.memory_space<vmem>>, vector<37x32xf32>
    %c3_175 = arith.constant 3 : index
    %c0_176 = arith.constant 0 : index
    %159 = vector.load %arg11[%c3_175, %c0_176] : memref<164x32xf32, #tpu.memory_space<vmem>>, vector<37x32xf32>
    %c4_177 = arith.constant 4 : index
    %c0_178 = arith.constant 0 : index
    %160 = vector.load %arg11[%c4_177, %c0_178] : memref<164x32xf32, #tpu.memory_space<vmem>>, vector<37x32xf32>
    %161 = tpu.concatenate %156, %157, %158, %159, %160 in 1 : vector<37x32xf32>, vector<37x32xf32>, vector<37x32xf32>, vector<37x32xf32>, vector<37x32xf32> -> vector<37x160xf32>
    %c5_179 = arith.constant 5 : index
    %c0_180 = arith.constant 0 : index
    %c0_181 = arith.constant 0 : index
    %162 = vector.load %arg4[%c5_179, %c0_180, %c0_181] : memref<10x160x32xf32, #tpu.memory_space<vmem>>, vector<1x160x32xf32>
    %163 = vector.shape_cast %162 : vector<1x160x32xf32> to vector<160x32xf32>
    %cst_182 = arith.constant dense<0.000000e+00> : vector<37x32xf32>
    %164 = tpu.matmul %161, %163, %cst_182 {dimension_numbers = #tpu.dot_dimension_numbers<[1], [0], [0], [1], [0, 0, 1, 1], [], []>} : vector<37x160xf32>, vector<160x32xf32>, vector<37x32xf32> -> vector<37x32xf32>
    %c5_183 = arith.constant 5 : index
    %c0_184 = arith.constant 0 : index
    %c0_185 = arith.constant 0 : index
    %165 = vector.load %arg5[%c5_183, %c0_184, %c0_185] : memref<10x1x32xf32, #tpu.memory_space<vmem>>, vector<1x1x32xf32>
    %166 = vector.shape_cast %165 : vector<1x1x32xf32> to vector<1x32xf32>
    %167 = vector.broadcast %166 : vector<1x32xf32> to vector<37x32xf32>
    %168 = arith.addf %164, %167 : vector<37x32xf32>
    %169 = arith.addf %168, %134 : vector<37x32xf32>
    %cst_186 = arith.constant 0.000000e+00 : f32
    %170 = vector.broadcast %cst_186 : f32 to vector<37x32xf32>
    %171 = arith.maximumf %169, %170 : vector<37x32xf32>
    %c2_187 = arith.constant 2 : index
    %c0_188 = arith.constant 0 : index
    %172 = vector.load %arg11[%c2_187, %c0_188] : memref<164x32xf32, #tpu.memory_space<vmem>>, vector<37x32xf32>
    tpu.vector_store %arg11[%c2_187, %c0_188], %171 {strides = array<i32>} : memref<164x32xf32, #tpu.memory_space<vmem>>, vector<37x32xf32>,
    %c2_189 = arith.constant 2 : index
    %c0_190 = arith.constant 0 : index
    %173 = tpu.strided_load %arg11[%c2_189, %c0_190] {strides = array<i32: 2, 1>} : memref<164x32xf32, #tpu.memory_space<vmem>>, vector<17x32xf32>
    %c3_191 = arith.constant 3 : index
    %c0_192 = arith.constant 0 : index
    %174 = tpu.strided_load %arg11[%c3_191, %c0_192] {strides = array<i32: 2, 1>} : memref<164x32xf32, #tpu.memory_space<vmem>>, vector<17x32xf32>
    %175 = arith.maximumf %173, %174 : vector<17x32xf32>
    %c4_193 = arith.constant 4 : index
    %c0_194 = arith.constant 0 : index
    %176 = tpu.strided_load %arg11[%c4_193, %c0_194] {strides = array<i32: 2, 1>} : memref<164x32xf32, #tpu.memory_space<vmem>>, vector<17x32xf32>
    %177 = arith.maximumf %175, %176 : vector<17x32xf32>
    %c5_195 = arith.constant 5 : index
    %c0_196 = arith.constant 0 : index
    %178 = tpu.strided_load %arg11[%c5_195, %c0_196] {strides = array<i32: 2, 1>} : memref<164x32xf32, #tpu.memory_space<vmem>>, vector<17x32xf32>
    %179 = arith.maximumf %177, %178 : vector<17x32xf32>
    %c6_197 = arith.constant 6 : index
    %c0_198 = arith.constant 0 : index
    %180 = tpu.strided_load %arg11[%c6_197, %c0_198] {strides = array<i32: 2, 1>} : memref<164x32xf32, #tpu.memory_space<vmem>>, vector<17x32xf32>
    %181 = arith.maximumf %179, %180 : vector<17x32xf32>
    %cst_199 = arith.constant 0.000000e+00 : f32
    %182 = vector.broadcast %cst_199 : f32 to vector<2x32xf32>
    %c19 = arith.constant 19 : index
    %c0_200 = arith.constant 0 : index
    %183 = vector.load %arg11[%c19, %c0_200] : memref<164x32xf32, #tpu.memory_space<vmem>>, vector<2x32xf32>
    tpu.vector_store %arg11[%c19, %c0_200], %182 {strides = array<i32>} : memref<164x32xf32, #tpu.memory_space<vmem>>, vector<2x32xf32>,
    %c2_201 = arith.constant 2 : index
    %c0_202 = arith.constant 0 : index
    %184 = vector.load %arg11[%c2_201, %c0_202] : memref<164x32xf32, #tpu.memory_space<vmem>>, vector<17x32xf32>
    tpu.vector_store %arg11[%c2_201, %c0_202], %181 {strides = array<i32>} : memref<164x32xf32, #tpu.memory_space<vmem>>, vector<17x32xf32>,
    %c0_203 = arith.constant 0 : index
    %c0_204 = arith.constant 0 : index
    %185 = vector.load %arg11[%c0_203, %c0_204] : memref<164x32xf32, #tpu.memory_space<vmem>>, vector<17x32xf32>
    %c1_205 = arith.constant 1 : index
    %c0_206 = arith.constant 0 : index
    %186 = vector.load %arg11[%c1_205, %c0_206] : memref<164x32xf32, #tpu.memory_space<vmem>>, vector<17x32xf32>
    %c2_207 = arith.constant 2 : index
    %c0_208 = arith.constant 0 : index
    %187 = vector.load %arg11[%c2_207, %c0_208] : memref<164x32xf32, #tpu.memory_space<vmem>>, vector<17x32xf32>
    %c3_209 = arith.constant 3 : index
    %c0_210 = arith.constant 0 : index
    %188 = vector.load %arg11[%c3_209, %c0_210] : memref<164x32xf32, #tpu.memory_space<vmem>>, vector<17x32xf32>
    %c4_211 = arith.constant 4 : index
    %c0_212 = arith.constant 0 : index
    %189 = vector.load %arg11[%c4_211, %c0_212] : memref<164x32xf32, #tpu.memory_space<vmem>>, vector<17x32xf32>
    %190 = tpu.concatenate %185, %186, %187, %188, %189 in 1 : vector<17x32xf32>, vector<17x32xf32>, vector<17x32xf32>, vector<17x32xf32>, vector<17x32xf32> -> vector<17x160xf32>
    %c6_213 = arith.constant 6 : index
    %c0_214 = arith.constant 0 : index
    %c0_215 = arith.constant 0 : index
    %191 = vector.load %arg4[%c6_213, %c0_214, %c0_215] : memref<10x160x32xf32, #tpu.memory_space<vmem>>, vector<1x160x32xf32>
    %192 = vector.shape_cast %191 : vector<1x160x32xf32> to vector<160x32xf32>
    %cst_216 = arith.constant dense<0.000000e+00> : vector<17x32xf32>
    %193 = tpu.matmul %190, %192, %cst_216 {dimension_numbers = #tpu.dot_dimension_numbers<[1], [0], [0], [1], [0, 0, 1, 1], [], []>} : vector<17x160xf32>, vector<160x32xf32>, vector<17x32xf32> -> vector<17x32xf32>
    %c6_217 = arith.constant 6 : index
    %c0_218 = arith.constant 0 : index
    %c0_219 = arith.constant 0 : index
    %194 = vector.load %arg5[%c6_217, %c0_218, %c0_219] : memref<10x1x32xf32, #tpu.memory_space<vmem>>, vector<1x1x32xf32>
    %195 = vector.shape_cast %194 : vector<1x1x32xf32> to vector<1x32xf32>
    %196 = vector.broadcast %195 : vector<1x32xf32> to vector<17x32xf32>
    %197 = arith.addf %193, %196 : vector<17x32xf32>
    %cst_220 = arith.constant 0.000000e+00 : f32
    %198 = vector.broadcast %cst_220 : f32 to vector<17x32xf32>
    %199 = arith.maximumf %197, %198 : vector<17x32xf32>
    %cst_221 = arith.constant 0.000000e+00 : f32
    %200 = vector.broadcast %cst_221 : f32 to vector<2x32xf32>
    %c19_222 = arith.constant 19 : index
    %c0_223 = arith.constant 0 : index
    %201 = vector.load %arg11[%c19_222, %c0_223] : memref<164x32xf32, #tpu.memory_space<vmem>>, vector<2x32xf32>
    tpu.vector_store %arg11[%c19_222, %c0_223], %200 {strides = array<i32>} : memref<164x32xf32, #tpu.memory_space<vmem>>, vector<2x32xf32>,
    %c2_224 = arith.constant 2 : index
    %c0_225 = arith.constant 0 : index
    %202 = vector.load %arg11[%c2_224, %c0_225] : memref<164x32xf32, #tpu.memory_space<vmem>>, vector<17x32xf32>
    tpu.vector_store %arg11[%c2_224, %c0_225], %199 {strides = array<i32>} : memref<164x32xf32, #tpu.memory_space<vmem>>, vector<17x32xf32>,
    %c0_226 = arith.constant 0 : index
    %c0_227 = arith.constant 0 : index
    %203 = vector.load %arg11[%c0_226, %c0_227] : memref<164x32xf32, #tpu.memory_space<vmem>>, vector<17x32xf32>
    %c1_228 = arith.constant 1 : index
    %c0_229 = arith.constant 0 : index
    %204 = vector.load %arg11[%c1_228, %c0_229] : memref<164x32xf32, #tpu.memory_space<vmem>>, vector<17x32xf32>
    %c2_230 = arith.constant 2 : index
    %c0_231 = arith.constant 0 : index
    %205 = vector.load %arg11[%c2_230, %c0_231] : memref<164x32xf32, #tpu.memory_space<vmem>>, vector<17x32xf32>
    %c3_232 = arith.constant 3 : index
    %c0_233 = arith.constant 0 : index
    %206 = vector.load %arg11[%c3_232, %c0_233] : memref<164x32xf32, #tpu.memory_space<vmem>>, vector<17x32xf32>
    %c4_234 = arith.constant 4 : index
    %c0_235 = arith.constant 0 : index
    %207 = vector.load %arg11[%c4_234, %c0_235] : memref<164x32xf32, #tpu.memory_space<vmem>>, vector<17x32xf32>
    %208 = tpu.concatenate %203, %204, %205, %206, %207 in 1 : vector<17x32xf32>, vector<17x32xf32>, vector<17x32xf32>, vector<17x32xf32>, vector<17x32xf32> -> vector<17x160xf32>
    %c7 = arith.constant 7 : index
    %c0_236 = arith.constant 0 : index
    %c0_237 = arith.constant 0 : index
    %209 = vector.load %arg4[%c7, %c0_236, %c0_237] : memref<10x160x32xf32, #tpu.memory_space<vmem>>, vector<1x160x32xf32>
    %210 = vector.shape_cast %209 : vector<1x160x32xf32> to vector<160x32xf32>
    %cst_238 = arith.constant dense<0.000000e+00> : vector<17x32xf32>
    %211 = tpu.matmul %208, %210, %cst_238 {dimension_numbers = #tpu.dot_dimension_numbers<[1], [0], [0], [1], [0, 0, 1, 1], [], []>} : vector<17x160xf32>, vector<160x32xf32>, vector<17x32xf32> -> vector<17x32xf32>
    %c7_239 = arith.constant 7 : index
    %c0_240 = arith.constant 0 : index
    %c0_241 = arith.constant 0 : index
    %212 = vector.load %arg5[%c7_239, %c0_240, %c0_241] : memref<10x1x32xf32, #tpu.memory_space<vmem>>, vector<1x1x32xf32>
    %213 = vector.shape_cast %212 : vector<1x1x32xf32> to vector<1x32xf32>
    %214 = vector.broadcast %213 : vector<1x32xf32> to vector<17x32xf32>
    %215 = arith.addf %211, %214 : vector<17x32xf32>
    %216 = arith.addf %215, %181 : vector<17x32xf32>
    %cst_242 = arith.constant 0.000000e+00 : f32
    %217 = vector.broadcast %cst_242 : f32 to vector<17x32xf32>
    %218 = arith.maximumf %216, %217 : vector<17x32xf32>
    %c2_243 = arith.constant 2 : index
    %c0_244 = arith.constant 0 : index
    %219 = vector.load %arg11[%c2_243, %c0_244] : memref<164x32xf32, #tpu.memory_space<vmem>>, vector<17x32xf32>
    tpu.vector_store %arg11[%c2_243, %c0_244], %218 {strides = array<i32>} : memref<164x32xf32, #tpu.memory_space<vmem>>, vector<17x32xf32>,
    %c2_245 = arith.constant 2 : index
    %c0_246 = arith.constant 0 : index
    %220 = tpu.strided_load %arg11[%c2_245, %c0_246] {strides = array<i32: 2, 1>} : memref<164x32xf32, #tpu.memory_space<vmem>>, vector<7x32xf32>
    %c3_247 = arith.constant 3 : index
    %c0_248 = arith.constant 0 : index
    %221 = tpu.strided_load %arg11[%c3_247, %c0_248] {strides = array<i32: 2, 1>} : memref<164x32xf32, #tpu.memory_space<vmem>>, vector<7x32xf32>
    %222 = arith.maximumf %220, %221 : vector<7x32xf32>
    %c4_249 = arith.constant 4 : index
    %c0_250 = arith.constant 0 : index
    %223 = tpu.strided_load %arg11[%c4_249, %c0_250] {strides = array<i32: 2, 1>} : memref<164x32xf32, #tpu.memory_space<vmem>>, vector<7x32xf32>
    %224 = arith.maximumf %222, %223 : vector<7x32xf32>
    %c5_251 = arith.constant 5 : index
    %c0_252 = arith.constant 0 : index
    %225 = tpu.strided_load %arg11[%c5_251, %c0_252] {strides = array<i32: 2, 1>} : memref<164x32xf32, #tpu.memory_space<vmem>>, vector<7x32xf32>
    %226 = arith.maximumf %224, %225 : vector<7x32xf32>
    %c6_253 = arith.constant 6 : index
    %c0_254 = arith.constant 0 : index
    %227 = tpu.strided_load %arg11[%c6_253, %c0_254] {strides = array<i32: 2, 1>} : memref<164x32xf32, #tpu.memory_space<vmem>>, vector<7x32xf32>
    %228 = arith.maximumf %226, %227 : vector<7x32xf32>
    %cst_255 = arith.constant 0.000000e+00 : f32
    %229 = vector.broadcast %cst_255 : f32 to vector<2x32xf32>
    %c9 = arith.constant 9 : index
    %c0_256 = arith.constant 0 : index
    %230 = vector.load %arg11[%c9, %c0_256] : memref<164x32xf32, #tpu.memory_space<vmem>>, vector<2x32xf32>
    tpu.vector_store %arg11[%c9, %c0_256], %229 {strides = array<i32>} : memref<164x32xf32, #tpu.memory_space<vmem>>, vector<2x32xf32>,
    %c2_257 = arith.constant 2 : index
    %c0_258 = arith.constant 0 : index
    %231 = vector.load %arg11[%c2_257, %c0_258] : memref<164x32xf32, #tpu.memory_space<vmem>>, vector<7x32xf32>
    tpu.vector_store %arg11[%c2_257, %c0_258], %228 {strides = array<i32>} : memref<164x32xf32, #tpu.memory_space<vmem>>, vector<7x32xf32>,
    %c0_259 = arith.constant 0 : index
    %c0_260 = arith.constant 0 : index
    %232 = vector.load %arg11[%c0_259, %c0_260] : memref<164x32xf32, #tpu.memory_space<vmem>>, vector<7x32xf32>
    %c1_261 = arith.constant 1 : index
    %c0_262 = arith.constant 0 : index
    %233 = vector.load %arg11[%c1_261, %c0_262] : memref<164x32xf32, #tpu.memory_space<vmem>>, vector<7x32xf32>
    %c2_263 = arith.constant 2 : index
    %c0_264 = arith.constant 0 : index
    %234 = vector.load %arg11[%c2_263, %c0_264] : memref<164x32xf32, #tpu.memory_space<vmem>>, vector<7x32xf32>
    %c3_265 = arith.constant 3 : index
    %c0_266 = arith.constant 0 : index
    %235 = vector.load %arg11[%c3_265, %c0_266] : memref<164x32xf32, #tpu.memory_space<vmem>>, vector<7x32xf32>
    %c4_267 = arith.constant 4 : index
    %c0_268 = arith.constant 0 : index
    %236 = vector.load %arg11[%c4_267, %c0_268] : memref<164x32xf32, #tpu.memory_space<vmem>>, vector<7x32xf32>
    %237 = tpu.concatenate %232, %233, %234, %235, %236 in 1 : vector<7x32xf32>, vector<7x32xf32>, vector<7x32xf32>, vector<7x32xf32>, vector<7x32xf32> -> vector<7x160xf32>
    %c8 = arith.constant 8 : index
    %c0_269 = arith.constant 0 : index
    %c0_270 = arith.constant 0 : index
    %238 = vector.load %arg4[%c8, %c0_269, %c0_270] : memref<10x160x32xf32, #tpu.memory_space<vmem>>, vector<1x160x32xf32>
    %239 = vector.shape_cast %238 : vector<1x160x32xf32> to vector<160x32xf32>
    %cst_271 = arith.constant dense<0.000000e+00> : vector<7x32xf32>
    %240 = tpu.matmul %237, %239, %cst_271 {dimension_numbers = #tpu.dot_dimension_numbers<[1], [0], [0], [1], [0, 0, 1, 1], [], []>} : vector<7x160xf32>, vector<160x32xf32>, vector<7x32xf32> -> vector<7x32xf32>
    %c8_272 = arith.constant 8 : index
    %c0_273 = arith.constant 0 : index
    %c0_274 = arith.constant 0 : index
    %241 = vector.load %arg5[%c8_272, %c0_273, %c0_274] : memref<10x1x32xf32, #tpu.memory_space<vmem>>, vector<1x1x32xf32>
    %242 = vector.shape_cast %241 : vector<1x1x32xf32> to vector<1x32xf32>
    %243 = vector.broadcast %242 : vector<1x32xf32> to vector<7x32xf32>
    %244 = arith.addf %240, %243 : vector<7x32xf32>
    %cst_275 = arith.constant 0.000000e+00 : f32
    %245 = vector.broadcast %cst_275 : f32 to vector<7x32xf32>
    %246 = arith.maximumf %244, %245 : vector<7x32xf32>
    %cst_276 = arith.constant 0.000000e+00 : f32
    %247 = vector.broadcast %cst_276 : f32 to vector<2x32xf32>
    %c9_277 = arith.constant 9 : index
    %c0_278 = arith.constant 0 : index
    %248 = vector.load %arg11[%c9_277, %c0_278] : memref<164x32xf32, #tpu.memory_space<vmem>>, vector<2x32xf32>
    tpu.vector_store %arg11[%c9_277, %c0_278], %247 {strides = array<i32>} : memref<164x32xf32, #tpu.memory_space<vmem>>, vector<2x32xf32>,
    %c2_279 = arith.constant 2 : index
    %c0_280 = arith.constant 0 : index
    %249 = vector.load %arg11[%c2_279, %c0_280] : memref<164x32xf32, #tpu.memory_space<vmem>>, vector<7x32xf32>
    tpu.vector_store %arg11[%c2_279, %c0_280], %246 {strides = array<i32>} : memref<164x32xf32, #tpu.memory_space<vmem>>, vector<7x32xf32>,
    %c0_281 = arith.constant 0 : index
    %c0_282 = arith.constant 0 : index
    %250 = vector.load %arg11[%c0_281, %c0_282] : memref<164x32xf32, #tpu.memory_space<vmem>>, vector<7x32xf32>
    %c1_283 = arith.constant 1 : index
    %c0_284 = arith.constant 0 : index
    %251 = vector.load %arg11[%c1_283, %c0_284] : memref<164x32xf32, #tpu.memory_space<vmem>>, vector<7x32xf32>
    %c2_285 = arith.constant 2 : index
    %c0_286 = arith.constant 0 : index
    %252 = vector.load %arg11[%c2_285, %c0_286] : memref<164x32xf32, #tpu.memory_space<vmem>>, vector<7x32xf32>
    %c3_287 = arith.constant 3 : index
    %c0_288 = arith.constant 0 : index
    %253 = vector.load %arg11[%c3_287, %c0_288] : memref<164x32xf32, #tpu.memory_space<vmem>>, vector<7x32xf32>
    %c4_289 = arith.constant 4 : index
    %c0_290 = arith.constant 0 : index
    %254 = vector.load %arg11[%c4_289, %c0_290] : memref<164x32xf32, #tpu.memory_space<vmem>>, vector<7x32xf32>
    %255 = tpu.concatenate %250, %251, %252, %253, %254 in 1 : vector<7x32xf32>, vector<7x32xf32>, vector<7x32xf32>, vector<7x32xf32>, vector<7x32xf32> -> vector<7x160xf32>
    %c9_291 = arith.constant 9 : index
    %c0_292 = arith.constant 0 : index
    %c0_293 = arith.constant 0 : index
    %256 = vector.load %arg4[%c9_291, %c0_292, %c0_293] : memref<10x160x32xf32, #tpu.memory_space<vmem>>, vector<1x160x32xf32>
    %257 = vector.shape_cast %256 : vector<1x160x32xf32> to vector<160x32xf32>
    %cst_294 = arith.constant dense<0.000000e+00> : vector<7x32xf32>
    %258 = tpu.matmul %255, %257, %cst_294 {dimension_numbers = #tpu.dot_dimension_numbers<[1], [0], [0], [1], [0, 0, 1, 1], [], []>} : vector<7x160xf32>, vector<160x32xf32>, vector<7x32xf32> -> vector<7x32xf32>
    %c9_295 = arith.constant 9 : index
    %c0_296 = arith.constant 0 : index
    %c0_297 = arith.constant 0 : index
    %259 = vector.load %arg5[%c9_295, %c0_296, %c0_297] : memref<10x1x32xf32, #tpu.memory_space<vmem>>, vector<1x1x32xf32>
    %260 = vector.shape_cast %259 : vector<1x1x32xf32> to vector<1x32xf32>
    %261 = vector.broadcast %260 : vector<1x32xf32> to vector<7x32xf32>
    %262 = arith.addf %258, %261 : vector<7x32xf32>
    %263 = arith.addf %262, %228 : vector<7x32xf32>
    %cst_298 = arith.constant 0.000000e+00 : f32
    %264 = vector.broadcast %cst_298 : f32 to vector<7x32xf32>
    %265 = arith.maximumf %263, %264 : vector<7x32xf32>
    %c2_299 = arith.constant 2 : index
    %c0_300 = arith.constant 0 : index
    %266 = vector.load %arg11[%c2_299, %c0_300] : memref<164x32xf32, #tpu.memory_space<vmem>>, vector<7x32xf32>
    tpu.vector_store %arg11[%c2_299, %c0_300], %265 {strides = array<i32>} : memref<164x32xf32, #tpu.memory_space<vmem>>, vector<7x32xf32>,
    %c2_301 = arith.constant 2 : index
    %c0_302 = arith.constant 0 : index
    %267 = tpu.strided_load %arg11[%c2_301, %c0_302] {strides = array<i32: 2, 1>} : memref<164x32xf32, #tpu.memory_space<vmem>>, vector<2x32xf32>
    %c3_303 = arith.constant 3 : index
    %c0_304 = arith.constant 0 : index
    %268 = tpu.strided_load %arg11[%c3_303, %c0_304] {strides = array<i32: 2, 1>} : memref<164x32xf32, #tpu.memory_space<vmem>>, vector<2x32xf32>
    %269 = arith.maximumf %267, %268 : vector<2x32xf32>
    %c4_305 = arith.constant 4 : index
    %c0_306 = arith.constant 0 : index
    %270 = tpu.strided_load %arg11[%c4_305, %c0_306] {strides = array<i32: 2, 1>} : memref<164x32xf32, #tpu.memory_space<vmem>>, vector<2x32xf32>
    %271 = arith.maximumf %269, %270 : vector<2x32xf32>
    %c5_307 = arith.constant 5 : index
    %c0_308 = arith.constant 0 : index
    %272 = tpu.strided_load %arg11[%c5_307, %c0_308] {strides = array<i32: 2, 1>} : memref<164x32xf32, #tpu.memory_space<vmem>>, vector<2x32xf32>
    %273 = arith.maximumf %271, %272 : vector<2x32xf32>
    %c6_309 = arith.constant 6 : index
    %c0_310 = arith.constant 0 : index
    %274 = tpu.strided_load %arg11[%c6_309, %c0_310] {strides = array<i32: 2, 1>} : memref<164x32xf32, #tpu.memory_space<vmem>>, vector<2x32xf32>
    %275 = arith.maximumf %273, %274 : vector<2x32xf32>
    %c0_311 = arith.constant 0 : index
    %c0_312 = arith.constant 0 : index
    %276 = vector.load %arg7[%c0_311, %c0_312] : memref<1x32xf32, #tpu.memory_space<vmem>>, vector<1x32xf32>
    %277 = vector.extract_strided_slice %275 {offsets = [0, 0], sizes = [1, 32], strides = [1, 1]} : vector<2x32xf32> to vector<1x32xf32>
    %c0_313 = arith.constant 0 : index
    %c0_314 = arith.constant 0 : index
    %278 = vector.load %arg6[%c0_313, %c0_314] : memref<64x32xf32, #tpu.memory_space<vmem>>, vector<32x32xf32>
    %cst_315 = arith.constant dense<0.000000e+00> : vector<1x32xf32>
    %279 = tpu.matmul %277, %278, %cst_315 {dimension_numbers = #tpu.dot_dimension_numbers<[1], [0], [0], [1], [0, 0, 1, 1], [], []>} : vector<1x32xf32>, vector<32x32xf32>, vector<1x32xf32> -> vector<1x32xf32>
    %280 = arith.addf %276, %279 : vector<1x32xf32>
    %281 = vector.extract_strided_slice %275 {offsets = [1, 0], sizes = [1, 32], strides = [1, 1]} : vector<2x32xf32> to vector<1x32xf32>
    %c32 = arith.constant 32 : index
    %c0_316 = arith.constant 0 : index
    %282 = vector.load %arg6[%c32, %c0_316] : memref<64x32xf32, #tpu.memory_space<vmem>>, vector<32x32xf32>
    %cst_317 = arith.constant dense<0.000000e+00> : vector<1x32xf32>
    %283 = tpu.matmul %281, %282, %cst_317 {dimension_numbers = #tpu.dot_dimension_numbers<[1], [0], [0], [1], [0, 0, 1, 1], [], []>} : vector<1x32xf32>, vector<32x32xf32>, vector<1x32xf32> -> vector<1x32xf32>
    %284 = arith.addf %280, %283 : vector<1x32xf32>
    %cst_318 = arith.constant 0.000000e+00 : f32
    %285 = vector.broadcast %cst_318 : f32 to vector<1x32xf32>
    %286 = arith.maximumf %284, %285 : vector<1x32xf32>
    %c0_319 = arith.constant 0 : index
    %c0_320 = arith.constant 0 : index
    %287 = vector.load %arg8[%c0_319, %c0_320] : memref<32x5xf32, #tpu.memory_space<vmem>>, vector<32x5xf32>
    %cst_321 = arith.constant dense<0.000000e+00> : vector<1x5xf32>
    %288 = tpu.matmul %286, %287, %cst_321 {dimension_numbers = #tpu.dot_dimension_numbers<[1], [0], [0], [1], [0, 0, 1, 1], [], []>} : vector<1x32xf32>, vector<32x5xf32>, vector<1x5xf32> -> vector<1x5xf32>
    %c0_322 = arith.constant 0 : index
    %c0_323 = arith.constant 0 : index
    %289 = vector.load %arg9[%c0_322, %c0_323] : memref<1x5xf32, #tpu.memory_space<vmem>>, vector<1x5xf32>
    %290 = arith.addf %288, %289 : vector<1x5xf32>
    %cst_324 = arith.constant dense<0xFF800000> : vector<1xf32>
    %291 = vector.multi_reduction <maximumf>, %290, %cst_324 [1] : vector<1x5xf32> to vector<1xf32>
    %292 = vector.shape_cast %291 : vector<1xf32> to vector<1x1xf32>
    %293 = vector.broadcast %292 : vector<1x1xf32> to vector<1x5xf32>
    %294 = arith.subf %290, %293 : vector<1x5xf32>
    %295 = math.exp %294 : vector<1x5xf32>
    %cst_325 = arith.constant dense<0.000000e+00> : vector<1xf32>
    %296 = vector.multi_reduction <add>, %295, %cst_325 [1] : vector<1x5xf32> to vector<1xf32>
    %297 = vector.shape_cast %296 : vector<1xf32> to vector<1x1xf32>
    %298 = vector.broadcast %297 : vector<1x1xf32> to vector<1x5xf32>
    %299 = arith.divf %295, %298 : vector<1x5xf32>
    %c0_326 = arith.constant 0 : index
    %c0_327 = arith.constant 0 : index
    %c0_328 = arith.constant 0 : index
    %300 = vector.load %arg10[%c0_326, %c0_327, %c0_328] : memref<1x1x5xf32, #tpu.memory_space<vmem>>, vector<1x1x5xf32>
    %301 = vector.shape_cast %300 : vector<1x1x5xf32> to vector<1x5xf32>
    %302 = vector.shape_cast %299 : vector<1x5xf32> to vector<1x1x5xf32>
    tpu.vector_store %arg10[%c0_326, %c0_327, %c0_328], %302 {strides = array<i32>} : memref<1x1x5xf32, #tpu.memory_space<vmem>>, vector<1x1x5xf32>,
    return
  }
  func.func @transform_0(%arg0: i32) -> (i32, i32, i32) {
    %c0_i32 = arith.constant 0 : i32
    %c0_i32_0 = arith.constant 0 : i32
    %c0_i32_1 = arith.constant 0 : i32
    return %arg0, %c0_i32, %c0_i32_0 : i32, i32, i32
  }
  func.func @transform_1(%arg0: i32) -> (i32, i32, i32) {
    %c0_i32 = arith.constant 0 : i32
    %c0_i32_0 = arith.constant 0 : i32
    %c0_i32_1 = arith.constant 0 : i32
    %c0_i32_2 = arith.constant 0 : i32
    return %c0_i32, %c0_i32_0, %c0_i32_1 : i32, i32, i32
  }
  func.func @transform_2(%arg0: i32) -> (i32, i32) {
    %c0_i32 = arith.constant 0 : i32
    %c0_i32_0 = arith.constant 0 : i32
    %c0_i32_1 = arith.constant 0 : i32
    return %c0_i32, %c0_i32_0 : i32, i32
  }
  func.func @transform_3(%arg0: i32) -> (i32, i32, i32) {
    %c0_i32 = arith.constant 0 : i32
    %c0_i32_0 = arith.constant 0 : i32
    %c0_i32_1 = arith.constant 0 : i32
    %c0_i32_2 = arith.constant 0 : i32
    return %c0_i32, %c0_i32_0, %c0_i32_1 : i32, i32, i32
  }
  func.func @transform_4(%arg0: i32) -> (i32, i32, i32) {
    %c0_i32 = arith.constant 0 : i32
    %c0_i32_0 = arith.constant 0 : i32
    %c0_i32_1 = arith.constant 0 : i32
    %c0_i32_2 = arith.constant 0 : i32
    return %c0_i32, %c0_i32_0, %c0_i32_1 : i32, i32, i32
  }
  func.func @transform_5(%arg0: i32) -> (i32, i32) {
    %c0_i32 = arith.constant 0 : i32
    %c0_i32_0 = arith.constant 0 : i32
    %c0_i32_1 = arith.constant 0 : i32
    return %c0_i32, %c0_i32_0 : i32, i32
  }
  func.func @transform_6(%arg0: i32) -> (i32, i32) {
    %c0_i32 = arith.constant 0 : i32
    %c0_i32_0 = arith.constant 0 : i32
    %c0_i32_1 = arith.constant 0 : i32
    return %c0_i32, %c0_i32_0 : i32, i32
  }
  func.func @transform_7(%arg0: i32) -> (i32, i32) {
    %c0_i32 = arith.constant 0 : i32
    %c0_i32_0 = arith.constant 0 : i32
    %c0_i32_1 = arith.constant 0 : i32
    return %c0_i32, %c0_i32_0 : i32, i32
  }
  func.func @transform_8(%arg0: i32) -> (i32, i32) {
    %c0_i32 = arith.constant 0 : i32
    %c0_i32_0 = arith.constant 0 : i32
    %c0_i32_1 = arith.constant 0 : i32
    return %c0_i32, %c0_i32_0 : i32, i32
  }
  func.func @transform_9(%arg0: i32) -> (i32, i32, i32) {
    %c0_i32 = arith.constant 0 : i32
    %c0_i32_0 = arith.constant 0 : i32
    %c0_i32_1 = arith.constant 0 : i32
    return %arg0, %c0_i32, %c0_i32_0 : i32, i32, i32
  }
}

</mosaic_0001>

<bundles_post_ra>
// kernel: cnn_net_forward.1
= control target key start
LH: loop header
LB: loop body
LE: loop exit
PB: predicated region body
PF: predicated region fallthrough
CT: control target
= control target key end

     0   :  { %14 = vsyncpa [#allocation4], 0  ;;  %s7796_s0 = inlined_call_operand.vmem [shape: f32[2,160,1], index: 0, kind: input, shape index: {}]   ;;  %s7797_s1 = inlined_call_operand.vmem [shape: f32[5,1,32], index: 1, kind: input, shape index: {}]   ;;  %s7798_s2 = inlined_call_operand.vmem [shape: f32[1,32], index: 2, kind: input, shape index: {}]   ;;  %s7799_s3 = inlined_call_operand.vmem [shape: f32[10,160,32], index: 3, kind: input, shape index: {}]   ;;  %s7800_s4 = inlined_call_operand.vmem [shape: f32[10,1,32], index: 4, kind: input, shape index: {}]   ;;  %s7801_s5 = inlined_call_operand.vmem [shape: f32[64,32], index: 5, kind: input, shape index: {}]   ;;  %s7802_s6 = inlined_call_operand.vmem [shape: f32[1,32], index: 6, kind: input, shape index: {}]   ;;  %s7803_s7 = inlined_call_operand.vmem [shape: f32[32,5], index: 7, kind: input, shape index: {}]   ;;  %s7804_s8 = inlined_call_operand.vmem [shape: f32[1,5], index: 8, kind: input, shape index: {}]   ;;  %s7805_s9 = inlined_call_operand.hbm [shape: f32[2,1,5], index: 9, kind: output, shape index: {}]  }
   0x1   :  { %16 = vsyncpa [#allocation4 + $0x1], 0  ;;  %s5746_s30 = smov 0   ;;  %s5748_s10 = smov 0  }
   0x2   :  { %s5750_s11 = smov 0   ;;  %s5752_s12 = smov 0  }
   0x3 LB: > { %s5767_s13 = sadd.s32 4294967295, %s5687_s12   ;;  %s4779_s14 = sadd.s32 4294967294, %s5687_s12   ;;  %s5687_s12 = sphi %s5752_s12, %s7811_s12   ;;  %s5683_s11 = sphi %s5750_s11, %s7810_s11   ;;  %s5679_s10 = sphi %s5748_s10, %s7809_s10   ;;  %s5675_s30 = sphi %s5746_s30, %s7808_s30  }
   0x4   : > { %s5771_s15 = sadd.s32 1, %s5687_s12   ;;  %s223_s16 = sadd.s32 1, %s5683_s11 }
   0x5   : > { %s220_s17 = ssub.s32 %s5687_s12, %s5771_s15  ;;  %p233_p0 = scmp.ne.s32.totalorder %s5683_s11, %s5679_s10 }
   0x6   : > { %p221_p1 = scmp.eq.s32.totalorder %s220_s17, 0  ;;  %p234_p2 = scmp.eq.s32.totalorder %s5767_s13, 1 }
   0x7   : > { %p239_p3 = scmp.ne.s32.totalorder %s5679_s10, %s5675_s30  ;;  %p240_p4 = scmp.eq.s32.totalorder %s4779_s14, 1 }
   0x8   : > { %s5782_s18 = scalar_select %p221_p1, %s5683_s11, %s223_s16  }
   0x9   : > { %p5784_p5 = por %p234_p2, %p233_p0  ;;  %p5788_p6 = por %p240_p4, %p239_p3 }
   0xa   : > { %p4782_p7 = scmp.ge.s32.totalorder %s5687_s12, 1  ;;  %p290_p8 = scmp.lt.s32.totalorder %s5687_s12, 3 }
   0xc   : > { %p291_p9 = pnand %p4782_p7, %p290_p8 }
   0xd   : > { %p325_p10 = scmp.lt.s32.totalorder (!%p291_p9), %s5767_s13, 1  ;;  %s5692_s23 = smov (!%p291_p9), 32  }
   0xe   : > { %294 = sbr.rel (%p291_p9) target bundleno = 4385 (0x1121), region = 56  ;;  %s5693_s28 = smov (!%p291_p9), 96  }
   0xf   : > { %s323_s26 = sand.u32 (!%p291_p9), 1, %s5679_s10   ;;  %s5074_s27 = sshll.u32 (!%p291_p9), %s5767_s13, 4 }
  0x10   : > { %s324_s29 = scalar_lea.vmem (!%p291_p9), [#allocation3], %s323_s26  ;;  %s4712_s24 = scalar_lea.sflag (!%p291_p9), [#allocation4], %s323_s26 }
  0x11   : > { %s4724_s14 = sshll.u32 (!%p291_p9), %s324_s29, 4  ;;  %s4725_s14 = int_to_ptr.vmem [resolvable:$true] %s4724_s14 }
  0x13   : > { %vm330_vm0 = vcmask 261120   ;;  %v5689_v0 = vmov 0   ;;  %v5690_v1 = vmov 0.0   ;;  %s326_s21 = scalar_select %p325_p10, %s5767_s13, 1  ;;  %vm351_vm1 = vcmask 257024   ;;  %v1298_v22 = vld [vmem:[%s7799_s3 + $0x78] sm:$0xff] }
  0x14   : > { %5172 = vset.pattern.permute.xlu1 %v5689_v0  ;;  %5171 = vset.pattern.permute.xlu0 %v5689_v0  ;;  %333 = vst.msk [vmem:[#allocation2 + $0x10] sm:$0xff] %vm330_vm0, %v5690_v1  ;;  %334 = vst.msk [vmem:[#allocation2 + $0x18] sm:$0xff] %vm330_vm0, %v5690_v1  ;;  %v1297_v23 = vld [vmem:[%s7799_s3 + $0x70] sm:$0xff]  ;;  %v1296_v24 = vld [vmem:[%s7799_s3 + $0x68] sm:$0xff]  ;;  %vm859_vm2 = vcmask 254976   ;;  %vm1241_vm3 = vcmask 523264  }
  0x15   : > { %331 = vst.msk [vmem:[#allocation2] sm:$0xff] %vm330_vm0, %v5690_v1  ;;  %332 = vst.msk [vmem:[#allocation2 + $0x8] sm:$0xff] %vm330_vm0, %v5690_v1  ;;  %1370 = vmatprep.subr.mxu0 %v5690_v1  ;;  %2065 = vmatprep.subr.mxu1 %v5690_v1  ;;  %s5125_s22 = smul.u32 160, %s326_s21  ;;  %v1295_v25 = vld [vmem:[%s7799_s3 + $0x60] sm:$0xff]  ;;  %v1294_v28 = vld [vmem:[%s7799_s3 + $0x58] sm:$0xff]  ;;  %vm1262_vm4 = vcmask 785408   ;;  %s4722_s21 = scalar_lea.hbm %s7805_s9, %s5074_s27 }
  0x16   : > { %335 = vst.msk [vmem:[#allocation2 + $0x20] sm:$0xff] %vm330_vm0, %v5690_v1  ;;  %336 = vst.msk [vmem:[#allocation2 + $0x28] sm:$0xff] %vm330_vm0, %v5690_v1  ;;  %1371 = vmatpush1.msra.mxu0 %v1298_v22  ;;  %v1293_v29 = vld [vmem:[%s7799_s3 + $0x50] sm:$0xff]  ;;  %v1292_v32 = vld [vmem:[%s7799_s3 + $0x48] sm:$0xff]  ;;  %vm2440_vm5 = vcmask 259072   ;;  %vm3291_vm6 = vcmask 258048  }
  0x17   : > { %337 = vst.msk [vmem:[#allocation2 + $0x30] sm:$0xff] %vm330_vm0, %v5690_v1  ;;  %338 = vst.msk [vmem:[#allocation2 + $0x38] sm:$0xff] %vm330_vm0, %v5690_v1  ;;  %s5843_s25 = scalar_lea.vmem %s7796_s0, %s5125_s22  ;;  %1372 = vmatprep.subr.mxu0 %v5690_v1  ;;  %v5899_v33 = vld [vmem:[%s7797_s1] ss:$0 sm:$0xff]  ;;  %v5904_v34 = vld [vmem:[%s7797_s1 + $0x1] ss:$0 sm:$0xff] }
  0x18   : > { %339 = vst.msk [vmem:[#allocation2 + $0x40] sm:$0xff] %vm330_vm0, %v5690_v1  ;;  %340 = vst.msk [vmem:[#allocation2 + $0x48] sm:$0xff] %vm330_vm0, %v5690_v1  ;;  %v355_v2 = vld [vmem:[%s5843_s25 + $0x10] sm:$0xff]  ;;  %v353_v3 = vld [vmem:[%s5843_s25] sm:$0xff]  ;;  %1373 = vmatpush1.msra.mxu0 %v1297_v23  ;;  %s5691_s22 = smov 64   ;;  %vm3817_vm7 = vcmask 253952  }
  0x19   : > { %341 = vst.msk [vmem:[#allocation2 + $0x50] sm:$0xff] %vm330_vm0, %v5690_v1  ;;  %342 = vst.msk [vmem:[#allocation2 + $0x58] sm:$0xff] %vm330_vm0, %v5690_v1  ;;  %385 = vperm.xlu1 %5172, %v355_v2   ;;  %375 = vperm.xlu0 %5171, %v353_v3   ;;  %v356_v4 = vld [vmem:[%s5843_s25 + $0x18] sm:$0xff]  ;;  %v354_v5 = vld [vmem:[%s5843_s25 + $0x8] sm:$0xff]  ;;  %vm4201_vm8 = vcmask 260096   ;;  %vm5694_vm9 = vmmov 0  }
  0x1a   : > { %343 = vst.msk [vmem:[#allocation2 + $0x60] sm:$0xff] %vm330_vm0, %v5690_v1  ;;  %344 = vst.msk [vmem:[#allocation2 + $0x68] sm:$0xff] %vm330_vm0, %v5690_v1  ;;  %v358_v6 = vld [vmem:[%s5843_s25 + $0x28] sm:$0xff]  ;;  %v357_v7 = vld [vmem:[%s5843_s25 + $0x20] sm:$0xff]  ;;  %1374 = vmatprep.subr.mxu0 %v5690_v1  ;;  %vm4698_vm10 = vcmask 32768  }
  0x1b   : > { %345 = vst.msk [vmem:[#allocation2 + $0x70] sm:$0xff] %vm330_vm0, %v5690_v1  ;;  %346 = vst.msk [vmem:[#allocation2 + $0x78] sm:$0xff] %vm330_vm0, %v5690_v1  ;;  %v360_v8 = vld [vmem:[%s5843_s25 + $0x38] sm:$0xff]  ;;  %v359_v9 = vld [vmem:[%s5843_s25 + $0x30] sm:$0xff]  ;;  %1375 = vmatpush1.msra.mxu0 %v1296_v24 }
  0x1c   : > { %347 = vst.msk [vmem:[#allocation2 + $0x80] sm:$0xff] %vm330_vm0, %v5690_v1  ;;  %348 = vst.msk [vmem:[#allocation2 + $0x88] sm:$0xff] %vm330_vm0, %v5690_v1  ;;  %v362_v10 = vld [vmem:[%s5843_s25 + $0x48] sm:$0xff]  ;;  %v361_v11 = vld [vmem:[%s5843_s25 + $0x40] sm:$0xff]  ;;  %1376 = vmatprep.subr.mxu0 %v5690_v1 }
  0x1d   : > { %349 = vst.msk [vmem:[#allocation2 + $0x90] sm:$0xff] %vm330_vm0, %v5690_v1  ;;  %350 = vst.msk [vmem:[#allocation2 + $0x98] sm:$0xff] %vm330_vm0, %v5690_v1  ;;  %390 = vperm.xlu1 %5172, %v356_v4   ;;  %380 = vperm.xlu0 %5171, %v354_v5   ;;  %v364_v12 = vld [vmem:[%s5843_s25 + $0x58] sm:$0xff]  ;;  %v363_v13 = vld [vmem:[%s5843_s25 + $0x50] sm:$0xff] }
  0x1e   : > { %v366_v14 = vld [vmem:[%s5843_s25 + $0x68] sm:$0xff]  ;;  %v365_v15 = vld [vmem:[%s5843_s25 + $0x60] sm:$0xff]  ;;  %v368_v16 = vld [vmem:[%s5843_s25 + $0x78] sm:$0xff]  ;;  %352 = vst.msk [vmem:[#allocation2 + $0xa0] sm:$0xf] %vm351_vm1, %v5690_v1  ;;  %1377 = vmatpush1.msra.mxu0 %v1295_v25 }
  0x1f   : > { %v367_v17 = vld [vmem:[%s5843_s25 + $0x70] sm:$0xff]  ;;  %v370_v18 = vld [vmem:[%s5843_s25 + $0x88] sm:$0xff]  ;;  %v369_v19 = vld [vmem:[%s5843_s25 + $0x80] sm:$0xff]  ;;  %1378 = vmatprep.subr.mxu0 %v5690_v1 }
  0x20   : > { %v372_v20 = vld [vmem:[%s5843_s25 + $0x98] sm:$0xff]  ;;  %v371_v21 = vld [vmem:[%s5843_s25 + $0x90] sm:$0xff]  ;;  %1379 = vmatpush1.msra.mxu0 %v1294_v28  ;;  %v1291_v35 = vld [vmem:[%s7799_s3 + $0x40] sm:$0xff] }
  0x21   : > { %400 = vperm.xlu1 %5172, %v358_v6   ;;  %395 = vperm.xlu0 %5171, %v357_v7   ;;  %v1290_v40 = vld [vmem:[%s7799_s3 + $0x38] sm:$0xff]  ;;  %v5917_v41 = vld [vmem:[%s7797_s1 + $0x2] ss:$0 sm:$0xff]  ;;  %v1289_v45 = vld [vmem:[%s7799_s3 + $0x30] sm:$0xff] }
  0x22   : > { %1380 = vmatprep.subr.mxu0 %v5690_v1  ;;  %v5930_v48 = vld [vmem:[%s7797_s1 + $0x3] ss:$0 sm:$0xff]  ;;  %v1288_v49 = vld [vmem:[%s7799_s3 + $0x28] sm:$0xff]  ;;  %v5943_v57 = vld [vmem:[%s7797_s1 + $0x4] ss:$0 sm:$0xff] }
  0x23   : > { %1381 = vmatpush1.msra.mxu0 %v1293_v29  ;;  %v1287_v56 = vld [vmem:[%s7799_s3 + $0x20] sm:$0xff]  ;;  %v1286_v7 = vld [vmem:[%s7799_s3 + $0x18] sm:$0xff]  ;;  %v1285_v24 = vld [vmem:[%s7799_s3 + $0x10] sm:$0xff] }
  0x24   : > { %1382 = vmatprep.subr.mxu0 %v5690_v1 }
  0x25   : > { %410 = vperm.xlu1 %5172, %v360_v8   ;;  %405 = vperm.xlu0 %5171, %v359_v9  }
  0x26   : > { %1383 = vmatpush1.msra.mxu0 %v1292_v32 }
  0x27   : > { %1384 = vmatprep.subr.mxu0 %v5690_v1 }
  0x28   : > { %1385 = vmatpush1.msra.mxu0 %v1291_v35 }
  0x29   : > { %420 = vperm.xlu1 %5172, %v362_v10   ;;  %415 = vperm.xlu0 %5171, %v361_v11  }
  0x2a   : > { %1386 = vmatprep.subr.mxu0 %v5690_v1 }
  0x2b   : > { %1387 = vmatpush1.msra.mxu0 %v1290_v40 }
  0x2c   : > { %1388 = vmatprep.subr.mxu0 %v5690_v1 }
  0x2d   : > { %430 = vperm.xlu1 %5172, %v364_v12   ;;  %425 = vperm.xlu0 %5171, %v363_v13  }
  0x2e   : > { %1389 = vmatpush1.msra.mxu0 %v1289_v45 }
  0x2f   : > { %1390 = vmatprep.subr.mxu0 %v5690_v1 }
  0x30   : > { %1391 = vmatpush1.msra.mxu0 %v1288_v49 }
  0x31   : > { %440 = vperm.xlu1 %5172, %v366_v14   ;;  %435 = vperm.xlu0 %5171, %v365_v15  }
  0x32   : > { %1392 = vmatprep.subr.mxu0 %v5690_v1 }
  0x33   : > { %1393 = vmatpush1.msra.mxu0 %v1287_v56  ;;  %v1284_v56 = vld [vmem:[%s7799_s3 + $0x8] sm:$0xff] }
  0x34   : > { %1394 = vmatprep.subr.mxu0 %v5690_v1 }
  0x35   : > { %450 = vperm.xlu1 %5172, %v368_v16   ;;  %445 = vperm.xlu0 %5171, %v367_v17  }
  0x36   : > { %1395 = vmatpush1.msra.mxu0 %v1286_v7 }
  0x37   : > { %1396 = vmatprep.subr.mxu0 %v5690_v1 }
  0x38   : > { %1397 = vmatpush1.msra.mxu0 %v1285_v24 }
  0x39   : > { %460 = vperm.xlu1 %5172, %v370_v18   ;;  %455 = vperm.xlu0 %5171, %v369_v19  }
  0x3a   : > { %1398 = vmatprep.subr.mxu0 %v5690_v1 }
  0x3b   : > { %1399 = vmatpush1.msra.mxu0 %v1284_v56 }
  0x3c   : > { %1400 = vmatprep.subr.mxu0 %v5690_v1 }
  0x3d   : > { %470 = vperm.xlu1 %5172, %v372_v20   ;;  %465 = vperm.xlu0 %5171, %v371_v21  }
  0x94   : > { %v386_v26 = vpop.permute.xlu1 %385  ;;  %v376_v27 = vpop.permute.xlu0 %375 }
  0x95   : > { %475 = vst.msk [vmem:[#allocation2 + $0x12] sm:$0xff] %vm330_vm0, %v386_v26  ;;  %473 = vst.msk [vmem:[#allocation2 + $0x2] sm:$0xff] %vm330_vm0, %v376_v27 }
  0x98   : > { %v391_v30 = vpop.permute.xlu1 %390  ;;  %v381_v31 = vpop.permute.xlu0 %380 }
  0x99   : > { %476 = vst.msk [vmem:[#allocation2 + $0x1a] sm:$0xff] %vm330_vm0, %v391_v30  ;;  %474 = vst.msk [vmem:[#allocation2 + $0xa] sm:$0xff] %vm330_vm0, %v381_v31 }
  0x9c   : > { %v493_v36 = vld [vmem:[#allocation2] sm:$0xff]  ;;  %v401_v38 = vpop.permute.xlu1 %400  ;;  %v396_v39 = vpop.permute.xlu0 %395  ;;  %v630_v46 = vld [vmem:[#allocation2 + $0x12] sm:$0xff] }
  0x9d   : > { %v560_v37 = vld [vmem:[#allocation2 + $0x1] sm:$0xff]  ;;  %v520_v42 = vmul.f32 %v5899_v33, %v493_v36  ;;  %478 = vst.msk [vmem:[#allocation2 + $0x2a] sm:$0xff] %vm330_vm0, %v401_v38  ;;  %477 = vst.msk [vmem:[#allocation2 + $0x22] sm:$0xff] %vm330_vm0, %v396_v39  ;;  %v658_v0 = vmul.f32 %v5917_v41, %v630_v46 }
  0x9e   : > { %v588_v43 = vmul.f32 %v5904_v34, %v560_v37  ;;  %v628_v44 = vld [vmem:[#allocation2 + $0x2] sm:$0xff] }
  0x9f   : > { %v656_v50 = vmul.f32 %v5917_v41, %v628_v44 }
  0xa0   : > { %v608_v47 = vadd.f32 %v588_v43, %v520_v42  ;;  %v496_v51 = vld [vmem:[#allocation2 + $0x18] sm:$0xff]  ;;  %v411_v54 = vpop.permute.xlu1 %410  ;;  %v406_v55 = vpop.permute.xlu0 %405  ;;  %v494_v63 = vld [vmem:[#allocation2 + $0x8] sm:$0xff]  ;;  %v495_v3 = vld [vmem:[#allocation2 + $0x10] sm:$0xff] }
  0xa1   : > { %v563_v52 = vld [vmem:[#allocation2 + $0x19] sm:$0xff]  ;;  %v523_v58 = vmul.f32 %v5899_v33, %v496_v51  ;;  %480 = vst.msk [vmem:[#allocation2 + $0x3a] sm:$0xff] %vm330_vm0, %v411_v54  ;;  %479 = vst.msk [vmem:[#allocation2 + $0x32] sm:$0xff] %vm330_vm0, %v406_v55  ;;  %v521_v4 = vmul.f32 %v5899_v33, %v494_v63  ;;  %v561_v5 = vld [vmem:[#allocation2 + $0x9] sm:$0xff]  ;;  %v522_v9 = vmul.f32 %v5899_v33, %v495_v3 }
  0xa2   : > { %v631_v53 = vld [vmem:[#allocation2 + $0x1a] sm:$0xff]  ;;  %v591_v59 = vmul.f32 %v5904_v34, %v563_v52  ;;  %v676_v2 = vadd.f32 %v656_v50, %v608_v47  ;;  %v562_v6 = vld [vmem:[#allocation2 + $0x11] sm:$0xff]  ;;  %v589_v10 = vmul.f32 %v5904_v34, %v561_v5  ;;  %v696_v13 = vld [vmem:[#allocation2 + $0x3] sm:$0xff] }
  0xa3   : > { %v659_v60 = vmul.f32 %v5917_v41, %v631_v53  ;;  %v698_v61 = vld [vmem:[#allocation2 + $0x13] sm:$0xff]  ;;  %v590_v11 = vmul.f32 %v5904_v34, %v562_v6  ;;  %v629_v12 = vld [vmem:[#allocation2 + $0xa] sm:$0xff]  ;;  %v724_v18 = vmul.f32 %v5930_v48, %v696_v13  ;;  %v5977_v42 = vld [vmem:[%s7798_s2] ss:$0 sm:$0xff] }
  0xa4   : > { %v766_v62 = vld [vmem:[#allocation2 + $0x14] sm:$0xff]  ;;  %v611_v8 = vadd.f32 %v591_v59, %v523_v58  ;;  %v697_v14 = vld [vmem:[#allocation2 + $0xb] sm:$0xff]  ;;  %v726_v15 = vmul.f32 %v5930_v48, %v698_v61  ;;  %v657_v17 = vmul.f32 %v5917_v41, %v629_v12  ;;  %v421_v22 = vpop.permute.xlu1 %420  ;;  %v416_v23 = vpop.permute.xlu0 %415  ;;  %v609_v26 = vadd.f32 %v589_v10, %v521_v4  ;;  %v497_v29 = vld [vmem:[#allocation2 + $0x20] sm:$0xff] }
  0xa5   : > { %v794_v16 = vmul.f32 %v5943_v57, %v766_v62  ;;  %v764_v19 = vld [vmem:[#allocation2 + $0x4] sm:$0xff]  ;;  %v765_v20 = vld [vmem:[#allocation2 + $0xc] sm:$0xff]  ;;  %v610_v27 = vadd.f32 %v590_v11, %v522_v9  ;;  %v725_v28 = vmul.f32 %v5930_v48, %v697_v14  ;;  %482 = vst.msk [vmem:[#allocation2 + $0x4a] sm:$0xff] %vm330_vm0, %v421_v22  ;;  %481 = vst.msk [vmem:[#allocation2 + $0x42] sm:$0xff] %vm330_vm0, %v416_v23 }
  0xa6   : > { %v633_v21 = vld [vmem:[#allocation2 + $0x2a] sm:$0xff]  ;;  %v679_v25 = vadd.f32 %v659_v60, %v611_v8  ;;  %v564_v31 = vld [vmem:[#allocation2 + $0x21] sm:$0xff]  ;;  %v744_v32 = vadd.f32 %v724_v18, %v676_v2  ;;  %v792_v35 = vmul.f32 %v5943_v57, %v764_v19  ;;  %v793_v36 = vmul.f32 %v5943_v57, %v765_v20 }
  0xa7   : > { %v498_v30 = vld [vmem:[#allocation2 + $0x28] sm:$0xff]  ;;  %v524_v37 = vmul.f32 %v5899_v33, %v497_v29  ;;  %v699_v40 = vld [vmem:[#allocation2 + $0x1b] sm:$0xff]  ;;  %v677_v43 = vadd.f32 %v657_v17, %v609_v26  ;;  %v678_v44 = vadd.f32 %v658_v0, %v610_v27  ;;  %v592_v46 = vmul.f32 %v5904_v34, %v564_v31 }
  0xa8   : > { %v565_v38 = vld [vmem:[#allocation2 + $0x29] sm:$0xff]  ;;  %v525_v45 = vmul.f32 %v5899_v33, %v498_v30  ;;  %v767_v47 = vld [vmem:[#allocation2 + $0x1c] sm:$0xff]  ;;  %v812_v49 = vadd.f32 %v792_v35, %v744_v32  ;;  %v661_v50 = vmul.f32 %v5917_v41, %v633_v21  ;;  %v727_v53 = vmul.f32 %v5930_v48, %v699_v40  ;;  %v431_v54 = vpop.permute.xlu1 %430  ;;  %v426_v55 = vpop.permute.xlu0 %425  ;;  %v566_v12 = vld [vmem:[#allocation2 + $0x31] sm:$0xff] }
  0xa9   : > { %v632_v39 = vld [vmem:[#allocation2 + $0x22] sm:$0xff]  ;;  %v593_v51 = vmul.f32 %v5904_v34, %v565_v38  ;;  %v745_v58 = vadd.f32 %v725_v28, %v677_v43  ;;  %v746_v59 = vadd.f32 %v726_v15, %v678_v44  ;;  %v612_v60 = vadd.f32 %v592_v46, %v524_v37  ;;  %v499_v63 = vld [vmem:[#allocation2 + $0x30] sm:$0xff]  ;;  %484 = vst.msk [vmem:[#allocation2 + $0x5a] sm:$0xff] %vm330_vm0, %v431_v54  ;;  %v500_v5 = vld [vmem:[#allocation2 + $0x38] sm:$0xff] }
  0xaa   : > { %v700_v52 = vld [vmem:[#allocation2 + $0x23] sm:$0xff]  ;;  %v660_v61 = vmul.f32 %v5917_v41, %v632_v39  ;;  %483 = vst.msk [vmem:[#allocation2 + $0x52] sm:$0xff] %vm330_vm0, %v426_v55  ;;  %v5992_v0 = vadd.f32 %v5977_v42, %v812_v49  ;;  %v747_v3 = vadd.f32 %v727_v53, %v679_v25  ;;  %v795_v4 = vmul.f32 %v5943_v57, %v767_v47  ;;  %v635_v11 = vld [vmem:[#allocation2 + $0x3a] sm:$0xff]  ;;  %v634_v19 = vld [vmem:[#allocation2 + $0x32] sm:$0xff] }
  0xab   : > { %v768_v62 = vld [vmem:[#allocation2 + $0x24] sm:$0xff]  ;;  %v613_v2 = vadd.f32 %v593_v51, %v525_v45  ;;  %v813_v7 = vadd.f32 %v793_v36, %v745_v58  ;;  %v814_v8 = vadd.f32 %v794_v16, %v746_v59  ;;  %v728_v10 = vmul.f32 %v5930_v48, %v700_v52  ;;  %v567_v13 = vld [vmem:[#allocation2 + $0x39] sm:$0xff]  ;;  %v769_v27 = vld [vmem:[#allocation2 + $0x2c] sm:$0xff] }
  0xac   : > { %v1283_v6 = vld [vmem:[%s7799_s3] sm:$0xff]  ;;  %v680_v9 = vadd.f32 %v660_v61, %v612_v60  ;;  %861 = vst.msk [vmem:[#allocation2 + $0x2] sm:$0xff] %vm330_vm0, %v5992_v0  ;;  %v796_v14 = vmul.f32 %v5943_v57, %v768_v62  ;;  %v815_v15 = vadd.f32 %v795_v4, %v747_v3  ;;  %v526_v18 = vmul.f32 %v5899_v33, %v499_v63  ;;  %v701_v20 = vld [vmem:[#allocation2 + $0x2b] sm:$0xff]  ;;  %v702_v21 = vld [vmem:[#allocation2 + $0x33] sm:$0xff]  ;;  %v441_v16 = vpop.permute.xlu1 %440  ;;  %v436_v22 = vpop.permute.xlu0 %435 }
  0xad   : > { %v681_v17 = vadd.f32 %v661_v50, %v613_v2  ;;  %v6006_v23 = vadd.f32 %v5977_v42, %v813_v7  ;;  %v6009_v24 = vadd.f32 %v5977_v42, %v814_v8  ;;  %v527_v26 = vmul.f32 %v5899_v33, %v500_v5  ;;  %v770_v28 = vld [vmem:[#allocation2 + $0x34] sm:$0xff]  ;;  %486 = vst.msk [vmem:[#allocation2 + $0x6a] sm:$0xff] %vm330_vm0, %v441_v16  ;;  %v637_v35 = vld [vmem:[#allocation2 + $0x4a] sm:$0xff]  ;;  %v501_v36 = vld [vmem:[#allocation2 + $0x40] sm:$0xff] }
  0xae   : > { %v748_v25 = vadd.f32 %v728_v10, %v680_v9  ;;  %485 = vst.msk [vmem:[#allocation2 + $0x62] sm:$0xff] %vm330_vm0, %v436_v22  ;;  %1401 = vmatpush1.msra.mxu0 %v1283_v6  ;;  %v6015_v29 = vadd.f32 %v5977_v42, %v815_v15  ;;  %v663_v30 = vmul.f32 %v5917_v41, %v635_v11  ;;  %v502_v43 = vld [vmem:[#allocation2 + $0x48] sm:$0xff]  ;;  %v703_v51 = vld [vmem:[#allocation2 + $0x3b] sm:$0xff] }
  0xaf   : > { %v594_v31 = vmul.f32 %v5904_v34, %v566_v12  ;;  %v595_v32 = vmul.f32 %v5904_v34, %v567_v13  ;;  %1426 = vmatprep.subr.mxu0 %v5690_v1  ;;  %862 = vst.msk [vmem:[#allocation2 + $0xa] sm:$0xff] %vm330_vm0, %v6006_v23  ;;  %863 = vst.msk [vmem:[#allocation2 + $0x12] sm:$0xff] %vm330_vm0, %v6009_v24  ;;  %v662_v38 = vmul.f32 %v5917_v41, %v634_v19  ;;  %v568_v44 = vld [vmem:[#allocation2 + $0x41] sm:$0xff]  ;;  %v569_v3 = vld [vmem:[#allocation2 + $0x49] sm:$0xff] }
  0xb0   : > { %v816_v37 = vadd.f32 %v796_v14, %v748_v25  ;;  %v729_v39 = vmul.f32 %v5930_v48, %v701_v20  ;;  %v730_v40 = vmul.f32 %v5930_v48, %v702_v21  ;;  %864 = vst.msk [vmem:[#allocation2 + $0x1a] sm:$0xff] %vm330_vm0, %v6015_v29  ;;  %v797_v47 = vmul.f32 %v5943_v57, %v769_v27  ;;  %v636_v50 = vld [vmem:[#allocation2 + $0x42] sm:$0xff]  ;;  %v451_v53 = vpop.permute.xlu1 %450  ;;  %v446_v54 = vpop.permute.xlu0 %445 }
  0xb1   : > { %v614_v45 = vadd.f32 %v594_v31, %v526_v18  ;;  %v615_v46 = vadd.f32 %v595_v32, %v527_v26  ;;  %v798_v49 = vmul.f32 %v5943_v57, %v770_v28  ;;  %v704_v52 = vld [vmem:[#allocation2 + $0x43] sm:$0xff]  ;;  %v665_v58 = vmul.f32 %v5917_v41, %v637_v35  ;;  %488 = vst.msk [vmem:[#allocation2 + $0x7a] sm:$0xff] %vm330_vm0, %v451_v53  ;;  %v503_v5 = vld [vmem:[#allocation2 + $0x50] sm:$0xff]  ;;  %v504_v10 = vld [vmem:[#allocation2 + $0x58] sm:$0xff] }
  0xb2   : > { %v6033_v55 = vadd.f32 %v5977_v42, %v816_v37  ;;  %v749_v56 = vadd.f32 %v729_v39, %v681_v17  ;;  %v528_v59 = vmul.f32 %v5899_v33, %v501_v36  ;;  %v771_v60 = vld [vmem:[#allocation2 + $0x3c] sm:$0xff]  ;;  %v772_v61 = vld [vmem:[#allocation2 + $0x44] sm:$0xff]  ;;  %487 = vst.msk [vmem:[#allocation2 + $0x72] sm:$0xff] %vm330_vm0, %v446_v54  ;;  %v529_v2 = vmul.f32 %v5899_v33, %v502_v43  ;;  %v570_v11 = vld [vmem:[#allocation2 + $0x51] sm:$0xff] }
  0xb3   : > { %v682_v62 = vadd.f32 %v662_v38, %v614_v45  ;;  %v683_v63 = vadd.f32 %v663_v30, %v615_v46  ;;  %v596_v4 = vmul.f32 %v5904_v34, %v568_v44  ;;  %v664_v7 = vmul.f32 %v5917_v41, %v636_v50  ;;  %v571_v17 = vld [vmem:[#allocation2 + $0x59] sm:$0xff]  ;;  %v705_v26 = vld [vmem:[#allocation2 + $0x4b] sm:$0xff] }
  0xb4   : > { %865 = vst.msk [vmem:[#allocation2 + $0x22] sm:$0xff] %vm330_vm0, %v6033_v55  ;;  %v817_v6 = vadd.f32 %v797_v47, %v749_v56  ;;  %v731_v8 = vmul.f32 %v5930_v48, %v703_v51  ;;  %v732_v9 = vmul.f32 %v5930_v48, %v704_v52  ;;  %v799_v14 = vmul.f32 %v5943_v57, %v771_v60  ;;  %v638_v18 = vld [vmem:[#allocation2 + $0x52] sm:$0xff]  ;;  %v461_v19 = vpop.permute.xlu1 %460  ;;  %v456_v20 = vpop.permute.xlu0 %455  ;;  %v639_v30 = vld [vmem:[#allocation2 + $0x5a] sm:$0xff] }
  0xb5   : > { %v750_v12 = vadd.f32 %v730_v40, %v682_v62  ;;  %v616_v13 = vadd.f32 %v596_v4, %v528_v59  ;;  %v800_v15 = vmul.f32 %v5943_v57, %v772_v61  ;;  %v597_v22 = vmul.f32 %v5904_v34, %v569_v3  ;;  %490 = vst.msk [vmem:[#allocation2 + $0x8a] sm:$0xff] %vm330_vm0, %v461_v19  ;;  %v706_v39 = vld [vmem:[#allocation2 + $0x53] sm:$0xff]  ;;  %v505_v50 = vld [vmem:[#allocation2 + $0x60] sm:$0xff]  ;;  %v506_v60 = vld [vmem:[#allocation2 + $0x68] sm:$0xff] }
  0xb6   : > { %v6049_v21 = vadd.f32 %v5977_v42, %v817_v6  ;;  %v751_v16 = vadd.f32 %v731_v8, %v683_v63  ;;  %v530_v25 = vmul.f32 %v5899_v33, %v503_v5  ;;  %489 = vst.msk [vmem:[#allocation2 + $0x82] sm:$0xff] %vm330_vm0, %v456_v20  ;;  %v531_v31 = vmul.f32 %v5899_v33, %v504_v10  ;;  %v773_v40 = vld [vmem:[#allocation2 + $0x4c] sm:$0xff]  ;;  %v961_v43 = vld [vmem:[#allocation2 + $0x4] sm:$0xff] }
  0xb7   : > { %v818_v27 = vadd.f32 %v798_v49, %v750_v12  ;;  %v684_v28 = vadd.f32 %v664_v7, %v616_v13  ;;  %v598_v32 = vmul.f32 %v5904_v34, %v570_v11  ;;  %v617_v36 = vadd.f32 %v597_v22, %v529_v2  ;;  %v774_v49 = vld [vmem:[#allocation2 + $0x54] sm:$0xff]  ;;  %v572_v61 = vld [vmem:[#allocation2 + $0x61] sm:$0xff]  ;;  %4795 = vmatprep.mubr.msk.f32.mxu0 %vm330_vm0, %v961_v43  ;;  %v573_v4 = vld [vmem:[#allocation2 + $0x69] sm:$0xff] }
  0xb8   : > { %866 = vst.msk [vmem:[#allocation2 + $0x2a] sm:$0xff] %vm330_vm0, %v6049_v21  ;;  %v819_v35 = vadd.f32 %v799_v14, %v751_v16  ;;  %v599_v37 = vmul.f32 %v5904_v34, %v571_v17  ;;  %v666_v38 = vmul.f32 %v5917_v41, %v638_v18  ;;  %v733_v47 = vmul.f32 %v5930_v48, %v705_v26  ;;  %v471_v51 = vpop.permute.xlu1 %470  ;;  %v466_v52 = vpop.permute.xlu0 %465  ;;  %v641_v7 = vld [vmem:[#allocation2 + $0x6a] sm:$0xff]  ;;  %v640_v10 = vld [vmem:[#allocation2 + $0x62] sm:$0xff] }
  0xb9   : > { %v6062_v44 = vadd.f32 %v5977_v42, %v818_v27  ;;  %v752_v45 = vadd.f32 %v732_v9, %v684_v28  ;;  %v618_v46 = vadd.f32 %v598_v32, %v530_v25  ;;  %v667_v54 = vmul.f32 %v5917_v41, %v639_v30  ;;  %492 = vst.msk [vmem:[#allocation2 + $0x9a] sm:$0xff] %vm330_vm0, %v471_v51  ;;  %v708_v19 = vld [vmem:[#allocation2 + $0x63] sm:$0xff]  ;;  %v507_v16 = vld [vmem:[#allocation2 + $0x70] sm:$0xff]  ;;  %v508_v28 = vld [vmem:[#allocation2 + $0x78] sm:$0xff] }
  0xba   : > { %v6066_v53 = vadd.f32 %v5977_v42, %v819_v35  ;;  %v685_v56 = vadd.f32 %v665_v58, %v617_v36  ;;  %v619_v59 = vadd.f32 %v599_v37, %v531_v31  ;;  %491 = vst.msk [vmem:[#allocation2 + $0x92] sm:$0xff] %vm330_vm0, %v466_v52  ;;  %v734_v2 = vmul.f32 %v5930_v48, %v706_v39  ;;  %v707_v58 = vld [vmem:[#allocation2 + $0x5b] sm:$0xff]  ;;  %v574_v30 = vld [vmem:[#allocation2 + $0x71] sm:$0xff]  ;;  %v776_v36 = vld [vmem:[#allocation2 + $0x64] sm:$0xff] }
  0xbb   : > { %867 = vst.msk [vmem:[#allocation2 + $0x32] sm:$0xff] %vm330_vm0, %v6062_v44  ;;  %v820_v62 = vadd.f32 %v800_v15, %v752_v45  ;;  %v686_v63 = vadd.f32 %v666_v38, %v618_v46  ;;  %v801_v3 = vmul.f32 %v5943_v57, %v773_v40  ;;  %v802_v6 = vmul.f32 %v5943_v57, %v774_v49  ;;  %v775_v15 = vld [vmem:[#allocation2 + $0x5c] sm:$0xff]  ;;  %v709_v39 = vld [vmem:[#allocation2 + $0x6b] sm:$0xff] }
  0xbc   : > { %868 = vst.msk [vmem:[#allocation2 + $0x3a] sm:$0xff] %vm330_vm0, %v6066_v53  ;;  %v753_v5 = vadd.f32 %v733_v47, %v685_v56  ;;  %v687_v8 = vadd.f32 %v667_v54, %v619_v59  ;;  %v532_v9 = vmul.f32 %v5899_v33, %v505_v50  ;;  %v533_v13 = vmul.f32 %v5899_v33, %v506_v60  ;;  %v575_v38 = vld [vmem:[#allocation2 + $0x79] sm:$0xff]  ;;  %v777_v56 = vld [vmem:[#allocation2 + $0x6c] sm:$0xff] }
  0xbd   : > { %v6081_v11 = vadd.f32 %v5977_v42, %v820_v62  ;;  %v754_v12 = vadd.f32 %v734_v2, %v686_v63  ;;  %v600_v14 = vmul.f32 %v5904_v34, %v572_v61  ;;  %v601_v18 = vmul.f32 %v5904_v34, %v573_v4  ;;  %v643_v46 = vld [vmem:[#allocation2 + $0x7a] sm:$0xff]  ;;  %v642_v49 = vld [vmem:[#allocation2 + $0x72] sm:$0xff] }
  0xbe   : > { %v821_v17 = vadd.f32 %v801_v3, %v753_v5  ;;  %v735_v20 = vmul.f32 %v5930_v48, %v707_v58  ;;  %v669_v25 = vmul.f32 %v5917_v41, %v641_v7  ;;  %v668_v27 = vmul.f32 %v5917_v41, %v640_v10  ;;  %v710_v62 = vld [vmem:[#allocation2 + $0x73] sm:$0xff]  ;;  %v509_v2 = vld [vmem:[#allocation2 + $0x80] sm:$0xff]  ;;  %v510_v3 = vld [vmem:[#allocation2 + $0x88] sm:$0xff] }
  0xbf   : > { %869 = vst.msk [vmem:[#allocation2 + $0x42] sm:$0xff] %vm330_vm0, %v6081_v11  ;;  %v822_v22 = vadd.f32 %v802_v6, %v754_v12  ;;  %v620_v26 = vadd.f32 %v600_v14, %v532_v9  ;;  %v621_v32 = vadd.f32 %v601_v18, %v533_v13  ;;  %v803_v37 = vmul.f32 %v5943_v57, %v775_v15  ;;  %v576_v7 = vld [vmem:[#allocation2 + $0x81] sm:$0xff]  ;;  %v778_v14 = vld [vmem:[#allocation2 + $0x74] sm:$0xff] }
  0xc0   : > { %v6092_v31 = vadd.f32 %v5977_v42, %v821_v17  ;;  %v755_v35 = vadd.f32 %v735_v20, %v687_v8  ;;  %v736_v45 = vmul.f32 %v5930_v48, %v708_v19  ;;  %v534_v47 = vmul.f32 %v5899_v33, %v507_v16  ;;  %v6114_v8 = vld [vmem:[#allocation2 + $0x9b] sm:$0xff]  ;;  %v577_v17 = vld [vmem:[#allocation2 + $0x89] sm:$0xff] }
  0xc1   : > { %v6096_v40 = vadd.f32 %v5977_v42, %v822_v22  ;;  %v688_v43 = vadd.f32 %v668_v27, %v620_v26  ;;  %v689_v51 = vadd.f32 %v669_v25, %v621_v32  ;;  %v535_v52 = vmul.f32 %v5899_v33, %v508_v28  ;;  %v6116_v9 = vld [vmem:[#allocation2 + $0x9c] sm:$0xff]  ;;  %v645_v16 = vld [vmem:[#allocation2 + $0x8a] sm:$0xff] }
  0xc2   : > { %870 = vst.msk [vmem:[#allocation2 + $0x4a] sm:$0xff] %vm330_vm0, %v6092_v31  ;;  %v823_v50 = vadd.f32 %v803_v37, %v755_v35  ;;  %v602_v54 = vmul.f32 %v5904_v34, %v574_v30  ;;  %v804_v60 = vmul.f32 %v5943_v57, %v776_v36  ;;  %v603_v61 = vmul.f32 %v5904_v34, %v575_v38  ;;  %v711_v18 = vld [vmem:[#allocation2 + $0x7b] sm:$0xff]  ;;  %v902_v36 = vld [vmem:[#allocation2 + $0x9] sm:$0xff] }
  0xc3   : > { %871 = vst.msk [vmem:[#allocation2 + $0x52] sm:$0xff] %vm330_vm0, %v6096_v40  ;;  %v756_v59 = vadd.f32 %v736_v45, %v688_v43  ;;  %v737_v63 = vmul.f32 %v5930_v48, %v709_v39  ;;  %v671_v58 = vmul.f32 %v5917_v41, %v643_v46  ;;  %v670_v6 = vmul.f32 %v5917_v41, %v642_v49  ;;  %v644_v26 = vld [vmem:[#allocation2 + $0x82] sm:$0xff]  ;;  %v922_v46 = vld [vmem:[#allocation2 + $0xa] sm:$0xff] }
  0xc4   : > { %v6110_v4 = vadd.f32 %v5977_v42, %v823_v50  ;;  %v622_v5 = vadd.f32 %v602_v54, %v534_v47  ;;  %v623_v12 = vadd.f32 %v603_v61, %v535_v52  ;;  %v805_v15 = vmul.f32 %v5943_v57, %v777_v56  ;;  %860 = vst.msk [vmem:[#allocation2 + $0xa2] sm:$0x3] %vm859_vm2, %v5690_v1  ;;  %v779_v35 = vld [vmem:[#allocation2 + $0x7c] sm:$0xff]  ;;  %v780_v52 = vld [vmem:[#allocation2 + $0x84] sm:$0xff] }
  0xc5   : > { %v824_v10 = vadd.f32 %v804_v60, %v756_v59  ;;  %v757_v13 = vadd.f32 %v737_v63, %v689_v51  ;;  %v738_v20 = vmul.f32 %v5930_v48, %v710_v62  ;;  %v536_v22 = vmul.f32 %v5899_v33, %v509_v2  ;;  %v712_v43 = vld [vmem:[#allocation2 + $0x83] sm:$0xff]  ;;  %v511_v63 = vld [vmem:[#allocation2 + $0x90] sm:$0xff] }
  0xc6   : > { %872 = vst.msk [vmem:[#allocation2 + $0x5a] sm:$0xff] %vm330_vm0, %v6110_v4  ;;  %v690_v19 = vadd.f32 %v670_v6, %v622_v5  ;;  %v537_v25 = vmul.f32 %v5899_v33, %v510_v3  ;;  %v691_v30 = vadd.f32 %v671_v58, %v623_v12  ;;  %v604_v32 = vmul.f32 %v5904_v34, %v576_v7  ;;  %v921_v61 = vld [vmem:[#allocation2 + $0x2] sm:$0xff]  ;;  %v512_v6 = vld [vmem:[#allocation2 + $0x98] sm:$0xff] }
  0xc7   : > { %v6127_v27 = vadd.f32 %v5977_v42, %v824_v10  ;;  %v825_v28 = vadd.f32 %v805_v15, %v757_v13  ;;  %v806_v38 = vmul.f32 %v5943_v57, %v778_v14  ;;  %v605_v39 = vmul.f32 %v5904_v34, %v577_v17  ;;  %v901_v62 = vld [vmem:[#allocation2 + $0x1] sm:$0xff]  ;;  %v578_v7 = vld [vmem:[#allocation2 + $0x91] sm:$0xff]  ;;  %v579_v10 = vld [vmem:[#allocation2 + $0x99] sm:$0xff] }
  0xc8   : > { %v758_v37 = vadd.f32 %v738_v20, %v690_v19  ;;  %v739_v45 = vmul.f32 %v5930_v48, %v711_v18  ;;  %v673_v49 = vmul.f32 %v5917_v41, %v645_v16  ;;  %v624_v50 = vadd.f32 %v604_v32, %v536_v22  ;;  %v647_v15 = vld [vmem:[#allocation2 + $0x9a] sm:$0xff]  ;;  %v713_v17 = vld [vmem:[#allocation2 + $0x8b] sm:$0xff] }
  0xc9   : > { %873 = vst.msk [vmem:[#allocation2 + $0x62] sm:$0xff] %vm330_vm0, %v6127_v27  ;;  %v6136_v47 = vadd.f32 %v5977_v42, %v825_v28  ;;  %v672_v51 = vmul.f32 %v5917_v41, %v644_v26  ;;  %v625_v56 = vadd.f32 %v605_v39, %v537_v25  ;;  %v807_v60 = vmul.f32 %v5943_v57, %v779_v35  ;;  %v903_v18 = vld [vmem:[#allocation2 + $0x11] sm:$0xff]  ;;  %v941_v26 = vld [vmem:[#allocation2 + $0x3] sm:$0xff] }
  0xca   : > { %v826_v54 = vadd.f32 %v806_v38, %v758_v37  ;;  %v759_v59 = vadd.f32 %v739_v45, %v691_v30  ;;  %v740_v3 = vmul.f32 %v5930_v48, %v712_v43  ;;  %v5178_v58 = vpack.i.bf16 %v922_v46, %v921_v61  ;;  %v646_v22 = vld [vmem:[#allocation2 + $0x92] sm:$0xff] }
  0xcb   : > { %874 = vst.msk [vmem:[#allocation2 + $0x6a] sm:$0xff] %vm330_vm0, %v6136_v47  ;;  %v692_v2 = vadd.f32 %v672_v51, %v624_v50  ;;  %v5173_v5 = vpack.i.bf16 %v902_v36, %v901_v62  ;;  %v808_v13 = vmul.f32 %v5943_v57, %v780_v52  ;;  %v693_v20 = vadd.f32 %v673_v49, %v625_v56  ;;  %v781_v25 = vld [vmem:[#allocation2 + $0x8c] sm:$0xff]  ;;  %v904_v37 = vld [vmem:[#allocation2 + $0x19] sm:$0xff] }
  0xcc   : > { %v6145_v12 = vadd.f32 %v5977_v42, %v826_v54  ;;  %v827_v14 = vadd.f32 %v807_v60, %v759_v59  ;;  %5179 = vrot.lane.b32.xlu1 %v5178_v58, %s5691_s22  ;;  %v538_v16 = vmul.f32 %v5899_v33, %v511_v63  ;;  %v942_v28 = vld [vmem:[#allocation2 + $0xb] sm:$0xff]  ;;  %v539_v32 = vmul.f32 %v5899_v33, %v512_v6  ;;  %v714_v43 = vld [vmem:[#allocation2 + $0x93] sm:$0xff]  ;;  %v944_v51 = vld [vmem:[#allocation2 + $0x1b] sm:$0xff] }
  0xcd   : > { %v760_v19 = vadd.f32 %v740_v3, %v692_v2  ;;  %5174 = vrot.lane.b32.xlu0 %v5173_v5, %s5692_s23  ;;  %v606_v35 = vmul.f32 %v5904_v34, %v578_v7  ;;  %v607_v36 = vmul.f32 %v5904_v34, %v579_v10  ;;  %v675_v39 = vmul.f32 %v5917_v41, %v647_v15  ;;  %v782_v54 = vld [vmem:[#allocation2 + $0x94] sm:$0xff] }
  0xce   : > { %875 = vst.msk [vmem:[#allocation2 + $0x72] sm:$0xff] %vm330_vm0, %v6145_v12  ;;  %v6154_v30 = vadd.f32 %v5977_v42, %v827_v14  ;;  %v741_v45 = vmul.f32 %v5930_v48, %v713_v17  ;;  %v674_v50 = vmul.f32 %v5917_v41, %v646_v22  ;;  %v809_v33 = vmul.f32 %v5943_v57, %v781_v25  ;;  %v1302_v60 = vld [vmem:[%s7799_s3 + $0x98] sm:$0xff]  ;;  %v1301_v58 = vld [vmem:[%s7799_s3 + $0x90] sm:$0xff] }
  0xcf   : > { %v828_v38 = vadd.f32 %v808_v13, %v760_v19  ;;  %v626_v46 = vadd.f32 %v606_v35, %v538_v16  ;;  %v627_v49 = vadd.f32 %v607_v36, %v539_v32  ;;  %v5183_v56 = vpack.i.bf16 %v942_v28, %v941_v26  ;;  %v923_v2 = vld [vmem:[#allocation2 + $0x12] sm:$0xff]  ;;  %v924_v3 = vld [vmem:[#allocation2 + $0x1a] sm:$0xff]  ;;  %1427 = vmatpush2.msra.mxu0 %v1302_v60  ;;  %v926_v16 = vld [vmem:[#allocation2 + $0x2a] sm:$0xff] }
  0xd0   : > { %876 = vst.msk [vmem:[#allocation2 + $0x7a] sm:$0xff] %vm330_vm0, %v6154_v30  ;;  %v761_v34 = vadd.f32 %v741_v45, %v693_v20  ;;  %v5188_v59 = vpack.i.bf16 %v904_v37, %v903_v18  ;;  %v743_v61 = vmul.f32 %v5930_v48, %v6114_v8  ;;  %v742_v41 = vmul.f32 %v5930_v48, %v714_v43  ;;  %v943_v10 = vld [vmem:[#allocation2 + $0x13] sm:$0xff]  ;;  %v905_v13 = vld [vmem:[#allocation2 + $0x21] sm:$0xff]  ;;  %v906_v22 = vld [vmem:[#allocation2 + $0x29] sm:$0xff] }
  0xd1   : > { %v6166_v52 = vadd.f32 %v5977_v42, %v828_v38  ;;  %v694_v62 = vadd.f32 %v674_v50, %v626_v46  ;;  %v695_v63 = vadd.f32 %v675_v39, %v627_v49  ;;  %5184 = vrot.lane.b32.xlu0 %v5183_v56, %s5693_s28  ;;  %v811_v8 = vmul.f32 %v5943_v57, %v6116_v9  ;;  %v1300_v18 = vld [vmem:[%s7799_s3 + $0x88] sm:$0xff]  ;;  %v907_v36 = vld [vmem:[#allocation2 + $0x31] sm:$0xff]  ;;  %v908_v37 = vld [vmem:[#allocation2 + $0x39] sm:$0xff] }
  0xd2   : > { %v829_v5 = vadd.f32 %v809_v33, %v761_v34  ;;  %5189 = vrot.lane.b32.xlu1 %v5188_v59, %s5692_s23  ;;  %v810_v7 = vmul.f32 %v5943_v57, %v782_v54  ;;  %1428 = vmatprep.subr.mxu0 %v5690_v1  ;;  %v5193_v15 = vpack.i.bf16 %v924_v3, %v923_v2  ;;  %v925_v20 = vld [vmem:[#allocation2 + $0x22] sm:$0xff]  ;;  %v946_v35 = vld [vmem:[#allocation2 + $0x2b] sm:$0xff]  ;;  %v928_v45 = vld [vmem:[#allocation2 + $0x3a] sm:$0xff] }
  0xd3   : > { %877 = vst.msk [vmem:[#allocation2 + $0x82] sm:$0xff] %vm330_vm0, %v6166_v52  ;;  %v762_v48 = vadd.f32 %v742_v41, %v694_v62  ;;  %v763_v6 = vadd.f32 %v743_v61, %v695_v63  ;;  %v5198_v17 = vpack.i.bf16 %v944_v51, %v943_v10  ;;  %1429 = vmatpush2.msra.mxu0 %v1301_v58  ;;  %v1299_v57 = vld [vmem:[%s7799_s3 + $0x80] sm:$0xff]  ;;  %v927_v43 = vld [vmem:[#allocation2 + $0x32] sm:$0xff]  ;;  %v930_v34 = vld [vmem:[#allocation2 + $0x4a] sm:$0xff] }
  0xd4   : > { %v6186_v14 = vadd.f32 %v5977_v42, %v829_v5  ;;  %1430 = vmatprep.subr.mxu0 %v5690_v1  ;;  %v5208_v28 = vpack.i.bf16 %v926_v16, %v925_v20  ;;  %v5203_v32 = vpack.i.bf16 %v906_v22, %v905_v13  ;;  %v5218_v39 = vpack.i.bf16 %v908_v37, %v907_v36  ;;  %v948_v46 = vld [vmem:[#allocation2 + $0x3b] sm:$0xff]  ;;  %v947_v49 = vld [vmem:[#allocation2 + $0x33] sm:$0xff]  ;;  %v910_v56 = vld [vmem:[#allocation2 + $0x49] sm:$0xff] }
  0xd5   : > { %v830_v19 = vadd.f32 %v810_v7, %v762_v48  ;;  %v831_v9 = vadd.f32 %v811_v8, %v763_v6  ;;  %5194 = vrot.lane.b32.xlu0 %v5193_v15, %s5691_s22  ;;  %1431 = vmatpush2.msra.mxu0 %v1300_v18  ;;  %v5223_v50 = vpack.i.bf16 %v928_v45, %v927_v43  ;;  %v929_v51 = vld [vmem:[#allocation2 + $0x42] sm:$0xff]  ;;  %v950_v63 = vld [vmem:[#allocation2 + $0x4b] sm:$0xff]  ;;  %v912_v2 = vld [vmem:[#allocation2 + $0x59] sm:$0xff] }
  0xd6   : > { %878 = vst.msk [vmem:[#allocation2 + $0x8a] sm:$0xff] %vm330_vm0, %v6186_v14  ;;  %5199 = vrot.lane.b32.xlu1 %v5198_v17, %s5693_s28  ;;  %1432 = vmatprep.subr.mxu0 %v5690_v1  ;;  %v5228_v33 = vpack.i.bf16 %v948_v46, %v947_v49  ;;  %v909_v54 = vld [vmem:[#allocation2 + $0x41] sm:$0xff]  ;;  %v5238_v61 = vpack.i.bf16 %v930_v34, %v929_v51  ;;  %v911_v41 = vld [vmem:[#allocation2 + $0x51] sm:$0xff] }
  0xd7   : > { %v6200_v25 = vadd.f32 %v5977_v42, %v830_v19  ;;  %v6203_v26 = vadd.f32 %v5977_v42, %v831_v9  ;;  %1433 = vmatpush2.msra.mxu0 %v1299_v57  ;;  %v945_v42 = vld [vmem:[#allocation2 + $0x23] sm:$0xff]  ;;  %v5233_v62 = vpack.i.bf16 %v910_v56, %v909_v54  ;;  %v5248_v5 = vpack.i.bf16 %v912_v2, %v911_v41  ;;  %v931_v8 = vld [vmem:[#allocation2 + $0x52] sm:$0xff]  ;;  %v932_v48 = vld [vmem:[#allocation2 + $0x5a] sm:$0xff] }
  0xd8   : > { %2701 = vmatprep.subr.mxu0 %v5690_v1  ;;  %v5213_v38 = vpack.i.bf16 %v946_v35, %v945_v42  ;;  %v949_v3 = vld [vmem:[#allocation2 + $0x43] sm:$0xff]  ;;  %v952_v6 = vld [vmem:[#allocation2 + $0x5b] sm:$0xff]  ;;  %v951_v7 = vld [vmem:[#allocation2 + $0x53] sm:$0xff]  ;;  %v5253_v10 = vpack.i.bf16 %v932_v48, %v931_v8 }
  0xd9   : > { %879 = vst.msk [vmem:[#allocation2 + $0x92] sm:$0xff] %vm330_vm0, %v6200_v25  ;;  %880 = vst.msk [vmem:[#allocation2 + $0x9a] sm:$0xff] %vm330_vm0, %v6203_v26  ;;  %5204 = vrot.lane.b32.xlu0 %v5203_v32, %s5692_s23  ;;  %v5243_v58 = vpack.i.bf16 %v950_v63, %v949_v3  ;;  %v5258_v13 = vpack.i.bf16 %v952_v6, %v951_v7  ;;  %v933_v15 = vld [vmem:[#allocation2 + $0x62] sm:$0xff]  ;;  %v934_v17 = vld [vmem:[#allocation2 + $0x6a] sm:$0xff] }
  0xda   : > { %5209 = vrot.lane.b32.xlu1 %v5208_v28, %s5691_s22  ;;  %v913_v18 = vld [vmem:[#allocation2 + $0x61] sm:$0xff]  ;;  %v914_v19 = vld [vmem:[#allocation2 + $0x69] sm:$0xff]  ;;  %v5268_v9 = vpack.i.bf16 %v934_v17, %v933_v15  ;;  %v915_v22 = vld [vmem:[#allocation2 + $0x71] sm:$0xff] }
  0xdb   : > { %v5263_v20 = vpack.i.bf16 %v914_v19, %v913_v18  ;;  %v954_v16 = vld [vmem:[#allocation2 + $0x6b] sm:$0xff]  ;;  %v916_v57 = vld [vmem:[#allocation2 + $0x79] sm:$0xff]  ;;  %v953_v28 = vld [vmem:[#allocation2 + $0x63] sm:$0xff] }
  0xdc   : > { %v5273_v32 = vpack.i.bf16 %v954_v16, %v953_v28  ;;  %v5278_v35 = vpack.i.bf16 %v916_v57, %v915_v22  ;;  %v935_v36 = vld [vmem:[#allocation2 + $0x72] sm:$0xff]  ;;  %v936_v37 = vld [vmem:[#allocation2 + $0x7a] sm:$0xff]  ;;  %v937_v45 = vld [vmem:[#allocation2 + $0x82] sm:$0xff] }
  0xdd   : > { %5214 = vrot.lane.b32.xlu0 %v5213_v38, %s5693_s28  ;;  %v956_v42 = vld [vmem:[#allocation2 + $0x7b] sm:$0xff]  ;;  %v955_v38 = vld [vmem:[#allocation2 + $0x73] sm:$0xff]  ;;  %v938_v46 = vld [vmem:[#allocation2 + $0x8a] sm:$0xff] }
  0xde   : > { %5219 = vrot.lane.b32.xlu1 %v5218_v39, %s5692_s23  ;;  %v5283_v39 = vpack.i.bf16 %v936_v37, %v935_v36  ;;  %v5288_v43 = vpack.i.bf16 %v956_v42, %v955_v38  ;;  %v917_v49 = vld [vmem:[#allocation2 + $0x81] sm:$0xff]  ;;  %v962_v22 = vld [vmem:[#allocation2 + $0xc] sm:$0xff] }
  0xdf   : > { %v957_v54 = vld [vmem:[#allocation2 + $0x83] sm:$0xff] }
  0xe0   : > { %v6217_v59 = vld [vmem:[#allocation2 + $0x9b] sm:$0xff]  ;;  %v958_v34 = vld [vmem:[#allocation2 + $0x8b] sm:$0xff]  ;;  %v959_v63 = vld [vmem:[#allocation2 + $0x93] sm:$0xff] }
  0xe1   : > { %5224 = vrot.lane.b32.xlu0 %v5223_v50, %s5691_s22  ;;  %v6219_v60 = vld [vmem:[#allocation2 + $0x9c] sm:$0xff]  ;;  %v918_v50 = vld [vmem:[#allocation2 + $0x89] sm:$0xff]  ;;  %v5303_v56 = vpack.i.bf16 %v958_v34, %v957_v54 }
  0xe2   : > { %5229 = vrot.lane.b32.xlu1 %v5228_v33, %s5693_s28  ;;  %1555 = vst.msk [vmem:[#allocation2 + $0xa2] sm:$0x3] %vm859_vm2, %v5690_v1  ;;  %v5298_v33 = vpack.i.bf16 %v938_v46, %v937_v45  ;;  %v5293_v51 = vpack.i.bf16 %v918_v50, %v917_v49  ;;  %v920_v41 = vld [vmem:[#allocation2 + $0x99] sm:$0xff]  ;;  %v882_v17 = vld [vmem:[#allocation2 + $0x8] sm:$0xff] }
  0xe3   : > { %v940_v2 = vld [vmem:[#allocation2 + $0x9a] sm:$0xff] }
  0xe4   : > { %v881_v48 = vld [vmem:[#allocation2] sm:$0xff]  ;;  %v963_v49 = vld [vmem:[#allocation2 + $0x14] sm:$0xff] }
  0xe5   : > { %5234 = vrot.lane.b32.xlu0 %v5233_v62, %s5692_s23  ;;  %v939_v62 = vld [vmem:[#allocation2 + $0x92] sm:$0xff] }
  0xe6   : > { %5239 = vrot.lane.b32.xlu1 %v5238_v61, %s5691_s22  ;;  %v919_v61 = vld [vmem:[#allocation2 + $0x91] sm:$0xff] }
  0xe9   : > { %5244 = vrot.lane.b32.xlu0 %v5243_v58, %s5693_s28 }
  0xea   : > { %5249 = vrot.lane.b32.xlu1 %v5248_v5, %s5692_s23 }
  0xed   : > { %5254 = vrot.lane.b32.xlu0 %v5253_v10, %s5691_s22 }
  0xee   : > { %5259 = vrot.lane.b32.xlu1 %v5258_v13, %s5693_s28 }
  0xf1   : > { %5264 = vrot.lane.b32.xlu0 %v5263_v20, %s5692_s23 }
  0xf2   : > { %5269 = vrot.lane.b32.xlu1 %v5268_v9, %s5691_s22 }
  0xf5   : > { %5274 = vrot.lane.b32.xlu0 %v5273_v32, %s5693_s28 }
  0xf6   : > { %5279 = vrot.lane.b32.xlu1 %v5278_v35, %s5692_s23  ;;  %v883_v35 = vld [vmem:[#allocation2 + $0x10] sm:$0xff] }
  0xf9   : > { %5284 = vrot.lane.b32.xlu0 %v5283_v39, %s5691_s22 }
  0xfa   : > { %5289 = vrot.lane.b32.xlu1 %v5288_v43, %s5693_s28 }
  0xfd   : > { %5294 = vrot.lane.b32.xlu0 %v5293_v51, %s5692_s23 }
  0xfe   : > { %5299 = vrot.lane.b32.xlu1 %v5298_v33, %s5691_s22  ;;  %v884_v33 = vld [vmem:[#allocation2 + $0x18] sm:$0xff] }
 0x101   : > { %5304 = vrot.lane.b32.xlu0 %v5303_v56, %s5693_s28 }
 0x102   : > { %1037 = vrot.lane.b32.xlu1 %v919_v61, %s5692_s23  ;;  %v964_v61 = vld [vmem:[#allocation2 + $0x1c] sm:$0xff] }
 0x105   : > { %1117 = vrot.lane.b32.xlu0 %v939_v62, %s5691_s22 }
 0x106   : > { %1197 = vrot.lane.b32.xlu1 %v959_v63, %s5693_s28 }
 0x109   : > { %1039 = vrot.lane.b32.xlu0 %v920_v41, %s5692_s23 }
 0x10a   : > { %1119 = vrot.lane.b32.xlu1 %v940_v2, %s5691_s22  ;;  %v885_v2 = vld [vmem:[#allocation2 + $0x20] sm:$0xff] }
 0x10d   : > { %1199 = vrot.lane.b32.xlu0 %v6217_v59, %s5693_s28 }
 0x13e   : > { %v5180_v3 = vpop.permute.xlu1 %5179 }
 0x13f   : > { %v5175_v58 = vpop.permute.xlu0 %5174  ;;  %v5181_v8 = vunpack.i.l.bf16 %v5180_v3  ;;  %v5182_v18 = vunpack.i.h.bf16 %v5180_v3 }
 0x140   : > { %v5176_v5 = vunpack.i.l.bf16 %v5175_v58  ;;  %v5177_v6 = vunpack.i.h.bf16 %v5175_v58 }
 0x142   : > { %v1221_v7 = vsel %vm330_vm0, %v881_v48, %v5176_v5  ;;  %v1222_v16 = vsel %vm330_vm0, %v882_v17, %v5177_v6  ;;  %v886_v17 = vld [vmem:[#allocation2 + $0x28] sm:$0xff] }
 0x143   : > { %v5185_v13 = vpop.permute.xlu0 %5184  ;;  %v1242_v19 = vsel %vm1241_vm3, %v1221_v7, %v5181_v8  ;;  %v1243_v36 = vsel %vm1241_vm3, %v1222_v16, %v5182_v18 }
 0x144   : > { %v5190_v10 = vpop.permute.xlu1 %5189  ;;  %v5186_v15 = vunpack.i.l.bf16 %v5185_v13  ;;  %v5187_v20 = vunpack.i.h.bf16 %v5185_v13 }
 0x145   : > { %v5191_v9 = vunpack.i.l.bf16 %v5190_v10  ;;  %v5192_v37 = vunpack.i.h.bf16 %v5190_v10  ;;  %v965_v10 = vld [vmem:[#allocation2 + $0x24] sm:$0xff] }
 0x146   : > { %v1263_v59 = vsel %vm1262_vm4, %v1242_v19, %v5186_v15  ;;  %v1264_v38 = vsel %vm1262_vm4, %v1243_v36, %v5187_v20 }
 0x147   : > { %v5195_v28 = vpop.permute.xlu0 %5194  ;;  %1435 = vmatmul.mubr.f32.vlgmr.msra.gmra.mxu0 %v1263_v59  ;;  %v1223_v39 = vsel %vm330_vm0, %v883_v35, %v5191_v9  ;;  %v1224_v56 = vsel %vm330_vm0, %v884_v33, %v5192_v37 }
 0x148   : > { %v5200_v57 = vpop.permute.xlu1 %5199  ;;  %v5196_v32 = vunpack.i.l.bf16 %v5195_v28  ;;  %4796 = vmatprep.mubr.msk.f32.mxu0 %vm330_vm0, %v962_v22  ;;  %v5197_v43 = vunpack.i.h.bf16 %v5195_v28  ;;  %v966_v22 = vld [vmem:[#allocation2 + $0x2c] sm:$0xff] }
 0x149   : > { %v5201_v42 = vunpack.i.l.bf16 %v5200_v57  ;;  %v5202_v51 = vunpack.i.h.bf16 %v5200_v57 }
 0x14a   : > { %v1244_v50 = vsel %vm1241_vm3, %v1223_v39, %v5196_v32  ;;  %v1245_v41 = vsel %vm1241_vm3, %v1224_v56, %v5197_v43  ;;  %v887_v32 = vld [vmem:[#allocation2 + $0x30] sm:$0xff]  ;;  %v968_v56 = vld [vmem:[#allocation2 + $0x3c] sm:$0xff] }
 0x14b   : > { %v5205_v46 = vpop.permute.xlu0 %5204  ;;  %1440 = vmatmul.mubr.f32.gmra.mxu0 %v1264_v38  ;;  %v1265_v54 = vsel %vm1262_vm4, %v1244_v50, %v5201_v42  ;;  %v1266_v8 = vsel %vm1262_vm4, %v1245_v41, %v5202_v51  ;;  %v967_v43 = vld [vmem:[#allocation2 + $0x34] sm:$0xff] }
 0x14c   : > { %v5210_v45 = vpop.permute.xlu1 %5209  ;;  %4797 = vmatprep.mubr.msk.f32.mxu0 %vm330_vm0, %v963_v49  ;;  %v5206_v34 = vunpack.i.l.bf16 %v5205_v46  ;;  %v5207_v58 = vunpack.i.h.bf16 %v5205_v46  ;;  %v888_v46 = vld [vmem:[#allocation2 + $0x38] sm:$0xff] }
 0x14d   : > { %v5211_v3 = vunpack.i.l.bf16 %v5210_v45  ;;  %v5212_v13 = vunpack.i.h.bf16 %v5210_v45 }
 0x14e   : > { %v1225_v48 = vsel %vm330_vm0, %v885_v2, %v5206_v34  ;;  %v1226_v20 = vsel %vm330_vm0, %v886_v17, %v5207_v58 }
 0x14f   : > { %v5215_v63 = vpop.permute.xlu0 %5214  ;;  %1445 = vmatmul.mubr.f32.gmra.mxu0 %v1265_v54  ;;  %v1246_v15 = vsel %vm1241_vm3, %v1225_v48, %v5211_v3  ;;  %v1247_v28 = vsel %vm1241_vm3, %v1226_v20, %v5212_v13 }
 0x150   : > { %v5220_v62 = vpop.permute.xlu1 %5219  ;;  %4798 = vmatprep.mubr.msk.f32.mxu0 %vm330_vm0, %v964_v61  ;;  %v5216_v5 = vunpack.i.l.bf16 %v5215_v63  ;;  %v5217_v19 = vunpack.i.h.bf16 %v5215_v63  ;;  %v889_v63 = vld [vmem:[#allocation2 + $0x40] sm:$0xff] }
 0x151   : > { %v5221_v18 = vunpack.i.l.bf16 %v5220_v62  ;;  %v5222_v35 = vunpack.i.h.bf16 %v5220_v62 }
 0x152   : > { %v1267_v9 = vsel %vm1262_vm4, %v1246_v15, %v5216_v5  ;;  %v1268_v37 = vsel %vm1262_vm4, %v1247_v28, %v5217_v19  ;;  %v969_v5 = vld [vmem:[#allocation2 + $0x44] sm:$0xff] }
 0x153   : > { %v5225_v7 = vpop.permute.xlu0 %5224  ;;  %1450 = vmatmul.mubr.f32.gmra.mxu0 %v1266_v8  ;;  %v1227_v42 = vsel %vm330_vm0, %v887_v32, %v5221_v18  ;;  %v1228_v34 = vsel %vm330_vm0, %v888_v46, %v5222_v35 }
 0x154   : > { %v5230_v6 = vpop.permute.xlu1 %5229  ;;  %4799 = vmatprep.mubr.msk.f32.mxu0 %vm330_vm0, %v965_v10  ;;  %v5226_v59 = vunpack.i.l.bf16 %v5225_v7  ;;  %v5227_v38 = vunpack.i.h.bf16 %v5225_v7  ;;  %v890_v10 = vld [vmem:[#allocation2 + $0x48] sm:$0xff] }
 0x155   : > { %v5231_v36 = vunpack.i.l.bf16 %v5230_v6  ;;  %v5232_v49 = vunpack.i.h.bf16 %v5230_v6 }
 0x156   : > { %v1248_v45 = vsel %vm1241_vm3, %v1227_v42, %v5226_v59  ;;  %v1249_v61 = vsel %vm1241_vm3, %v1228_v34, %v5227_v38  ;;  %v891_v59 = vld [vmem:[#allocation2 + $0x50] sm:$0xff]  ;;  %v892_v38 = vld [vmem:[#allocation2 + $0x58] sm:$0xff] }
 0x157   : > { %v5235_v16 = vpop.permute.xlu0 %5234  ;;  %1455 = vmatmul.mubr.f32.gmra.mxu0 %v1267_v9  ;;  %v1269_v51 = vsel %vm1262_vm4, %v1248_v45, %v5231_v36  ;;  %v1270_v3 = vsel %vm1262_vm4, %v1249_v61, %v5232_v49  ;;  %v970_v9 = vld [vmem:[#allocation2 + $0x4c] sm:$0xff]  ;;  %v972_v49 = vld [vmem:[#allocation2 + $0x5c] sm:$0xff] }
 0x158   : > { %v5240_v57 = vpop.permute.xlu1 %5239  ;;  %4800 = vmatprep.mubr.msk.f32.mxu0 %vm330_vm0, %v966_v22  ;;  %v5236_v50 = vunpack.i.l.bf16 %v5235_v16  ;;  %v5237_v41 = vunpack.i.h.bf16 %v5235_v16 }
 0x159   : > { %v5241_v62 = vunpack.i.l.bf16 %v5240_v57  ;;  %v5242_v48 = vunpack.i.h.bf16 %v5240_v57 }
 0x15a   : > { %v1229_v58 = vsel %vm330_vm0, %v889_v63, %v5236_v50  ;;  %v1230_v18 = vsel %vm330_vm0, %v890_v10, %v5237_v41  ;;  %v973_v41 = vld [vmem:[#allocation2 + $0x64] sm:$0xff] }
 0x15b   : > { %v5245_v39 = vpop.permute.xlu0 %5244  ;;  %1460 = vmatmul.mubr.f32.gmra.mxu0 %v1268_v37  ;;  %v1250_v7 = vsel %vm1241_vm3, %v1229_v58, %v5241_v62  ;;  %v1251_v20 = vsel %vm1241_vm3, %v1230_v18, %v5242_v48  ;;  %v971_v37 = vld [vmem:[#allocation2 + $0x54] sm:$0xff]  ;;  %v894_v58 = vld [vmem:[#allocation2 + $0x68] sm:$0xff] }
 0x15c   : > { %4801 = vmatprep.mubr.msk.f32.mxu0 %vm330_vm0, %v967_v43  ;;  %v5250_v33 = vpop.permute.xlu1 %5249  ;;  %v5246_v2 = vunpack.i.l.bf16 %v5245_v39  ;;  %v5247_v15 = vunpack.i.h.bf16 %v5245_v39  ;;  %v895_v18 = vld [vmem:[#allocation2 + $0x70] sm:$0xff] }
 0x15d   : > { %v5251_v13 = vunpack.i.l.bf16 %v5250_v33  ;;  %v5252_v16 = vunpack.i.h.bf16 %v5250_v33 }
 0x15e   : > { %v1271_v17 = vsel %vm1262_vm4, %v1250_v7, %v5246_v2  ;;  %v1272_v28 = vsel %vm1262_vm4, %v1251_v20, %v5247_v15  ;;  %v974_v15 = vld [vmem:[#allocation2 + $0x6c] sm:$0xff] }
 0x15f   : > { %v5255_v54 = vpop.permute.xlu0 %5254  ;;  %1465 = vmatmul.mubr.f32.gmra.mxu0 %v1269_v51  ;;  %v1231_v32 = vsel %vm330_vm0, %v891_v59, %v5251_v13  ;;  %v1232_v46 = vsel %vm330_vm0, %v892_v38, %v5252_v16 }
 0x160   : > { %4802 = vmatprep.mubr.msk.f32.mxu0 %vm330_vm0, %v968_v56  ;;  %v5260_v8 = vpop.permute.xlu1 %5259  ;;  %v5256_v19 = vunpack.i.l.bf16 %v5255_v54  ;;  %v5257_v35 = vunpack.i.h.bf16 %v5255_v54  ;;  %v893_v54 = vld [vmem:[#allocation2 + $0x60] sm:$0xff] }
 0x161   : > { %v5261_v22 = vunpack.i.l.bf16 %v5260_v8  ;;  %v5262_v39 = vunpack.i.h.bf16 %v5260_v8 }
 0x162   : > { %v1252_v42 = vsel %vm1241_vm3, %v1231_v32, %v5256_v19  ;;  %v1253_v50 = vsel %vm1241_vm3, %v1232_v46, %v5257_v35  ;;  %v896_v35 = vld [vmem:[#allocation2 + $0x78] sm:$0xff]  ;;  %v897_v46 = vld [vmem:[#allocation2 + $0x80] sm:$0xff] }
 0x163   : > { %1470 = vmatmul.mubr.f32.gmra.mxu0 %v1270_v3  ;;  %v5265_v6 = vpop.permute.xlu0 %5264  ;;  %v1273_v45 = vsel %vm1262_vm4, %v1252_v42, %v5261_v22  ;;  %v1274_v62 = vsel %vm1262_vm4, %v1253_v50, %v5262_v39  ;;  %v975_v22 = vld [vmem:[#allocation2 + $0x74] sm:$0xff]  ;;  %v976_v39 = vld [vmem:[#allocation2 + $0x7c] sm:$0xff] }
 0x164   : > { %4803 = vmatprep.mubr.msk.f32.mxu0 %vm330_vm0, %v969_v5  ;;  %v5270_v57 = vpop.permute.xlu1 %5269  ;;  %v5266_v43 = vunpack.i.l.bf16 %v5265_v6  ;;  %v5267_v56 = vunpack.i.h.bf16 %v5265_v6 }
 0x165   : > { %v5271_v51 = vunpack.i.l.bf16 %v5270_v57  ;;  %v5272_v2 = vunpack.i.h.bf16 %v5270_v57 }
 0x166   : > { %v1233_v63 = vsel %vm330_vm0, %v893_v54, %v5266_v43  ;;  %v1234_v6 = vsel %vm330_vm0, %v894_v58, %v5267_v56  ;;  %v977_v56 = vld [vmem:[#allocation2 + $0x84] sm:$0xff]  ;;  %v978_v58 = vld [vmem:[#allocation2 + $0x8c] sm:$0xff] }
 0x167   : > { %1475 = vmatmul.mubr.f32.gmra.mxu0 %v1271_v17  ;;  %v5275_v36 = vpop.permute.xlu0 %5274  ;;  %v1254_v3 = vsel %vm1241_vm3, %v1233_v63, %v5271_v51  ;;  %v1255_v17 = vsel %vm1241_vm3, %v1234_v6, %v5272_v2  ;;  %v898_v63 = vld [vmem:[#allocation2 + $0x88] sm:$0xff] }
 0x168   : > { %4804 = vmatprep.mubr.msk.f32.mxu0 %vm330_vm0, %v970_v9  ;;  %v5280_v33 = vpop.permute.xlu1 %5279  ;;  %v5276_v61 = vunpack.i.l.bf16 %v5275_v36  ;;  %v5277_v8 = vunpack.i.h.bf16 %v5275_v36 }
 0x169   : > { %v5281_v5 = vunpack.i.l.bf16 %v5280_v33  ;;  %v5282_v19 = vunpack.i.h.bf16 %v5280_v33 }
 0x16a   : > { %v1275_v7 = vsel %vm1262_vm4, %v1254_v3, %v5276_v61  ;;  %v1276_v20 = vsel %vm1262_vm4, %v1255_v17, %v5277_v8  ;;  %v899_v8 = vld [vmem:[#allocation2 + $0x90] sm:$0xff]  ;;  %v900_v17 = vld [vmem:[#allocation2 + $0x98] sm:$0xff] }
 0x16b   : > { %1480 = vmatmul.mubr.f32.gmra.mxu0 %v1272_v28  ;;  %v5285_v34 = vpop.permute.xlu0 %5284  ;;  %v1235_v59 = vsel %vm330_vm0, %v895_v18, %v5281_v5  ;;  %v1236_v38 = vsel %vm330_vm0, %v896_v35, %v5282_v19  ;;  %v4825_v35 = vld [vmem:[%s7799_s3 + $0xf0] sm:$0xff] }
 0x16c   : > { %4805 = vmatprep.mubr.msk.f32.mxu0 %vm330_vm0, %v971_v37  ;;  %v5290_v48 = vpop.permute.xlu1 %5289  ;;  %v5286_v10 = vunpack.i.l.bf16 %v5285_v34  ;;  %v5287_v16 = vunpack.i.h.bf16 %v5285_v34 }
 0x16d   : > { %v5291_v9 = vunpack.i.l.bf16 %v5290_v48  ;;  %v5292_v36 = vunpack.i.h.bf16 %v5290_v48 }
 0x16e   : > { %v1256_v57 = vsel %vm1241_vm3, %v1235_v59, %v5286_v10  ;;  %v1257_v43 = vsel %vm1241_vm3, %v1236_v38, %v5287_v16  ;;  %v4821_v38 = vld [vmem:[%s7799_s3 + $0xd0] sm:$0xff] }
 0x16f   : > { %1485 = vmatmul.mubr.f32.gmra.mxu0 %v1273_v45  ;;  %v5295_v13 = vpop.permute.xlu0 %5294  ;;  %v1277_v42 = vsel %vm1262_vm4, %v1256_v57, %v5291_v9  ;;  %v1278_v51 = vsel %vm1262_vm4, %v1257_v43, %v5292_v36  ;;  %v4829_v57 = vld [vmem:[%s7799_s3 + $0x110] sm:$0xff]  ;;  %v4824_v36 = vld [vmem:[%s7799_s3 + $0xe8] sm:$0xff]  ;;  %v4819_v43 = vld [vmem:[%s7799_s3 + $0xc0] sm:$0xff] }
 0x170   : > { %4806 = vmatprep.mubr.msk.f32.mxu0 %vm330_vm0, %v972_v49  ;;  %v5300_v28 = vpop.permute.xlu1 %5299  ;;  %v5296_v37 = vunpack.i.l.bf16 %v5295_v13  ;;  %v5297_v49 = vunpack.i.h.bf16 %v5295_v13 }
 0x171   : > { %v5301_v45 = vunpack.i.l.bf16 %v5300_v28  ;;  %v5302_v61 = vunpack.i.h.bf16 %v5300_v28  ;;  %v4827_v28 = vld [vmem:[%s7799_s3 + $0x100] sm:$0xff] }
 0x172   : > { %v1237_v34 = vsel %vm330_vm0, %v897_v46, %v5296_v37  ;;  %v1238_v3 = vsel %vm330_vm0, %v898_v63, %v5297_v49  ;;  %v4823_v37 = vld [vmem:[%s7799_s3 + $0xe0] sm:$0xff]  ;;  %v4817_v46 = vld [vmem:[%s7799_s3 + $0xb0] sm:$0xff]  ;;  %v4816_v49 = vld [vmem:[%s7799_s3 + $0xa8] sm:$0xff] }
 0x173   : > { %1490 = vmatmul.mubr.f32.gmra.mxu0 %v1274_v62  ;;  %v5305_v32 = vpop.permute.xlu0 %5304  ;;  %v1258_v62 = vsel %vm1241_vm3, %v1237_v34, %v5301_v45  ;;  %v4818_v45 = vld [vmem:[%s7799_s3 + $0xb8] sm:$0xff] }
 0x174   : > { %4807 = vmatprep.mubr.msk.f32.mxu0 %vm330_vm0, %v973_v41  ;;  %v1038_v50 = vpop.permute.xlu1 %1037  ;;  %v5306_v33 = vunpack.i.l.bf16 %v5305_v32  ;;  %v5307_v41 = vunpack.i.h.bf16 %v5305_v32  ;;  %v4826_v32 = vld [vmem:[%s7799_s3 + $0xf8] sm:$0xff] }
 0x175   : > { %v1239_v6 = vsel %vm330_vm0, %v899_v8, %v1038_v50  ;;  %v6386_v50 = vld [vmem:[%s7800_s4] ss:$0 sm:$0xff] }
 0x176   : > { %v1279_v2 = vsel %vm1262_vm4, %v1258_v62, %v5306_v33  ;;  %v4815_v33 = vld [vmem:[%s7799_s3 + $0xa0] sm:$0xff] }
 0x177   : > { %1495 = vmatmul.mubr.f32.gmra.mxu0 %v1275_v7  ;;  %v1118_v54 = vpop.permute.xlu0 %1117  ;;  %v1259_v7 = vsel %vm1241_vm3, %v1238_v3, %v5302_v61 }
 0x178   : > { %4808 = vmatprep.mubr.msk.f32.mxu0 %vm330_vm0, %v974_v15  ;;  %v1198_v5 = vpop.permute.xlu1 %1197  ;;  %v1280_v10 = vsel %vm1262_vm4, %v1259_v7, %v5307_v41  ;;  %v1260_v13 = vsel %vm1241_vm3, %v1239_v6, %v1118_v54  ;;  %v979_v15 = vld [vmem:[#allocation2 + $0x94] sm:$0xff]  ;;  %v4831_v7 = vld [vmem:[%s7799_s3 + $0x120] sm:$0xff] }
 0x179   : > { %v1281_v9 = vsel %vm1262_vm4, %v1260_v13, %v1198_v5  ;;  %v4834_v41 = vld [vmem:[%s7799_s3 + $0x138] sm:$0xff] }
 0x17b   : > { %1500 = vmatmul.mubr.f32.gmra.mxu0 %v1276_v20  ;;  %v1040_v48 = vpop.permute.xlu0 %1039 }
 0x17c   : > { %4809 = vmatprep.mubr.msk.f32.mxu0 %vm330_vm0, %v975_v22  ;;  %v1120_v18 = vpop.permute.xlu1 %1119  ;;  %v1240_v19 = vsel %vm330_vm0, %v900_v17, %v1040_v48  ;;  %v4830_v22 = vld [vmem:[%s7799_s3 + $0x118] sm:$0xff]  ;;  %v4832_v48 = vld [vmem:[%s7799_s3 + $0x128] sm:$0xff] }
 0x17d   : > { %v1261_v59 = vsel %vm1241_vm3, %v1240_v19, %v1120_v18  ;;  %2066 = vmatpush1.msra.mxu1 %v4830_v22 }
 0x17e   : > { %2067 = vmatprep.subr.mxu1 %v5690_v1 }
 0x17f   : > { %1505 = vmatmul.mubr.f32.gmra.mxu0 %v1277_v42  ;;  %v1200_v20 = vpop.permute.xlu0 %1199  ;;  %2068 = vmatpush1.msra.mxu1 %v4829_v57  ;;  %v4822_v42 = vld [vmem:[%s7799_s3 + $0xd8] sm:$0xff] }
 0x180   : > { %4810 = vmatprep.mubr.msk.f32.mxu0 %vm330_vm0, %v976_v39  ;;  %v1282_v16 = vsel %vm1262_vm4, %v1261_v59, %v1200_v20  ;;  %2069 = vmatprep.subr.mxu1 %v5690_v1  ;;  %v4820_v39 = vld [vmem:[%s7799_s3 + $0xc8] sm:$0xff] }
 0x183   : > { %1510 = vmatmul.mubr.f32.gmra.mxu0 %v1278_v51 }
 0x184   : > { %4811 = vmatprep.mubr.msk.f32.mxu0 %vm330_vm0, %v977_v56 }
 0x187   : > { %1515 = vmatmul.mubr.f32.gmra.mxu0 %v1279_v2  ;;  %v4833_v2 = vld [vmem:[%s7799_s3 + $0x130] sm:$0xff] }
 0x188   : > { %4812 = vmatprep.mubr.msk.f32.mxu0 %vm330_vm0, %v978_v58 }
 0x18b   : > { %1520 = vmatmul.mubr.f32.gmra.mxu0 %v1280_v10 }
 0x18c   : > { %4813 = vmatprep.mubr.msk.f32.mxu0 %vm330_vm0, %v979_v15 }
 0x18f   : > { %1525 = vmatmul.mubr.f32.gmra.mxu0 %v1281_v9 }
 0x190   : > { %4814 = vmatprep.mubr.msk.f32.mxu0 %vm330_vm0, %v6219_v60  ;;  %v4828_v60 = vld [vmem:[%s7799_s3 + $0x108] sm:$0xff] }
 0x191   : > { %2070 = vmatpush1.msra.mxu1 %v4828_v60 }
 0x192   : > { %2071 = vmatprep.subr.mxu1 %v5690_v1 }
 0x193   : > { %1530 = vmatmul.mubr.f32.gmra.mxu0 %v1282_v16  ;;  %2072 = vmatpush1.msra.mxu1 %v4827_v28 }
 0x194   : > { %2073 = vmatprep.subr.mxu1 %v5690_v1 }
 0x195   : > { %2074 = vmatpush1.msra.mxu1 %v4826_v32 }
 0x196   : > { %2075 = vmatprep.subr.mxu1 %v5690_v1 }
 0x197   : > { %2076 = vmatpush1.msra.mxu1 %v4825_v35 }
 0x198   : > { %2077 = vmatprep.subr.mxu1 %v5690_v1 }
 0x199   : > { %2078 = vmatpush1.msra.mxu1 %v4824_v36 }
 0x19a   : > { %2079 = vmatprep.subr.mxu1 %v5690_v1 }
 0x19b   : > { %2080 = vmatpush1.msra.mxu1 %v4823_v37 }
 0x19c   : > { %2081 = vmatprep.subr.mxu1 %v5690_v1 }
 0x19d   : > { %2082 = vmatpush1.msra.mxu1 %v4822_v42 }
 0x19e   : > { %2083 = vmatprep.subr.mxu1 %v5690_v1 }
 0x19f   : > { %2084 = vmatpush1.msra.mxu1 %v4821_v38 }
 0x1a0   : > { %2085 = vmatprep.subr.mxu1 %v5690_v1 }
 0x1a1   : > { %2086 = vmatpush1.msra.mxu1 %v4820_v39 }
 0x1a2   : > { %2087 = vmatprep.subr.mxu1 %v5690_v1 }
 0x1a3   : > { %2088 = vmatpush1.msra.mxu1 %v4819_v43 }
 0x1a4   : > { %2089 = vmatprep.subr.mxu1 %v5690_v1 }
 0x1a5   : > { %2090 = vmatpush1.msra.mxu1 %v4818_v45 }
 0x1a6   : > { %2091 = vmatprep.subr.mxu1 %v5690_v1 }
 0x1a7   : > { %2092 = vmatpush1.msra.mxu1 %v4817_v46 }
 0x1a8   : > { %2093 = vmatprep.subr.mxu1 %v5690_v1 }
 0x1a9   : > { %2094 = vmatpush1.msra.mxu1 %v4816_v49 }
 0x1aa   : > { %2095 = vmatprep.subr.mxu1 %v5690_v1 }
 0x1ab   : > { %2096 = vmatpush1.msra.mxu1 %v4815_v33 }
 0x1ac   : > { %2121 = vmatprep.subr.mxu1 %v5690_v1 }
 0x1ad   : > { %2122 = vmatpush2.msra.mxu1 %v4834_v41 }
 0x1ae   : > { %2123 = vmatprep.subr.mxu1 %v5690_v1 }
 0x1af   : > { %2124 = vmatpush2.msra.mxu1 %v4833_v2 }
 0x1b0   : > { %2125 = vmatprep.subr.mxu1 %v5690_v1 }
 0x1b1   : > { %2126 = vmatpush2.msra.mxu1 %v4832_v48 }
 0x1b2   : > { %2127 = vmatprep.subr.mxu1 %v5690_v1 }
 0x1b3   : > { %2128 = vmatpush2.msra.mxu1 %v4831_v7 }
 0x1b4   : > { %3096 = vmatprep.subr.mxu1 %v5690_v1 }
 0x207   : > { %v1436_v51 = vpop.f32.mrf.mxu0 }
 0x208   : > { %v1437_v34 = vadd.f32 %v6386_v50, %v1436_v51 }
 0x209   : > { %v1438_v54 = vpop.f32.mrf.mxu0 }
 0x20a   : > { %v1535_v56 = vmax.f32 %v1437_v34, 0.0 }
 0x20b   : > { %v1441_v61 = vpop.f32.mrf.mxu0 }
 0x20c   : > { %1556 = vst.msk [vmem:[#allocation2 + $0x2] sm:$0xff] %vm330_vm0, %v1535_v56  ;;  %v1442_v62 = vadd.f32 %v6386_v50, %v1441_v61 }
 0x20d   : > { %v1443_v63 = vpop.f32.mrf.mxu0 }
 0x20e   : > { %v1536_v3 = vmax.f32 %v1442_v62, 0.0 }
 0x20f   : > { %v1446_v58 = vpop.f32.mrf.mxu0 }
 0x210   : > { %1557 = vst.msk [vmem:[#allocation2 + $0xa] sm:$0xff] %vm330_vm0, %v1536_v3  ;;  %v1447_v5 = vadd.f32 %v6386_v50, %v1446_v58 }
 0x211   : > { %v1448_v8 = vpop.f32.mrf.mxu0 }
 0x212   : > { %v1537_v6 = vmax.f32 %v1447_v5, 0.0 }
 0x213   : > { %v1451_v10 = vpop.f32.mrf.mxu0  ;;  %v1616_v18 = vld [vmem:[#allocation2 + $0x2] sm:$0xff] }
 0x214   : > { %1558 = vst.msk [vmem:[#allocation2 + $0x12] sm:$0xff] %vm330_vm0, %v1537_v6  ;;  %v1452_v13 = vadd.f32 %v6386_v50, %v1451_v10  ;;  %v1596_v19 = vld [vmem:[#allocation2 + $0x1] sm:$0xff] }
 0x215   : > { %v1453_v15 = vpop.f32.mrf.mxu0 }
 0x216   : > { %v1538_v17 = vmax.f32 %v1452_v13, 0.0 }
 0x217   : > { %v1456_v9 = vpop.f32.mrf.mxu0  ;;  %v1656_v20 = vld [vmem:[#allocation2 + $0x4] sm:$0xff] }
 0x218   : > { %v1617_v59 = vld [vmem:[#allocation2 + $0xa] sm:$0xff]  ;;  %1559 = vst.msk [vmem:[#allocation2 + $0x1a] sm:$0xff] %vm330_vm0, %v1538_v17  ;;  %v1457_v22 = vadd.f32 %v6386_v50, %v1456_v9  ;;  %4837 = vmatprep.mubr.msk.f32.mxu1 %vm330_vm0, %v1656_v20 }
 0x219   : > { %v1597_v16 = vld [vmem:[#allocation2 + $0x9] sm:$0xff]  ;;  %v5313_v57 = vpack.i.bf16 %v1617_v59, %v1616_v18  ;;  %v1458_v28 = vpop.f32.mrf.mxu0 }
 0x21a   : > { %v5308_v60 = vpack.i.bf16 %v1597_v16, %v1596_v19  ;;  %v1539_v32 = vmax.f32 %v1457_v22, 0.0  ;;  %v1636_v36 = vld [vmem:[#allocation2 + $0x3] sm:$0xff] }
 0x21b   : > { %5314 = vrot.lane.b32.xlu0 %v5313_v57, %s5691_s22  ;;  %v1461_v35 = vpop.f32.mrf.mxu0  ;;  %v1637_v37 = vld [vmem:[#allocation2 + $0xb] sm:$0xff] }
 0x21c   : > { %5309 = vrot.lane.b32.xlu1 %v5308_v60, %s5692_s23  ;;  %1560 = vst.msk [vmem:[#allocation2 + $0x22] sm:$0xff] %vm330_vm0, %v1539_v32  ;;  %v1462_v42 = vadd.f32 %v6386_v50, %v1461_v35  ;;  %v5318_v38 = vpack.i.bf16 %v1637_v37, %v1636_v36  ;;  %v1598_v45 = vld [vmem:[#allocation2 + $0x11] sm:$0xff] }
 0x21d   : > { %v1463_v39 = vpop.f32.mrf.mxu0  ;;  %v1618_v33 = vld [vmem:[#allocation2 + $0x12] sm:$0xff] }
 0x21e   : > { %v1540_v43 = vmax.f32 %v1462_v42, 0.0 }
 0x21f   : > { %v1466_v46 = vpop.f32.mrf.mxu0  ;;  %v1599_v49 = vld [vmem:[#allocation2 + $0x19] sm:$0xff] }
 0x220   : > { %5319 = vrot.lane.b32.xlu1 %v5318_v38, %s5693_s28  ;;  %v1619_v51 = vld [vmem:[#allocation2 + $0x1a] sm:$0xff]  ;;  %1561 = vst.msk [vmem:[#allocation2 + $0x2a] sm:$0xff] %vm330_vm0, %v1540_v43  ;;  %v1467_v34 = vadd.f32 %v6386_v50, %v1466_v46  ;;  %v5323_v54 = vpack.i.bf16 %v1599_v49, %v1598_v45 }
 0x221   : > { %v5328_v56 = vpack.i.bf16 %v1619_v51, %v1618_v33  ;;  %v1468_v61 = vpop.f32.mrf.mxu0  ;;  %v1638_v41 = vld [vmem:[#allocation2 + $0x13] sm:$0xff] }
 0x222   : > { %v1541_v62 = vmax.f32 %v1467_v34, 0.0  ;;  %5324 = vrot.lane.b32.xlu0 %v5323_v54, %s5692_s23 }
 0x223   : > { %v1471_v63 = vpop.f32.mrf.mxu0  ;;  %v1639_v2 = vld [vmem:[#allocation2 + $0x1b] sm:$0xff] }
 0x224   : > { %5329 = vrot.lane.b32.xlu1 %v5328_v56, %s5691_s22  ;;  %1562 = vst.msk [vmem:[#allocation2 + $0x32] sm:$0xff] %vm330_vm0, %v1541_v62  ;;  %v1472_v3 = vadd.f32 %v6386_v50, %v1471_v63  ;;  %v5333_v58 = vpack.i.bf16 %v1639_v2, %v1638_v41  ;;  %v1620_v48 = vld [vmem:[#allocation2 + $0x22] sm:$0xff] }
 0x225   : > { %v1473_v5 = vpop.f32.mrf.mxu0  ;;  %v1600_v10 = vld [vmem:[#allocation2 + $0x21] sm:$0xff] }
 0x226   : > { %v1542_v8 = vmax.f32 %v1472_v3, 0.0  ;;  %5334 = vrot.lane.b32.xlu0 %v5333_v58, %s5693_s28 }
 0x227   : > { %v1476_v7 = vpop.f32.mrf.mxu0  ;;  %v1621_v6 = vld [vmem:[#allocation2 + $0x2a] sm:$0xff] }
 0x228   : > { %v1601_v13 = vld [vmem:[#allocation2 + $0x29] sm:$0xff]  ;;  %1563 = vst.msk [vmem:[#allocation2 + $0x3a] sm:$0xff] %vm330_vm0, %v1542_v8  ;;  %v1477_v15 = vadd.f32 %v6386_v50, %v1476_v7  ;;  %v5343_v17 = vpack.i.bf16 %v1621_v6, %v1620_v48 }
 0x229   : > { %v5338_v18 = vpack.i.bf16 %v1601_v13, %v1600_v10  ;;  %v1478_v19 = vpop.f32.mrf.mxu0  ;;  %v1640_v59 = vld [vmem:[#allocation2 + $0x23] sm:$0xff] }
 0x22a   : > { %v1543_v9 = vmax.f32 %v1477_v15, 0.0  ;;  %5344 = vrot.lane.b32.xlu0 %v5343_v17, %s5691_s22 }
 0x22b   : > { %5339 = vrot.lane.b32.xlu1 %v5338_v18, %s5692_s23  ;;  %v1481_v20 = vpop.f32.mrf.mxu0  ;;  %v1641_v16 = vld [vmem:[#allocation2 + $0x2b] sm:$0xff] }
 0x22c   : > { %1564 = vst.msk [vmem:[#allocation2 + $0x42] sm:$0xff] %vm330_vm0, %v1543_v9  ;;  %v1482_v22 = vadd.f32 %v6386_v50, %v1481_v20  ;;  %v5348_v57 = vpack.i.bf16 %v1641_v16, %v1640_v59  ;;  %v1602_v32 = vld [vmem:[#allocation2 + $0x31] sm:$0xff] }
 0x22d   : > { %v1483_v60 = vpop.f32.mrf.mxu0  ;;  %v1622_v37 = vld [vmem:[#allocation2 + $0x32] sm:$0xff] }
 0x22e   : > { %v1544_v28 = vmax.f32 %v1482_v22, 0.0 }
 0x22f   : > { %5349 = vrot.lane.b32.xlu1 %v5348_v57, %s5693_s28  ;;  %v1486_v35 = vpop.f32.mrf.mxu0  ;;  %v1603_v36 = vld [vmem:[#allocation2 + $0x39] sm:$0xff] }
 0x230   : > { %v1623_v42 = vld [vmem:[#allocation2 + $0x3a] sm:$0xff]  ;;  %1565 = vst.msk [vmem:[#allocation2 + $0x4a] sm:$0xff] %vm330_vm0, %v1544_v28  ;;  %v1487_v38 = vadd.f32 %v6386_v50, %v1486_v35  ;;  %v5353_v39 = vpack.i.bf16 %v1603_v36, %v1602_v32 }
 0x231   : > { %v5358_v43 = vpack.i.bf16 %v1623_v42, %v1622_v37  ;;  %v1488_v45 = vpop.f32.mrf.mxu0  ;;  %v1642_v33 = vld [vmem:[#allocation2 + $0x33] sm:$0xff] }
 0x232   : > { %v1545_v46 = vmax.f32 %v1487_v38, 0.0  ;;  %5354 = vrot.lane.b32.xlu0 %v5353_v39, %s5692_s23 }
 0x233   : > { %5359 = vrot.lane.b32.xlu1 %v5358_v43, %s5691_s22  ;;  %v1491_v49 = vpop.f32.mrf.mxu0  ;;  %v1643_v51 = vld [vmem:[#allocation2 + $0x3b] sm:$0xff] }
 0x234   : > { %1566 = vst.msk [vmem:[#allocation2 + $0x52] sm:$0xff] %vm330_vm0, %v1545_v46  ;;  %v1492_v34 = vadd.f32 %v6386_v50, %v1491_v49  ;;  %v5363_v54 = vpack.i.bf16 %v1643_v51, %v1642_v33  ;;  %v1624_v62 = vld [vmem:[#allocation2 + $0x42] sm:$0xff] }
 0x235   : > { %v1493_v56 = vpop.f32.mrf.mxu0  ;;  %v1604_v2 = vld [vmem:[#allocation2 + $0x41] sm:$0xff] }
 0x236   : > { %v1546_v61 = vmax.f32 %v1492_v34, 0.0  ;;  %5364 = vrot.lane.b32.xlu0 %v5363_v54, %s5693_s28 }
 0x237   : > { %v1496_v63 = vpop.f32.mrf.mxu0  ;;  %v1625_v41 = vld [vmem:[#allocation2 + $0x4a] sm:$0xff] }
 0x238   : > { %v1605_v3 = vld [vmem:[#allocation2 + $0x49] sm:$0xff]  ;;  %1567 = vst.msk [vmem:[#allocation2 + $0x5a] sm:$0xff] %vm330_vm0, %v1546_v61  ;;  %v1497_v58 = vadd.f32 %v6386_v50, %v1496_v63  ;;  %v5373_v5 = vpack.i.bf16 %v1625_v41, %v1624_v62 }
 0x239   : > { %v5368_v8 = vpack.i.bf16 %v1605_v3, %v1604_v2  ;;  %v1498_v48 = vpop.f32.mrf.mxu0  ;;  %v1644_v10 = vld [vmem:[#allocation2 + $0x43] sm:$0xff] }
 0x23a   : > { %v1547_v7 = vmax.f32 %v1497_v58, 0.0  ;;  %5374 = vrot.lane.b32.xlu0 %v5373_v5, %s5691_s22 }
 0x23b   : > { %5369 = vrot.lane.b32.xlu1 %v5368_v8, %s5692_s23  ;;  %v1501_v6 = vpop.f32.mrf.mxu0  ;;  %v1645_v13 = vld [vmem:[#allocation2 + $0x4b] sm:$0xff] }
 0x23c   : > { %1568 = vst.msk [vmem:[#allocation2 + $0x62] sm:$0xff] %vm330_vm0, %v1547_v7  ;;  %v1502_v15 = vadd.f32 %v6386_v50, %v1501_v6  ;;  %v5378_v17 = vpack.i.bf16 %v1645_v13, %v1644_v10  ;;  %v1606_v9 = vld [vmem:[#allocation2 + $0x51] sm:$0xff] }
 0x23d   : > { %v1503_v18 = vpop.f32.mrf.mxu0  ;;  %v1626_v16 = vld [vmem:[#allocation2 + $0x52] sm:$0xff] }
 0x23e   : > { %v1548_v19 = vmax.f32 %v1502_v15, 0.0 }
 0x23f   : > { %5379 = vrot.lane.b32.xlu1 %v5378_v17, %s5693_s28  ;;  %v1506_v20 = vpop.f32.mrf.mxu0  ;;  %v1607_v59 = vld [vmem:[#allocation2 + $0x59] sm:$0xff] }
 0x240   : > { %v1627_v22 = vld [vmem:[#allocation2 + $0x5a] sm:$0xff]  ;;  %1569 = vst.msk [vmem:[#allocation2 + $0x6a] sm:$0xff] %vm330_vm0, %v1548_v19  ;;  %v1507_v57 = vadd.f32 %v6386_v50, %v1506_v20  ;;  %v5383_v60 = vpack.i.bf16 %v1607_v59, %v1606_v9 }
 0x241   : > { %v5388_v28 = vpack.i.bf16 %v1627_v22, %v1626_v16  ;;  %v1508_v32 = vpop.f32.mrf.mxu0  ;;  %v1646_v37 = vld [vmem:[#allocation2 + $0x53] sm:$0xff] }
 0x242   : > { %v1549_v35 = vmax.f32 %v1507_v57, 0.0  ;;  %5384 = vrot.lane.b32.xlu0 %v5383_v60, %s5692_s23 }
 0x243   : > { %5389 = vrot.lane.b32.xlu1 %v5388_v28, %s5691_s22  ;;  %v1511_v36 = vpop.f32.mrf.mxu0  ;;  %v1647_v42 = vld [vmem:[#allocation2 + $0x5b] sm:$0xff] }
 0x244   : > { %1570 = vst.msk [vmem:[#allocation2 + $0x72] sm:$0xff] %vm330_vm0, %v1549_v35  ;;  %v1512_v38 = vadd.f32 %v6386_v50, %v1511_v36  ;;  %v5393_v39 = vpack.i.bf16 %v1647_v42, %v1646_v37  ;;  %v1628_v46 = vld [vmem:[#allocation2 + $0x62] sm:$0xff] }
 0x245   : > { %v1513_v43 = vpop.f32.mrf.mxu0  ;;  %v1608_v51 = vld [vmem:[#allocation2 + $0x61] sm:$0xff] }
 0x246   : > { %v1550_v45 = vmax.f32 %v1512_v38, 0.0  ;;  %5394 = vrot.lane.b32.xlu0 %v5393_v39, %s5693_s28 }
 0x247   : > { %v1516_v49 = vpop.f32.mrf.mxu0  ;;  %v1629_v33 = vld [vmem:[#allocation2 + $0x6a] sm:$0xff] }
 0x248   : > { %v1609_v34 = vld [vmem:[#allocation2 + $0x69] sm:$0xff]  ;;  %1571 = vst.msk [vmem:[#allocation2 + $0x7a] sm:$0xff] %vm330_vm0, %v1550_v45  ;;  %v1517_v54 = vadd.f32 %v6386_v50, %v1516_v49  ;;  %v5403_v56 = vpack.i.bf16 %v1629_v33, %v1628_v46 }
 0x249   : > { %v5398_v61 = vpack.i.bf16 %v1609_v34, %v1608_v51  ;;  %v1518_v62 = vpop.f32.mrf.mxu0  ;;  %v1648_v2 = vld [vmem:[#allocation2 + $0x63] sm:$0xff] }
 0x24a   : > { %v1551_v63 = vmax.f32 %v1517_v54, 0.0  ;;  %5404 = vrot.lane.b32.xlu0 %v5403_v56, %s5691_s22 }
 0x24b   : > { %5399 = vrot.lane.b32.xlu1 %v5398_v61, %s5692_s23  ;;  %v1521_v41 = vpop.f32.mrf.mxu0  ;;  %v1649_v3 = vld [vmem:[#allocation2 + $0x6b] sm:$0xff] }
 0x24c   : > { %1572 = vst.msk [vmem:[#allocation2 + $0x82] sm:$0xff] %vm330_vm0, %v1551_v63  ;;  %v1522_v58 = vadd.f32 %v6386_v50, %v1521_v41  ;;  %v5408_v5 = vpack.i.bf16 %v1649_v3, %v1648_v2  ;;  %v1610_v7 = vld [vmem:[#allocation2 + $0x71] sm:$0xff]  ;;  %v1576_v41 = vld [vmem:[#allocation2] sm:$0xff] }
 0x24d   : > { %v1523_v8 = vpop.f32.mrf.mxu0  ;;  %v1630_v13 = vld [vmem:[#allocation2 + $0x72] sm:$0xff] }
 0x24e   : > { %v1552_v48 = vmax.f32 %v1522_v58, 0.0 }
 0x24f   : > { %5409 = vrot.lane.b32.xlu1 %v5408_v5, %s5693_s28  ;;  %v1526_v6 = vpop.f32.mrf.mxu0  ;;  %v1611_v10 = vld [vmem:[#allocation2 + $0x79] sm:$0xff] }
 0x250   : > { %v1631_v15 = vld [vmem:[#allocation2 + $0x7a] sm:$0xff]  ;;  %1573 = vst.msk [vmem:[#allocation2 + $0x8a] sm:$0xff] %vm330_vm0, %v1552_v48  ;;  %v1527_v17 = vadd.f32 %v6386_v50, %v1526_v6  ;;  %v5413_v18 = vpack.i.bf16 %v1611_v10, %v1610_v7  ;;  %v1577_v7 = vld [vmem:[#allocation2 + $0x8] sm:$0xff] }
 0x251   : > { %v5418_v19 = vpack.i.bf16 %v1631_v15, %v1630_v13  ;;  %v1528_v9 = vpop.f32.mrf.mxu0  ;;  %v1650_v16 = vld [vmem:[#allocation2 + $0x73] sm:$0xff] }
 0x252   : > { %v1553_v20 = vmax.f32 %v1527_v17, 0.0  ;;  %5414 = vrot.lane.b32.xlu0 %v5413_v18, %s5692_s23  ;;  %v1657_v18 = vld [vmem:[#allocation2 + $0xc] sm:$0xff] }
 0x253   : > { %5419 = vrot.lane.b32.xlu1 %v5418_v19, %s5691_s22  ;;  %v1531_v59 = vpop.f32.mrf.mxu0  ;;  %v1651_v22 = vld [vmem:[#allocation2 + $0x7b] sm:$0xff] }
 0x254   : > { %1574 = vst.msk [vmem:[#allocation2 + $0x92] sm:$0xff] %vm330_vm0, %v1553_v20  ;;  %v1532_v57 = vadd.f32 %v6386_v50, %v1531_v59  ;;  %v5423_v60 = vpack.i.bf16 %v1651_v22, %v1650_v16  ;;  %v1632_v35 = vld [vmem:[#allocation2 + $0x82] sm:$0xff]  ;;  %v1578_v59 = vld [vmem:[#allocation2 + $0x10] sm:$0xff] }
 0x255   : > { %v1533_v28 = vpop.f32.mrf.mxu0  ;;  %v1612_v37 = vld [vmem:[#allocation2 + $0x81] sm:$0xff] }
 0x256   : > { %v1554_v32 = vmax.f32 %v1532_v57, 0.0  ;;  %5424 = vrot.lane.b32.xlu0 %v5423_v60, %s5693_s28  ;;  %v1658_v28 = vld [vmem:[#allocation2 + $0x14] sm:$0xff] }
 0x257   : > { %v1633_v36 = vld [vmem:[#allocation2 + $0x8a] sm:$0xff] }
 0x258   : > { %v1613_v42 = vld [vmem:[#allocation2 + $0x89] sm:$0xff]  ;;  %1575 = vst.msk [vmem:[#allocation2 + $0x9a] sm:$0xff] %vm330_vm0, %v1554_v32  ;;  %v5433_v38 = vpack.i.bf16 %v1633_v36, %v1632_v35 }
 0x259   : > { %v5428_v39 = vpack.i.bf16 %v1613_v42, %v1612_v37  ;;  %v1652_v43 = vld [vmem:[#allocation2 + $0x83] sm:$0xff]  ;;  %v1579_v37 = vld [vmem:[#allocation2 + $0x18] sm:$0xff] }
 0x25a   : > { %5434 = vrot.lane.b32.xlu0 %v5433_v38, %s5691_s22 }
 0x25b   : > { %5429 = vrot.lane.b32.xlu1 %v5428_v39, %s5692_s23  ;;  %v1653_v45 = vld [vmem:[#allocation2 + $0x8b] sm:$0xff] }
 0x25c   : > { %v5438_v50 = vpack.i.bf16 %v1653_v45, %v1652_v43  ;;  %v1614_v46 = vld [vmem:[#allocation2 + $0x91] sm:$0xff] }
 0x25d   : > { %v1634_v33 = vld [vmem:[#allocation2 + $0x92] sm:$0xff] }
 0x25e   : > { %1732 = vrot.lane.b32.xlu0 %v1614_v46, %s5692_s23 }
 0x25f   : > { %5439 = vrot.lane.b32.xlu1 %v5438_v50, %s5693_s28  ;;  %v1654_v49 = vld [vmem:[#allocation2 + $0x93] sm:$0xff]  ;;  %v1655_v54 = vld [vmem:[#allocation2 + $0x9b] sm:$0xff] }
 0x260   : > { %v1635_v51 = vld [vmem:[#allocation2 + $0x9a] sm:$0xff] }
 0x261   : > { %v1615_v34 = vld [vmem:[#allocation2 + $0x99] sm:$0xff] }
 0x262   : > { %1892 = vrot.lane.b32.xlu0 %v1654_v49, %s5693_s28  ;;  %v1659_v50 = vld [vmem:[#allocation2 + $0x1c] sm:$0xff] }
 0x263   : > { %1812 = vrot.lane.b32.xlu1 %v1634_v33, %s5691_s22 }
 0x266   : > { %1814 = vrot.lane.b32.xlu0 %v1635_v51, %s5691_s22  ;;  %v1580_v51 = vld [vmem:[#allocation2 + $0x20] sm:$0xff] }
 0x267   : > { %1734 = vrot.lane.b32.xlu1 %v1615_v34, %s5692_s23 }
 0x26b   : > { %1894 = vrot.lane.b32.xlu1 %v1655_v54, %s5693_s28 }
 0x28d   : > { %v5315_v56 = vpop.permute.xlu0 %5314 }
 0x28e   : > { %v5310_v61 = vpop.permute.xlu1 %5309  ;;  %v5316_v63 = vunpack.i.l.bf16 %v5315_v56  ;;  %v5317_v8 = vunpack.i.h.bf16 %v5315_v56 }
 0x28f   : > { %v5311_v62 = vunpack.i.l.bf16 %v5310_v61  ;;  %v5312_v2 = vunpack.i.h.bf16 %v5310_v61 }
 0x291   : > { %v1916_v3 = vsel %vm330_vm0, %v1576_v41, %v5311_v62  ;;  %v1917_v13 = vsel %vm330_vm0, %v1577_v7, %v5312_v2  ;;  %v1660_v62 = vld [vmem:[#allocation2 + $0x24] sm:$0xff] }
 0x292   : > { %v5320_v58 = vpop.permute.xlu1 %5319  ;;  %v1936_v48 = vsel %vm1241_vm3, %v1916_v3, %v5316_v63  ;;  %v1937_v20 = vsel %vm1241_vm3, %v1917_v13, %v5317_v8  ;;  %v1581_v3 = vld [vmem:[#allocation2 + $0x28] sm:$0xff] }
 0x293   : > { %v5321_v5 = vunpack.i.l.bf16 %v5320_v58  ;;  %v5322_v6 = vunpack.i.h.bf16 %v5320_v58 }
 0x294   : > { %v5325_v15 = vpop.permute.xlu0 %5324 }
 0x295   : > { %v1956_v10 = vsel %vm1262_vm4, %v1936_v48, %v5321_v5  ;;  %v5326_v19 = vunpack.i.l.bf16 %v5325_v15  ;;  %v5327_v16 = vunpack.i.h.bf16 %v5325_v15  ;;  %v1957_v22 = vsel %vm1262_vm4, %v1937_v20, %v5322_v6  ;;  %v1661_v6 = vld [vmem:[#allocation2 + $0x2c] sm:$0xff] }
 0x296   : > { %v5330_v17 = vpop.permute.xlu1 %5329  ;;  %2130 = vmatmul.mubr.f32.vlgmr.msra.gmra.mxu1 %v1956_v10 }
 0x297   : > { %4838 = vmatprep.mubr.msk.f32.mxu1 %vm330_vm0, %v1657_v18  ;;  %v5331_v9 = vunpack.i.l.bf16 %v5330_v17  ;;  %v1918_v57 = vsel %vm330_vm0, %v1578_v59, %v5326_v19  ;;  %v5332_v35 = vunpack.i.h.bf16 %v5330_v17  ;;  %v1919_v39 = vsel %vm330_vm0, %v1579_v37, %v5327_v16  ;;  %v1582_v17 = vld [vmem:[#allocation2 + $0x30] sm:$0xff] }
 0x298   : > { %v5335_v60 = vpop.permute.xlu0 %5334  ;;  %v1662_v59 = vld [vmem:[#allocation2 + $0x34] sm:$0xff] }
 0x299   : > { %v5336_v32 = vunpack.i.l.bf16 %v5335_v60  ;;  %v1938_v36 = vsel %vm1241_vm3, %v1918_v57, %v5331_v9  ;;  %v5337_v42 = vunpack.i.h.bf16 %v5335_v60  ;;  %v1939_v33 = vsel %vm1241_vm3, %v1919_v39, %v5332_v35  ;;  %v1583_v60 = vld [vmem:[#allocation2 + $0x38] sm:$0xff] }
 0x29a   : > { %2135 = vmatmul.mubr.f32.gmra.mxu1 %v1957_v22 }
 0x29b   : > { %4839 = vmatprep.mubr.msk.f32.mxu1 %vm330_vm0, %v1658_v28  ;;  %v1958_v38 = vsel %vm1262_vm4, %v1938_v36, %v5336_v32  ;;  %v1959_v54 = vsel %vm1262_vm4, %v1939_v33, %v5337_v42  ;;  %v1663_v42 = vld [vmem:[#allocation2 + $0x3c] sm:$0xff] }
 0x29c   : > { %v5345_v43 = vpop.permute.xlu0 %5344 }
 0x29d   : > { %v5340_v45 = vpop.permute.xlu1 %5339  ;;  %v5346_v49 = vunpack.i.l.bf16 %v5345_v43  ;;  %v5347_v41 = vunpack.i.h.bf16 %v5345_v43 }
 0x29e   : > { %2140 = vmatmul.mubr.f32.gmra.mxu1 %v1958_v38  ;;  %v5341_v46 = vunpack.i.l.bf16 %v5340_v45  ;;  %v5342_v34 = vunpack.i.h.bf16 %v5340_v45  ;;  %v1584_v45 = vld [vmem:[#allocation2 + $0x40] sm:$0xff] }
 0x29f   : > { %4840 = vmatprep.mubr.msk.f32.mxu1 %vm330_vm0, %v1659_v50 }
 0x2a0   : > { %v1920_v56 = vsel %vm330_vm0, %v1580_v51, %v5341_v46  ;;  %v1921_v8 = vsel %vm330_vm0, %v1581_v3, %v5342_v34  ;;  %v1664_v51 = vld [vmem:[#allocation2 + $0x44] sm:$0xff] }
 0x2a1   : > { %v5350_v61 = vpop.permute.xlu1 %5349  ;;  %v1940_v2 = vsel %vm1241_vm3, %v1920_v56, %v5346_v49  ;;  %v1941_v15 = vsel %vm1241_vm3, %v1921_v8, %v5347_v41 }
 0x2a2   : > { %2145 = vmatmul.mubr.f32.gmra.mxu1 %v1959_v54  ;;  %v5351_v63 = vunpack.i.l.bf16 %v5350_v61  ;;  %v5352_v58 = vunpack.i.h.bf16 %v5350_v61  ;;  %v1585_v61 = vld [vmem:[#allocation2 + $0x48] sm:$0xff] }
 0x2a3   : > { %4841 = vmatprep.mubr.msk.f32.mxu1 %vm330_vm0, %v1660_v62 }
 0x2a4   : > { %v1960_v5 = vsel %vm1262_vm4, %v1940_v2, %v5351_v63  ;;  %v5355_v48 = vpop.permute.xlu0 %5354  ;;  %v1961_v19 = vsel %vm1262_vm4, %v1941_v15, %v5352_v58  ;;  %v1665_v58 = vld [vmem:[#allocation2 + $0x4c] sm:$0xff] }
 0x2a5   : > { %v5360_v7 = vpop.permute.xlu1 %5359  ;;  %v5356_v10 = vunpack.i.l.bf16 %v5355_v48  ;;  %v5357_v18 = vunpack.i.h.bf16 %v5355_v48 }
 0x2a6   : > { %2150 = vmatmul.mubr.f32.gmra.mxu1 %v1960_v5  ;;  %v5361_v13 = vunpack.i.l.bf16 %v5360_v7  ;;  %v5362_v22 = vunpack.i.h.bf16 %v5360_v7  ;;  %v1586_v7 = vld [vmem:[#allocation2 + $0x50] sm:$0xff] }
 0x2a7   : > { %4842 = vmatprep.mubr.msk.f32.mxu1 %vm330_vm0, %v1661_v6  ;;  %v1922_v9 = vsel %vm330_vm0, %v1582_v17, %v5356_v10  ;;  %v1923_v35 = vsel %vm330_vm0, %v1583_v60, %v5357_v18  ;;  %v1666_v17 = vld [vmem:[#allocation2 + $0x54] sm:$0xff] }
 0x2a8   : > { %v5365_v20 = vpop.permute.xlu0 %5364  ;;  %v1942_v57 = vsel %vm1241_vm3, %v1922_v9, %v5361_v13  ;;  %v1943_v43 = vsel %vm1241_vm3, %v1923_v35, %v5362_v22 }
 0x2a9   : > { %v5366_v16 = vunpack.i.l.bf16 %v5365_v20  ;;  %v5367_v28 = vunpack.i.h.bf16 %v5365_v20  ;;  %v1587_v20 = vld [vmem:[#allocation2 + $0x58] sm:$0xff] }
 0x2aa   : > { %2155 = vmatmul.mubr.f32.gmra.mxu1 %v1961_v19 }
 0x2ab   : > { %4843 = vmatprep.mubr.msk.f32.mxu1 %vm330_vm0, %v1662_v59  ;;  %v1962_v32 = vsel %vm1262_vm4, %v1942_v57, %v5366_v16  ;;  %v1963_v46 = vsel %vm1262_vm4, %v1943_v43, %v5367_v28  ;;  %v1667_v28 = vld [vmem:[#allocation2 + $0x5c] sm:$0xff] }
 0x2ac   : > { %v5375_v36 = vpop.permute.xlu0 %5374 }
 0x2ad   : > { %v5370_v37 = vpop.permute.xlu1 %5369  ;;  %v5376_v39 = vunpack.i.l.bf16 %v5375_v36  ;;  %v5377_v54 = vunpack.i.h.bf16 %v5375_v36 }
 0x2ae   : > { %2160 = vmatmul.mubr.f32.gmra.mxu1 %v1962_v32  ;;  %v5371_v38 = vunpack.i.l.bf16 %v5370_v37  ;;  %v5372_v50 = vunpack.i.h.bf16 %v5370_v37  ;;  %v1588_v37 = vld [vmem:[#allocation2 + $0x60] sm:$0xff] }
 0x2af   : > { %4844 = vmatprep.mubr.msk.f32.mxu1 %vm330_vm0, %v1663_v42 }
 0x2b0   : > { %v1924_v49 = vsel %vm330_vm0, %v1584_v45, %v5371_v38  ;;  %v1925_v41 = vsel %vm330_vm0, %v1585_v61, %v5372_v50  ;;  %v1668_v45 = vld [vmem:[#allocation2 + $0x64] sm:$0xff] }
 0x2b1   : > { %v5380_v33 = vpop.permute.xlu1 %5379  ;;  %v1944_v56 = vsel %vm1241_vm3, %v1924_v49, %v5376_v39  ;;  %v1945_v48 = vsel %vm1241_vm3, %v1925_v41, %v5377_v54 }
 0x2b2   : > { %2165 = vmatmul.mubr.f32.gmra.mxu1 %v1963_v46  ;;  %v5381_v34 = vunpack.i.l.bf16 %v5380_v33  ;;  %v5382_v62 = vunpack.i.h.bf16 %v5380_v33  ;;  %v1589_v33 = vld [vmem:[#allocation2 + $0x68] sm:$0xff] }
 0x2b3   : > { %4845 = vmatprep.mubr.msk.f32.mxu1 %vm330_vm0, %v1664_v51 }
 0x2b4   : > { %v1964_v63 = vsel %vm1262_vm4, %v1944_v56, %v5381_v34  ;;  %v5385_v2 = vpop.permute.xlu0 %5384  ;;  %v1965_v10 = vsel %vm1262_vm4, %v1945_v48, %v5382_v62  ;;  %v1669_v62 = vld [vmem:[#allocation2 + $0x6c] sm:$0xff] }
 0x2b5   : > { %v5390_v3 = vpop.permute.xlu1 %5389  ;;  %v5386_v5 = vunpack.i.l.bf16 %v5385_v2  ;;  %v5387_v6 = vunpack.i.h.bf16 %v5385_v2 }
 0x2b6   : > { %2170 = vmatmul.mubr.f32.gmra.mxu1 %v1964_v63  ;;  %v5391_v8 = vunpack.i.l.bf16 %v5390_v3  ;;  %v5392_v19 = vunpack.i.h.bf16 %v5390_v3  ;;  %v1590_v3 = vld [vmem:[#allocation2 + $0x70] sm:$0xff] }
 0x2b7   : > { %4846 = vmatprep.mubr.msk.f32.mxu1 %vm330_vm0, %v1665_v58  ;;  %v1926_v13 = vsel %vm330_vm0, %v1586_v7, %v5386_v5  ;;  %v1927_v22 = vsel %vm330_vm0, %v1587_v20, %v5387_v6  ;;  %v1670_v7 = vld [vmem:[#allocation2 + $0x74] sm:$0xff] }
 0x2b8   : > { %v5395_v15 = vpop.permute.xlu0 %5394  ;;  %v1946_v9 = vsel %vm1241_vm3, %v1926_v13, %v5391_v8  ;;  %v1947_v36 = vsel %vm1241_vm3, %v1927_v22, %v5392_v19 }
 0x2b9   : > { %v5396_v18 = vunpack.i.l.bf16 %v5395_v15  ;;  %v5397_v59 = vunpack.i.h.bf16 %v5395_v15  ;;  %v1591_v15 = vld [vmem:[#allocation2 + $0x78] sm:$0xff] }
 0x2ba   : > { %2175 = vmatmul.mubr.f32.gmra.mxu1 %v1965_v10 }
 0x2bb   : > { %4847 = vmatprep.mubr.msk.f32.mxu1 %vm330_vm0, %v1666_v17  ;;  %v1966_v16 = vsel %vm1262_vm4, %v1946_v9, %v5396_v18  ;;  %v1967_v38 = vsel %vm1262_vm4, %v1947_v36, %v5397_v59  ;;  %v1671_v59 = vld [vmem:[#allocation2 + $0x7c] sm:$0xff] }
 0x2bc   : > { %v5405_v57 = vpop.permute.xlu0 %5404 }
 0x2bd   : > { %v5400_v60 = vpop.permute.xlu1 %5399  ;;  %v5406_v35 = vunpack.i.l.bf16 %v5405_v57  ;;  %v5407_v46 = vunpack.i.h.bf16 %v5405_v57 }
 0x2be   : > { %2180 = vmatmul.mubr.f32.gmra.mxu1 %v1966_v16  ;;  %v5401_v32 = vunpack.i.l.bf16 %v5400_v60  ;;  %v5402_v42 = vunpack.i.h.bf16 %v5400_v60  ;;  %v1592_v60 = vld [vmem:[#allocation2 + $0x80] sm:$0xff] }
 0x2bf   : > { %4848 = vmatprep.mubr.msk.f32.mxu1 %vm330_vm0, %v1667_v28 }
 0x2c0   : > { %v1928_v39 = vsel %vm330_vm0, %v1588_v37, %v5401_v32  ;;  %v1929_v54 = vsel %vm330_vm0, %v1589_v33, %v5402_v42  ;;  %v1672_v42 = vld [vmem:[#allocation2 + $0x84] sm:$0xff] }
 0x2c1   : > { %v5410_v43 = vpop.permute.xlu1 %5409  ;;  %v1948_v49 = vsel %vm1241_vm3, %v1928_v39, %v5406_v35  ;;  %v1949_v2 = vsel %vm1241_vm3, %v1929_v54, %v5407_v46  ;;  %v1594_v54 = vld [vmem:[#allocation2 + $0x90] sm:$0xff] }
 0x2c2   : > { %2185 = vmatmul.mubr.f32.gmra.mxu1 %v1967_v38  ;;  %v5411_v50 = vunpack.i.l.bf16 %v5410_v43  ;;  %v5412_v51 = vunpack.i.h.bf16 %v5410_v43 }
 0x2c3   : > { %4849 = vmatprep.mubr.msk.f32.mxu1 %vm330_vm0, %v1668_v45  ;;  %v1593_v45 = vld [vmem:[#allocation2 + $0x88] sm:$0xff] }
 0x2c4   : > { %v1968_v34 = vsel %vm1262_vm4, %v1948_v49, %v5411_v50  ;;  %v5415_v56 = vpop.permute.xlu0 %5414  ;;  %v1969_v5 = vsel %vm1262_vm4, %v1949_v2, %v5412_v51  ;;  %v1673_v51 = vld [vmem:[#allocation2 + $0x8c] sm:$0xff]  ;;  %v1674_v2 = vld [vmem:[#allocation2 + $0x94] sm:$0xff] }
 0x2c5   : > { %v5420_v61 = vpop.permute.xlu1 %5419  ;;  %v5416_v63 = vunpack.i.l.bf16 %v5415_v56  ;;  %v5417_v58 = vunpack.i.h.bf16 %v5415_v56 }
 0x2c6   : > { %2190 = vmatmul.mubr.f32.gmra.mxu1 %v1968_v34  ;;  %v5421_v41 = vunpack.i.l.bf16 %v5420_v61  ;;  %v5422_v10 = vunpack.i.h.bf16 %v5420_v61 }
 0x2c7   : > { %4850 = vmatprep.mubr.msk.f32.mxu1 %vm330_vm0, %v1669_v62  ;;  %v1930_v8 = vsel %vm330_vm0, %v1590_v3, %v5416_v63  ;;  %v1931_v19 = vsel %vm330_vm0, %v1591_v15, %v5417_v58  ;;  %v1595_v3 = vld [vmem:[#allocation2 + $0x98] sm:$0xff]  ;;  %v4871_v15 = vld [vmem:[%s7799_s3 + $0x1b0] sm:$0xff] }
 0x2c8   : > { %v5425_v48 = vpop.permute.xlu0 %5424  ;;  %v1950_v13 = vsel %vm1241_vm3, %v1930_v8, %v5421_v41  ;;  %v1951_v57 = vsel %vm1241_vm3, %v1931_v19, %v5422_v10  ;;  %v4868_v19 = vld [vmem:[%s7799_s3 + $0x198] sm:$0xff] }
 0x2c9   : > { %v5426_v6 = vunpack.i.l.bf16 %v5425_v48  ;;  %v5427_v17 = vunpack.i.h.bf16 %v5425_v48 }
 0x2ca   : > { %2195 = vmatmul.mubr.f32.gmra.mxu1 %v1969_v5 }
 0x2cb   : > { %4851 = vmatprep.mubr.msk.f32.mxu1 %vm330_vm0, %v1670_v7  ;;  %v1970_v18 = vsel %vm1262_vm4, %v1950_v13, %v5426_v6  ;;  %v1971_v32 = vsel %vm1262_vm4, %v1951_v57, %v5427_v17  ;;  %v1675_v7 = vld [vmem:[#allocation2 + $0x9c] sm:$0xff]  ;;  %v4870_v17 = vld [vmem:[%s7799_s3 + $0x1a8] sm:$0xff] }
 0x2cc   : > { %v5435_v9 = vpop.permute.xlu0 %5434  ;;  %v4872_v13 = vld [vmem:[%s7799_s3 + $0x1b8] sm:$0xff] }
 0x2cd   : > { %v5430_v20 = vpop.permute.xlu1 %5429  ;;  %v5436_v22 = vunpack.i.l.bf16 %v5435_v9  ;;  %v5437_v39 = vunpack.i.h.bf16 %v5435_v9  ;;  %2702 = vmatpush1.msra.mxu0 %v4872_v13  ;;  %v4867_v9 = vld [vmem:[%s7799_s3 + $0x190] sm:$0xff] }
 0x2ce   : > { %2200 = vmatmul.mubr.f32.gmra.mxu1 %v1970_v18  ;;  %v5431_v16 = vunpack.i.l.bf16 %v5430_v20  ;;  %v5432_v28 = vunpack.i.h.bf16 %v5430_v20  ;;  %2703 = vmatprep.subr.mxu0 %v5690_v1  ;;  %v4869_v18 = vld [vmem:[%s7799_s3 + $0x1a0] sm:$0xff]  ;;  %v4866_v20 = vld [vmem:[%s7799_s3 + $0x188] sm:$0xff] }
 0x2cf   : > { %4852 = vmatprep.mubr.msk.f32.mxu1 %vm330_vm0, %v1671_v59  ;;  %2704 = vmatpush1.msra.mxu0 %v4871_v15  ;;  %v6592_v59 = vld [vmem:[%s7800_s4 + $0x1] ss:$0 sm:$0xff] }
 0x2d0   : > { %v1932_v35 = vsel %vm330_vm0, %v1592_v60, %v5431_v16  ;;  %v1733_v36 = vpop.permute.xlu0 %1732  ;;  %v1933_v49 = vsel %vm330_vm0, %v1593_v45, %v5432_v28  ;;  %2705 = vmatprep.subr.mxu0 %v5690_v1  ;;  %v4865_v16 = vld [vmem:[%s7799_s3 + $0x180] sm:$0xff]  ;;  %v4864_v60 = vld [vmem:[%s7799_s3 + $0x178] sm:$0xff] }
 0x2d1   : > { %v5440_v37 = vpop.permute.xlu1 %5439  ;;  %v1952_v43 = vsel %vm1241_vm3, %v1932_v35, %v5436_v22  ;;  %v1953_v56 = vsel %vm1241_vm3, %v1933_v49, %v5437_v39  ;;  %v1934_v61 = vsel %vm330_vm0, %v1594_v54, %v1733_v36  ;;  %2706 = vmatpush1.msra.mxu0 %v4870_v17  ;;  %v4863_v35 = vld [vmem:[%s7799_s3 + $0x170] sm:$0xff]  ;;  %v4860_v49 = vld [vmem:[%s7799_s3 + $0x158] sm:$0xff] }
 0x2d2   : > { %2205 = vmatmul.mubr.f32.gmra.mxu1 %v1971_v32  ;;  %v5441_v38 = vunpack.i.l.bf16 %v5440_v37  ;;  %v5442_v50 = vunpack.i.h.bf16 %v5440_v37  ;;  %2707 = vmatprep.subr.mxu0 %v5690_v1 }
 0x2d3   : > { %4853 = vmatprep.mubr.msk.f32.mxu1 %vm330_vm0, %v1672_v42  ;;  %2708 = vmatpush1.msra.mxu0 %v4869_v18 }
 0x2d4   : > { %v1972_v46 = vsel %vm1262_vm4, %v1952_v43, %v5441_v38  ;;  %v1893_v34 = vpop.permute.xlu0 %1892  ;;  %v1973_v62 = vsel %vm1262_vm4, %v1953_v56, %v5442_v50  ;;  %2709 = vmatprep.subr.mxu0 %v5690_v1  ;;  %v4862_v38 = vld [vmem:[%s7799_s3 + $0x168] sm:$0xff]  ;;  %v4861_v43 = vld [vmem:[%s7799_s3 + $0x160] sm:$0xff] }
 0x2d5   : > { %v1813_v33 = vpop.permute.xlu1 %1812  ;;  %2710 = vmatpush1.msra.mxu0 %v4868_v19 }
 0x2d6   : > { %2210 = vmatmul.mubr.f32.gmra.mxu1 %v1972_v46  ;;  %v1954_v63 = vsel %vm1241_vm3, %v1934_v61, %v1813_v33  ;;  %2711 = vmatprep.subr.mxu0 %v5690_v1 }
 0x2d7   : > { %4854 = vmatprep.mubr.msk.f32.mxu1 %vm330_vm0, %v1673_v51  ;;  %v1974_v8 = vsel %vm1262_vm4, %v1954_v63, %v1893_v34  ;;  %2712 = vmatpush1.msra.mxu0 %v4867_v9  ;;  %v4859_v51 = vld [vmem:[%s7799_s3 + $0x150] sm:$0xff] }
 0x2d8   : > { %v1815_v58 = vpop.permute.xlu0 %1814  ;;  %2713 = vmatprep.subr.mxu0 %v5690_v1 }
 0x2d9   : > { %v1735_v41 = vpop.permute.xlu1 %1734  ;;  %2714 = vmatpush1.msra.mxu0 %v4866_v20 }
 0x2da   : > { %2215 = vmatmul.mubr.f32.gmra.mxu1 %v1973_v62  ;;  %v1935_v5 = vsel %vm330_vm0, %v1595_v3, %v1735_v41  ;;  %2715 = vmatprep.subr.mxu0 %v5690_v1 }
 0x2db   : > { %4855 = vmatprep.mubr.msk.f32.mxu1 %vm330_vm0, %v1674_v2  ;;  %v1955_v6 = vsel %vm1241_vm3, %v1935_v5, %v1815_v58  ;;  %2716 = vmatpush1.msra.mxu0 %v4865_v16 }
 0x2dc   : > { %2717 = vmatprep.subr.mxu0 %v5690_v1 }
 0x2dd   : > { %v1895_v48 = vpop.permute.xlu1 %1894  ;;  %2718 = vmatpush1.msra.mxu0 %v4864_v60 }
 0x2de   : > { %2220 = vmatmul.mubr.f32.gmra.mxu1 %v1974_v8  ;;  %v1975_v10 = vsel %vm1262_vm4, %v1955_v6, %v1895_v48  ;;  %2719 = vmatprep.subr.mxu0 %v5690_v1 }
 0x2df   : > { %4856 = vmatprep.mubr.msk.f32.mxu1 %vm330_vm0, %v1675_v7  ;;  %2720 = vmatpush1.msra.mxu0 %v4863_v35 }
 0x2e0   : > { %2721 = vmatprep.subr.mxu0 %v5690_v1 }
 0x2e1   : > { %2722 = vmatpush1.msra.mxu0 %v4862_v38 }
 0x2e2   : > { %2225 = vmatmul.mubr.f32.gmra.mxu1 %v1975_v10  ;;  %2723 = vmatprep.subr.mxu0 %v5690_v1 }
 0x2e3   : > { %2724 = vmatpush1.msra.mxu0 %v4861_v43 }
 0x2e4   : > { %2725 = vmatprep.subr.mxu0 %v5690_v1 }
 0x2e5   : > { %2726 = vmatpush1.msra.mxu0 %v4860_v49 }
 0x2e6   : > { %2727 = vmatprep.subr.mxu0 %v5690_v1 }
 0x2e7   : > { %2728 = vmatpush1.msra.mxu0 %v4859_v51 }
 0x2e8   : > { %2729 = vmatprep.subr.mxu0 %v5690_v1 }
 0x356   : > { %v2131_v22 = vpop.f32.mrf.mxu1 }
 0x357   : > { %v2132_v57 = vadd.f32 %v6592_v59, %v2131_v22 }
 0x358   : > { %v2133_v28 = vpop.f32.mrf.mxu1 }
 0x359   : > { %v2230_v32 = vadd.f32 %v2132_v57, %v5992_v0 }
 0x35a   : > { %v2136_v36 = vpop.f32.mrf.mxu1 }
 0x35b   : > { %v2250_v37 = vmax.f32 %v2230_v32, 0.0  ;;  %v2137_v42 = vadd.f32 %v6592_v59, %v2136_v36 }
 0x35c   : > { %v2138_v39 = vpop.f32.mrf.mxu1 }
 0x35d   : > { %2270 = vst.msk [vmem:[#allocation2 + $0x2] sm:$0xff] %vm330_vm0, %v2250_v37  ;;  %v2231_v0 = vadd.f32 %v2137_v42, %v6006_v23 }
 0x35e   : > { %v2141_v45 = vpop.f32.mrf.mxu1 }
 0x35f   : > { %v2251_v50 = vmax.f32 %v2231_v0, 0.0  ;;  %v2142_v46 = vadd.f32 %v6592_v59, %v2141_v45 }
 0x360   : > { %v2143_v33 = vpop.f32.mrf.mxu1 }
 0x361   : > { %2271 = vst.msk [vmem:[#allocation2 + $0xa] sm:$0xff] %vm330_vm0, %v2251_v50  ;;  %v2232_v23 = vadd.f32 %v2142_v46, %v6009_v24 }
 0x362   : > { %v2146_v34 = vpop.f32.mrf.mxu1 }
 0x363   : > { %v2252_v54 = vmax.f32 %v2232_v23, 0.0  ;;  %v2147_v56 = vadd.f32 %v6592_v59, %v2146_v34 }
 0x364   : > { %v2148_v61 = vpop.f32.mrf.mxu1 }
 0x365   : > { %2272 = vst.msk [vmem:[#allocation2 + $0x12] sm:$0xff] %vm330_vm0, %v2252_v54  ;;  %v2233_v62 = vadd.f32 %v2147_v56, %v6015_v29 }
 0x366   : > { %v2151_v24 = vpop.f32.mrf.mxu1 }
 0x367   : > { %v2253_v63 = vmax.f32 %v2233_v62, 0.0  ;;  %v2152_v41 = vadd.f32 %v6592_v59, %v2151_v24  ;;  %v4858_v62 = vld [vmem:[%s7799_s3 + $0x148] sm:$0xff]  ;;  %v4857_v24 = vld [vmem:[%s7799_s3 + $0x140] sm:$0xff] }
 0x368   : > { %v2153_v2 = vpop.f32.mrf.mxu1  ;;  %v2291_v3 = vld [vmem:[#allocation2 + $0x2] ss:$2 sm:$0xff]  ;;  %v2311_v58 = vld [vmem:[#allocation2 + $0x3] ss:$2 sm:$0xff]  ;;  %2730 = vmatpush1.msra.mxu0 %v4858_v62 }
 0x369   : > { %2273 = vst.msk [vmem:[#allocation2 + $0x1a] sm:$0xff] %vm330_vm0, %v2253_v63  ;;  %v2234_v5 = vadd.f32 %v2152_v41, %v6033_v55  ;;  %v2330_v6 = vmax.f32 %v2291_v3, %v2311_v58  ;;  %2731 = vmatprep.subr.mxu0 %v5690_v1  ;;  %v4876_v3 = vld [vmem:[%s7799_s3 + $0x1d8] sm:$0xff] }
 0x36a   : > { %v2156_v8 = vpop.f32.mrf.mxu1  ;;  %2732 = vmatpush1.msra.mxu0 %v4857_v24 }
 0x36b   : > { %v2254_v48 = vmax.f32 %v2234_v5, 0.0  ;;  %v2157_v7 = vadd.f32 %v6592_v59, %v2156_v8  ;;  %2757 = vmatprep.subr.mxu0 %v5690_v1 }
 0x36c   : > { %v2158_v10 = vpop.f32.mrf.mxu1  ;;  %v2341_v29 = vld [vmem:[#allocation2 + $0x4] ss:$2 sm:$0xff]  ;;  %v2371_v18 = vld [vmem:[#allocation2 + $0x5] ss:$2 sm:$0xff]  ;;  %2758 = vmatpush2.msra.mxu0 %v4876_v3 }
 0x36d   : > { %2274 = vst.msk [vmem:[#allocation2 + $0x22] sm:$0xff] %vm330_vm0, %v2254_v48  ;;  %v2235_v13 = vadd.f32 %v2157_v7, %v6049_v21  ;;  %v2360_v15 = vmax.f32 %v2330_v6, %v2341_v29  ;;  %v2401_v57 = vld [vmem:[#allocation2 + $0x6] ss:$2 sm:$0xff]  ;;  %2759 = vmatprep.subr.mxu0 %v5690_v1 }
 0x36e   : > { %v2161_v17 = vpop.f32.mrf.mxu1  ;;  %v4875_v6 = vld [vmem:[%s7799_s3 + $0x1d0] sm:$0xff] }
 0x36f   : > { %v2255_v19 = vmax.f32 %v2235_v13, 0.0  ;;  %v2162_v9 = vadd.f32 %v6592_v59, %v2161_v17  ;;  %v2390_v20 = vmax.f32 %v2360_v15, %v2371_v18  ;;  %2760 = vmatpush2.msra.mxu0 %v4875_v6 }
 0x370   : > { %v2293_v16 = vld [vmem:[#allocation2 + $0x12] ss:$2 sm:$0xff]  ;;  %v2313_v55 = vld [vmem:[#allocation2 + $0x13] ss:$2 sm:$0xff]  ;;  %v2163_v22 = vpop.f32.mrf.mxu1  ;;  %2761 = vmatprep.subr.mxu0 %v5690_v1 }
 0x371   : > { %2275 = vst.msk [vmem:[#allocation2 + $0x2a] sm:$0xff] %vm330_vm0, %v2255_v19  ;;  %v2236_v60 = vadd.f32 %v2162_v9, %v6062_v44  ;;  %v6644_v28 = vmax.f32 %v2390_v20, %v2401_v57  ;;  %v2331_v35 = vmax.f32 %v2293_v16, %v2313_v55  ;;  %v4874_v9 = vld [vmem:[%s7799_s3 + $0x1c8] sm:$0xff] }
 0x372   : > { %v2166_v32 = vpop.f32.mrf.mxu1  ;;  %2762 = vmatpush2.msra.mxu0 %v4874_v9 }
 0x373   : > { %v2256_v21 = vmax.f32 %v2236_v60, 0.0  ;;  %v2167_v36 = vadd.f32 %v6592_v59, %v2166_v32  ;;  %2431 = vst.msk [vmem:[#allocation2 + $0x2] sm:$0xff] %vm330_vm0, %v6644_v28  ;;  %2763 = vmatprep.subr.mxu0 %v5690_v1 }
 0x374   : > { %v2343_v37 = vld [vmem:[#allocation2 + $0x14] ss:$2 sm:$0xff]  ;;  %v2168_v42 = vpop.f32.mrf.mxu1  ;;  %v2373_v0 = vld [vmem:[#allocation2 + $0x15] ss:$2 sm:$0xff] }
 0x375   : > { %v2361_v38 = vmax.f32 %v2331_v35, %v2343_v37  ;;  %2276 = vst.msk [vmem:[#allocation2 + $0x32] sm:$0xff] %vm330_vm0, %v2256_v21  ;;  %v2237_v39 = vadd.f32 %v2167_v36, %v6066_v53  ;;  %v2403_v46 = vld [vmem:[#allocation2 + $0x16] ss:$2 sm:$0xff] }
 0x376   : > { %v2171_v43 = vpop.f32.mrf.mxu1  ;;  %v4873_v37 = vld [vmem:[%s7799_s3 + $0x1c0] sm:$0xff] }
 0x377   : > { %v2391_v44 = vmax.f32 %v2361_v38, %v2373_v0  ;;  %v2257_v45 = vmax.f32 %v2237_v39, 0.0  ;;  %v2172_v50 = vadd.f32 %v6592_v59, %v2171_v43  ;;  %2764 = vmatpush2.msra.mxu0 %v4873_v37 }
 0x378   : > { %v2295_v49 = vld [vmem:[#allocation2 + $0x22] ss:$2 sm:$0xff]  ;;  %v2315_v33 = vld [vmem:[#allocation2 + $0x23] ss:$2 sm:$0xff]  ;;  %v2173_v23 = vpop.f32.mrf.mxu1  ;;  %3437 = vmatprep.subr.mxu0 %v5690_v1 }
 0x379   : > { %v6652_v51 = vmax.f32 %v2391_v44, %v2403_v46  ;;  %2277 = vst.msk [vmem:[#allocation2 + $0x3a] sm:$0xff] %vm330_vm0, %v2257_v45  ;;  %v2238_v34 = vadd.f32 %v2172_v50, %v6081_v11  ;;  %v2332_v56 = vmax.f32 %v2295_v49, %v2315_v33 }
 0x37a   : > { %v2176_v54 = vpop.f32.mrf.mxu1  ;;  %v2462_v18 = vld [vmem:[#allocation2 + $0x2] sm:$0xff] }
 0x37b   : > { %v2258_v61 = vmax.f32 %v2238_v34, 0.0  ;;  %v2177_v53 = vadd.f32 %v6592_v59, %v2176_v54  ;;  %2432 = vst.msk [vmem:[#allocation2 + $0xa] sm:$0xff] %vm330_vm0, %v6652_v51  ;;  %v2452_v19 = vld [vmem:[#allocation2 + $0x1] sm:$0xff] }
 0x37c   : > { %v2345_v63 = vld [vmem:[#allocation2 + $0x24] ss:$2 sm:$0xff]  ;;  %v2178_v41 = vpop.f32.mrf.mxu1  ;;  %v2375_v58 = vld [vmem:[#allocation2 + $0x25] ss:$2 sm:$0xff] }
 0x37d   : > { %v2362_v11 = vmax.f32 %v2332_v56, %v2345_v63  ;;  %2278 = vst.msk [vmem:[#allocation2 + $0x42] sm:$0xff] %vm330_vm0, %v2258_v61  ;;  %v2239_v2 = vadd.f32 %v2177_v53, %v6092_v31  ;;  %v2405_v31 = vld [vmem:[#allocation2 + $0x26] ss:$2 sm:$0xff] }
 0x37e   : > { %v2181_v5 = vpop.f32.mrf.mxu1 }
 0x37f   : > { %v2392_v8 = vmax.f32 %v2362_v11, %v2375_v58  ;;  %v2259_v48 = vmax.f32 %v2239_v2, 0.0  ;;  %v2182_v7 = vadd.f32 %v6592_v59, %v2181_v5 }
 0x380   : > { %v2297_v10 = vld [vmem:[#allocation2 + $0x32] ss:$2 sm:$0xff]  ;;  %v2317_v29 = vld [vmem:[#allocation2 + $0x33] ss:$2 sm:$0xff]  ;;  %v2183_v13 = vpop.f32.mrf.mxu1 }
 0x381   : > { %v6676_v15 = vmax.f32 %v2392_v8, %v2405_v31  ;;  %2279 = vst.msk [vmem:[#allocation2 + $0x4a] sm:$0xff] %vm330_vm0, %v2259_v48  ;;  %v2240_v17 = vadd.f32 %v2182_v7, %v6096_v40  ;;  %v2333_v20 = vmax.f32 %v2297_v10, %v2317_v29 }
 0x382   : > { %v2186_v16 = vpop.f32.mrf.mxu1  ;;  %v2482_v55 = vld [vmem:[#allocation2 + $0x4] sm:$0xff] }
 0x383   : > { %v2463_v22 = vld [vmem:[#allocation2 + $0xa] sm:$0xff]  ;;  %v2260_v60 = vmax.f32 %v2240_v17, 0.0  ;;  %v2187_v32 = vadd.f32 %v6592_v59, %v2186_v16  ;;  %4879 = vmatprep.mubr.msk.f32.mxu0 %vm330_vm0, %v2482_v55  ;;  %2433 = vst.msk [vmem:[#allocation2 + $0x12] sm:$0xff] %vm330_vm0, %v6676_v15 }
 0x384   : > { %v2453_v57 = vld [vmem:[#allocation2 + $0x9] sm:$0xff]  ;;  %v5448_v40 = vpack.i.bf16 %v2463_v22, %v2462_v18  ;;  %v2347_v21 = vld [vmem:[#allocation2 + $0x34] ss:$2 sm:$0xff]  ;;  %v2188_v36 = vpop.f32.mrf.mxu1  ;;  %v2377_v39 = vld [vmem:[#allocation2 + $0x35] ss:$2 sm:$0xff] }
 0x385   : > { %v5443_v35 = vpack.i.bf16 %v2453_v57, %v2452_v19  ;;  %v2363_v42 = vmax.f32 %v2333_v20, %v2347_v21  ;;  %2280 = vst.msk [vmem:[#allocation2 + $0x52] sm:$0xff] %vm330_vm0, %v2260_v60  ;;  %v2241_v38 = vadd.f32 %v2187_v32, %v6110_v4  ;;  %v2407_v50 = vld [vmem:[#allocation2 + $0x36] ss:$2 sm:$0xff] }
 0x386   : > { %5449 = vrot.lane.b32.xlu1 %v5448_v40, %s5691_s22  ;;  %v2191_v0 = vpop.f32.mrf.mxu1  ;;  %v2472_v54 = vld [vmem:[#allocation2 + $0x3] sm:$0xff] }
 0x387   : > { %5444 = vrot.lane.b32.xlu0 %v5443_v35, %s5692_s23  ;;  %v2393_v43 = vmax.f32 %v2363_v42, %v2377_v39  ;;  %v2261_v44 = vmax.f32 %v2241_v38, 0.0  ;;  %v2192_v45 = vadd.f32 %v6592_v59, %v2191_v0 }
 0x388   : > { %v2299_v46 = vld [vmem:[#allocation2 + $0x42] ss:$2 sm:$0xff]  ;;  %v2319_v49 = vld [vmem:[#allocation2 + $0x43] ss:$2 sm:$0xff]  ;;  %v2193_v33 = vpop.f32.mrf.mxu1 }
 0x389   : > { %v6699_v4 = vmax.f32 %v2393_v43, %v2407_v50  ;;  %2281 = vst.msk [vmem:[#allocation2 + $0x5a] sm:$0xff] %vm330_vm0, %v2261_v44  ;;  %v2242_v23 = vadd.f32 %v2192_v45, %v6127_v27  ;;  %v2334_v61 = vmax.f32 %v2299_v46, %v2319_v49 }
 0x38a   : > { %v2196_v34 = vpop.f32.mrf.mxu1  ;;  %v2473_v56 = vld [vmem:[#allocation2 + $0xb] sm:$0xff] }
 0x38b   : > { %2434 = vst.msk [vmem:[#allocation2 + $0x1a] sm:$0xff] %vm330_vm0, %v6699_v4  ;;  %v2262_v53 = vmax.f32 %v2242_v23, 0.0  ;;  %v2197_v62 = vadd.f32 %v6592_v59, %v2196_v34  ;;  %v5453_v24 = vpack.i.bf16 %v2473_v56, %v2472_v54  ;;  %v2454_v13 = vld [vmem:[#allocation2 + $0x11] sm:$0xff] }
 0x38c   : > { %v2349_v63 = vld [vmem:[#allocation2 + $0x44] ss:$2 sm:$0xff]  ;;  %v2379_v41 = vld [vmem:[#allocation2 + $0x45] ss:$2 sm:$0xff]  ;;  %v2198_v2 = vpop.f32.mrf.mxu1 }
 0x38d   : > { %v2409_v11 = vld [vmem:[#allocation2 + $0x46] ss:$2 sm:$0xff]  ;;  %v2364_v3 = vmax.f32 %v2334_v61, %v2349_v63  ;;  %2282 = vst.msk [vmem:[#allocation2 + $0x62] sm:$0xff] %vm330_vm0, %v2262_v53  ;;  %v2243_v27 = vadd.f32 %v2197_v62, %v6136_v47  ;;  %5454 = vrot.lane.b32.xlu0 %v5453_v24, %s5693_s28 }
 0x38e   : > { %2430 = vst.msk [vmem:[#allocation2 + $0x50] sm:$0x3] %vm859_vm2, %v5690_v1  ;;  %v2201_v58 = vpop.f32.mrf.mxu1  ;;  %v2464_v19 = vld [vmem:[#allocation2 + $0x12] sm:$0xff] }
 0x38f   : > { %v2394_v5 = vmax.f32 %v2364_v3, %v2379_v41  ;;  %v2263_v8 = vmax.f32 %v2243_v27, 0.0  ;;  %v2202_v48 = vadd.f32 %v6592_v59, %v2201_v58 }
 0x390   : > { %v2301_v7 = vld [vmem:[#allocation2 + $0x52] ss:$2 sm:$0xff]  ;;  %v2321_v6 = vld [vmem:[#allocation2 + $0x53] ss:$2 sm:$0xff]  ;;  %v2203_v31 = vpop.f32.mrf.mxu1 }
 0x391   : > { %v6712_v10 = vmax.f32 %v2394_v5, %v2409_v11  ;;  %2283 = vst.msk [vmem:[#allocation2 + $0x6a] sm:$0xff] %vm330_vm0, %v2263_v8  ;;  %v2244_v29 = vadd.f32 %v2202_v48, %v6145_v12  ;;  %v2335_v17 = vmax.f32 %v2301_v7, %v2321_v6 }
 0x392   : > { %v2206_v18 = vpop.f32.mrf.mxu1  ;;  %v2455_v47 = vld [vmem:[#allocation2 + $0x19] sm:$0xff] }
 0x393   : > { %v2465_v9 = vld [vmem:[#allocation2 + $0x1a] sm:$0xff]  ;;  %2435 = vst.msk [vmem:[#allocation2 + $0x22] sm:$0xff] %vm330_vm0, %v6712_v10  ;;  %v2264_v20 = vmax.f32 %v2244_v29, 0.0  ;;  %v2207_v16 = vadd.f32 %v6592_v59, %v2206_v18  ;;  %v5458_v55 = vpack.i.bf16 %v2455_v47, %v2454_v13 }
 0x394   : > { %v5463_v22 = vpack.i.bf16 %v2465_v9, %v2464_v19  ;;  %v2351_v57 = vld [vmem:[#allocation2 + $0x54] ss:$2 sm:$0xff]  ;;  %v2208_v60 = vpop.f32.mrf.mxu1  ;;  %v2381_v40 = vld [vmem:[#allocation2 + $0x55] ss:$2 sm:$0xff] }
 0x395   : > { %v2365_v32 = vmax.f32 %v2335_v17, %v2351_v57  ;;  %2284 = vst.msk [vmem:[#allocation2 + $0x72] sm:$0xff] %vm330_vm0, %v2264_v20  ;;  %v2245_v12 = vadd.f32 %v2207_v16, %v6154_v30  ;;  %5459 = vrot.lane.b32.xlu1 %v5458_v55, %s5692_s23  ;;  %v2411_v42 = vld [vmem:[#allocation2 + $0x56] ss:$2 sm:$0xff] }
 0x396   : > { %5464 = vrot.lane.b32.xlu0 %v5463_v22, %s5691_s22  ;;  %v2211_v35 = vpop.f32.mrf.mxu1  ;;  %v2474_v45 = vld [vmem:[#allocation2 + $0x13] sm:$0xff] }
 0x397   : > { %v2395_v21 = vmax.f32 %v2365_v32, %v2381_v40  ;;  %v2265_v36 = vmax.f32 %v2245_v12, 0.0  ;;  %v2212_v37 = vadd.f32 %v6592_v59, %v2211_v35 }
 0x398   : > { %v2303_v38 = vld [vmem:[#allocation2 + $0x62] ss:$2 sm:$0xff]  ;;  %v2323_v39 = vld [vmem:[#allocation2 + $0x63] ss:$2 sm:$0xff]  ;;  %v2213_v0 = vpop.f32.mrf.mxu1 }
 0x399   : > { %v6724_v43 = vmax.f32 %v2395_v21, %v2411_v42  ;;  %2285 = vst.msk [vmem:[#allocation2 + $0x7a] sm:$0xff] %vm330_vm0, %v2265_v36  ;;  %v2246_v30 = vadd.f32 %v2212_v37, %v6166_v52  ;;  %v2336_v46 = vmax.f32 %v2303_v38, %v2323_v39 }
 0x39a   : > { %v2216_v44 = vpop.f32.mrf.mxu1  ;;  %v2475_v50 = vld [vmem:[#allocation2 + $0x1b] sm:$0xff] }
 0x39b   : > { %2436 = vst.msk [vmem:[#allocation2 + $0x2a] sm:$0xff] %vm330_vm0, %v6724_v43  ;;  %v2266_v49 = vmax.f32 %v2246_v30, 0.0  ;;  %v2217_v33 = vadd.f32 %v6592_v59, %v2216_v44  ;;  %v5468_v23 = vpack.i.bf16 %v2475_v50, %v2474_v45  ;;  %v2466_v5 = vld [vmem:[#allocation2 + $0x22] sm:$0xff] }
 0x39c   : > { %v2353_v34 = vld [vmem:[#allocation2 + $0x64] ss:$2 sm:$0xff]  ;;  %v2218_v54 = vpop.f32.mrf.mxu1  ;;  %v2383_v52 = vld [vmem:[#allocation2 + $0x65] ss:$2 sm:$0xff] }
 0x39d   : > { %v2366_v56 = vmax.f32 %v2336_v46, %v2353_v34  ;;  %2286 = vst.msk [vmem:[#allocation2 + $0x82] sm:$0xff] %vm330_vm0, %v2266_v49  ;;  %v2247_v61 = vadd.f32 %v2217_v33, %v6186_v14  ;;  %5469 = vrot.lane.b32.xlu1 %v5468_v23, %s5693_s28  ;;  %v2413_v41 = vld [vmem:[#allocation2 + $0x66] ss:$2 sm:$0xff] }
 0x39e   : > { %v2221_v53 = vpop.f32.mrf.mxu1  ;;  %v2456_v7 = vld [vmem:[#allocation2 + $0x21] sm:$0xff] }
 0x39f   : > { %v2396_v62 = vmax.f32 %v2366_v56, %v2383_v52  ;;  %v2267_v24 = vmax.f32 %v2247_v61, 0.0  ;;  %v2222_v63 = vadd.f32 %v6592_v59, %v2221_v53 }
 0x3a0   : > { %v2305_v11 = vld [vmem:[#allocation2 + $0x72] ss:$2 sm:$0xff]  ;;  %v2325_v2 = vld [vmem:[#allocation2 + $0x73] ss:$2 sm:$0xff]  ;;  %v2223_v3 = vpop.f32.mrf.mxu1 }
 0x3a1   : > { %v6735_v27 = vmax.f32 %v2396_v62, %v2413_v41  ;;  %2287 = vst.msk [vmem:[#allocation2 + $0x8a] sm:$0xff] %vm330_vm0, %v2267_v24  ;;  %v2248_v58 = vadd.f32 %v2222_v63, %v6200_v25  ;;  %v2337_v14 = vmax.f32 %v2305_v11, %v2325_v2 }
 0x3a2   : > { %v2226_v8 = vpop.f32.mrf.mxu1  ;;  %v2467_v48 = vld [vmem:[#allocation2 + $0x2a] sm:$0xff] }
 0x3a3   : > { %v2457_v6 = vld [vmem:[#allocation2 + $0x29] sm:$0xff]  ;;  %2437 = vst.msk [vmem:[#allocation2 + $0x32] sm:$0xff] %vm330_vm0, %v6735_v27  ;;  %v2268_v31 = vmax.f32 %v2248_v58, 0.0  ;;  %v2227_v29 = vadd.f32 %v6592_v59, %v2226_v8  ;;  %v5478_v13 = vpack.i.bf16 %v2467_v48, %v2466_v5 }
 0x3a4   : > { %v5473_v17 = vpack.i.bf16 %v2457_v6, %v2456_v7  ;;  %v2355_v18 = vld [vmem:[#allocation2 + $0x74] ss:$2 sm:$0xff]  ;;  %v2228_v47 = vpop.f32.mrf.mxu1  ;;  %v2385_v9 = vld [vmem:[#allocation2 + $0x75] ss:$2 sm:$0xff] }
 0x3a5   : > { %v2367_v19 = vmax.f32 %v2337_v14, %v2355_v18  ;;  %2288 = vst.msk [vmem:[#allocation2 + $0x92] sm:$0xff] %vm330_vm0, %v2268_v31  ;;  %v2249_v25 = vadd.f32 %v2227_v29, %v6203_v26  ;;  %5479 = vrot.lane.b32.xlu1 %v5478_v13, %s5691_s22  ;;  %v2415_v55 = vld [vmem:[#allocation2 + $0x76] ss:$2 sm:$0xff]  ;;  %v2443_v47 = vld [vmem:[#allocation2 + $0x8] sm:$0xff] }
 0x3a6   : > { %5474 = vrot.lane.b32.xlu0 %v5473_v17, %s5692_s23  ;;  %v2476_v60 = vld [vmem:[#allocation2 + $0x23] sm:$0xff] }
 0x3a7   : > { %v2397_v20 = vmax.f32 %v2367_v19, %v2385_v9  ;;  %v2269_v16 = vmax.f32 %v2249_v25, 0.0  ;;  %v2442_v7 = vld [vmem:[#allocation2] sm:$0xff] }
 0x3a8   : > { %v2307_v22 = vld [vmem:[#allocation2 + $0x82] ss:$2 sm:$0xff]  ;;  %v2327_v57 = vld [vmem:[#allocation2 + $0x83] ss:$2 sm:$0xff] }
 0x3a9   : > { %v6746_v59 = vmax.f32 %v2397_v20, %v2415_v55  ;;  %2289 = vst.msk [vmem:[#allocation2 + $0x9a] sm:$0xff] %vm330_vm0, %v2269_v16  ;;  %v2338_v26 = vmax.f32 %v2307_v22, %v2327_v57  ;;  %v2483_v20 = vld [vmem:[#allocation2 + $0xc] sm:$0xff]  ;;  %v2484_v57 = vld [vmem:[#allocation2 + $0x14] sm:$0xff] }
 0x3aa   : > { %v2477_v32 = vld [vmem:[#allocation2 + $0x2b] sm:$0xff] }
 0x3ab   : > { %2438 = vst.msk [vmem:[#allocation2 + $0x3a] sm:$0xff] %vm330_vm0, %v6746_v59  ;;  %v5483_v12 = vpack.i.bf16 %v2477_v32, %v2476_v60  ;;  %v2458_v30 = vld [vmem:[#allocation2 + $0x31] sm:$0xff] }
 0x3ac   : > { %v2357_v40 = vld [vmem:[#allocation2 + $0x84] ss:$2 sm:$0xff]  ;;  %v2387_v21 = vld [vmem:[#allocation2 + $0x85] ss:$2 sm:$0xff] }
 0x3ad   : > { %v2368_v35 = vmax.f32 %v2338_v26, %v2357_v40  ;;  %5484 = vrot.lane.b32.xlu0 %v5483_v12, %s5693_s28  ;;  %v2417_v37 = vld [vmem:[#allocation2 + $0x86] ss:$2 sm:$0xff] }
 0x3ae   : > { %v2468_v44 = vld [vmem:[#allocation2 + $0x32] sm:$0xff] }
 0x3af   : > { %v2398_v36 = vmax.f32 %v2368_v35, %v2387_v21  ;;  %v2444_v12 = vld [vmem:[#allocation2 + $0x10] sm:$0xff] }
 0x3b0   : > { %v2309_v42 = vld [vmem:[#allocation2 + $0x92] ss:$2 sm:$0x3f]  ;;  %v2329_v38 = vld [vmem:[#allocation2 + $0x93] ss:$2 sm:$0x3f] }
 0x3b1   : > { %v6752_v39 = vmax.f32 %v2398_v36, %v2417_v37  ;;  %v2339_v0 = vmax.f32 %v2309_v42, %v2329_v38  ;;  %v2359_v45 = vld [vmem:[#allocation2 + $0x94] ss:$2 sm:$0x3f]  ;;  %v2389_v34 = vld [vmem:[#allocation2 + $0x95] ss:$2 sm:$0x3f] }
 0x3b2   : > { %v2459_v50 = vld [vmem:[#allocation2 + $0x39] sm:$0xff] }
 0x3b3   : > { %v2469_v46 = vld [vmem:[#allocation2 + $0x3a] sm:$0xff]  ;;  %2439 = vst.msk [vmem:[#allocation2 + $0x42] sm:$0xff] %vm330_vm0, %v6752_v39  ;;  %v2369_v49 = vmax.f32 %v2339_v0, %v2359_v45  ;;  %v5488_v33 = vpack.i.bf16 %v2459_v50, %v2458_v30 }
 0x3b4   : > { %v5493_v23 = vpack.i.bf16 %v2469_v46, %v2468_v44  ;;  %v2419_v56 = vld [vmem:[#allocation2 + $0x96] ss:$2 sm:$0x3f] }
 0x3b5   : > { %v2399_v54 = vmax.f32 %v2369_v49, %v2389_v34  ;;  %5489 = vrot.lane.b32.xlu1 %v5488_v33, %s5692_s23  ;;  %v2478_v53 = vld [vmem:[#allocation2 + $0x33] sm:$0xff]  ;;  %v2485_v45 = vld [vmem:[#allocation2 + $0x1c] sm:$0xff]  ;;  %v2486_v33 = vld [vmem:[#allocation2 + $0x24] sm:$0xff] }
 0x3b6   : > { %5494 = vrot.lane.b32.xlu0 %v5493_v23, %s5691_s22  ;;  %v2445_v38 = vld [vmem:[#allocation2 + $0x18] sm:$0xff] }
 0x3b7   : > { %v6758_v61 = vmax.f32 %v2399_v54, %v2419_v56  ;;  %v2446_v56 = vld [vmem:[#allocation2 + $0x20] sm:$0xff] }
 0x3b9   : > { %2441 = vst.msk [vmem:[#allocation2 + $0x4a] sm:$0x3f] %vm2440_vm5, %v6758_v61 }
 0x3ba   : > { %v2460_v52 = vld [vmem:[#allocation2 + $0x41] sm:$0xff] }
 0x3bb   : > { %v2479_v62 = vld [vmem:[#allocation2 + $0x3b] sm:$0xff]  ;;  %2518 = vrot.lane.b32.xlu0 %v2460_v52, %s5692_s23 }
 0x3bc   : > { %v5498_v24 = vpack.i.bf16 %v2479_v62, %v2478_v53  ;;  %v2470_v63 = vld [vmem:[#allocation2 + $0x42] sm:$0xff] }
 0x3be   : > { %5499 = vrot.lane.b32.xlu1 %v5498_v24, %s5693_s28 }
 0x3c0   : > { %v2480_v41 = vld [vmem:[#allocation2 + $0x43] sm:$0xff]  ;;  %v2481_v11 = vld [vmem:[#allocation2 + $0x4b] sm:$0x3f] }
 0x3c1   : > { %2598 = vrot.lane.b32.xlu0 %v2480_v41, %s5693_s28  ;;  %v6766_v2 = vld [vmem:[#allocation2 + $0x4c] sm:$0x3f] }
 0x3c2   : > { %2558 = vrot.lane.b32.xlu1 %v2470_v63, %s5691_s22  ;;  %2826 = vst.msk [vmem:[#allocation2 + $0x50] sm:$0x3] %vm859_vm2, %v5690_v1  ;;  %v2461_v3 = vld [vmem:[#allocation2 + $0x49] sm:$0x3f] }
 0x3c3   : > { %v2471_v58 = vld [vmem:[#allocation2 + $0x4a] sm:$0x3f] }
 0x3c5   : > { %2560 = vrot.lane.b32.xlu0 %v2471_v58, %s5691_s22 }
 0x3c6   : > { %2520 = vrot.lane.b32.xlu1 %v2461_v3, %s5692_s23 }
 0x3ca   : > { %2600 = vrot.lane.b32.xlu1 %v2481_v11, %s5693_s28  ;;  %v2447_v11 = vld [vmem:[#allocation2 + $0x28] sm:$0xff] }
 0x3f8   : > { %v5450_v14 = vpop.permute.xlu1 %5449 }
 0x3f9   : > { %v5445_v5 = vpop.permute.xlu0 %5444  ;;  %v5451_v48 = vunpack.i.l.bf16 %v5450_v14  ;;  %v5452_v17 = vunpack.i.h.bf16 %v5450_v14  ;;  %v2487_v14 = vld [vmem:[#allocation2 + $0x2c] sm:$0xff] }
 0x3fa   : > { %v5446_v8 = vunpack.i.l.bf16 %v5445_v5  ;;  %v5447_v6 = vunpack.i.h.bf16 %v5445_v5 }
 0x3fc   : > { %v2612_v31 = vsel %vm330_vm0, %v2442_v7, %v5446_v8  ;;  %v2613_v9 = vsel %vm330_vm0, %v2443_v47, %v5447_v6  ;;  %v2488_v6 = vld [vmem:[#allocation2 + $0x34] sm:$0xff] }
 0x3fd   : > { %v2622_v18 = vsel %vm1241_vm3, %v2612_v31, %v5451_v48  ;;  %v2623_v16 = vsel %vm1241_vm3, %v2613_v9, %v5452_v17  ;;  %v2448_v17 = vld [vmem:[#allocation2 + $0x30] sm:$0xff] }
 0x3ff   : > { %v5455_v29 = vpop.permute.xlu0 %5454 }
 0x400   : > { %v5456_v13 = vunpack.i.l.bf16 %v5455_v29  ;;  %v5457_v19 = vunpack.i.h.bf16 %v5455_v29 }
 0x402   : > { %v2632_v25 = vsel %vm1262_vm4, %v2622_v18, %v5456_v13  ;;  %v2633_v55 = vsel %vm1262_vm4, %v2623_v16, %v5457_v19 }
 0x403   : > { %2766 = vmatmul.mubr.f32.vlgmr.msra.gmra.mxu0 %v2632_v25 }
 0x404   : > { %4880 = vmatprep.mubr.msk.f32.mxu0 %vm330_vm0, %v2483_v20 }
 0x407   : > { %v5460_v22 = vpop.permute.xlu1 %5459  ;;  %2771 = vmatmul.mubr.f32.gmra.mxu0 %v2633_v55  ;;  %v2449_v55 = vld [vmem:[#allocation2 + $0x38] sm:$0xff] }
 0x408   : > { %4881 = vmatprep.mubr.msk.f32.mxu0 %vm330_vm0, %v2484_v57  ;;  %v5461_v60 = vunpack.i.l.bf16 %v5460_v22  ;;  %v5465_v32 = vpop.permute.xlu0 %5464  ;;  %v5462_v40 = vunpack.i.h.bf16 %v5460_v22 }
 0x409   : > { %v5466_v26 = vunpack.i.l.bf16 %v5465_v32  ;;  %v5467_v37 = vunpack.i.h.bf16 %v5465_v32 }
 0x40a   : > { %v2614_v35 = vsel %vm330_vm0, %v2444_v12, %v5461_v60  ;;  %v2615_v44 = vsel %vm330_vm0, %v2445_v38, %v5462_v40  ;;  %v2450_v40 = vld [vmem:[#allocation2 + $0x40] sm:$0xff] }
 0x40b   : > { %v2624_v42 = vsel %vm1241_vm3, %v2614_v35, %v5466_v26  ;;  %v2625_v50 = vsel %vm1241_vm3, %v2615_v44, %v5467_v37  ;;  %v2489_v26 = vld [vmem:[#allocation2 + $0x3c] sm:$0xff]  ;;  %v2490_v38 = vld [vmem:[#allocation2 + $0x44] sm:$0xff] }
 0x40f   : > { %v5470_v21 = vpop.permute.xlu1 %5469 }
 0x410   : > { %v5471_v36 = vunpack.i.l.bf16 %v5470_v21  ;;  %v5472_v0 = vunpack.i.h.bf16 %v5470_v21 }
 0x412   : > { %v2634_v30 = vsel %vm1262_vm4, %v2624_v42, %v5471_v36  ;;  %v2635_v46 = vsel %vm1262_vm4, %v2625_v50, %v5472_v0  ;;  %v2451_v0 = vld [vmem:[#allocation2 + $0x48] sm:$0x3f] }
 0x413   : > { %2776 = vmatmul.mubr.f32.gmra.mxu0 %v2634_v30 }
 0x414   : > { %4882 = vmatprep.mubr.msk.f32.mxu0 %vm330_vm0, %v2485_v45 }
 0x417   : > { %2781 = vmatmul.mubr.f32.gmra.mxu0 %v2635_v46  ;;  %v5480_v23 = vpop.permute.xlu1 %5479 }
 0x418   : > { %v5475_v49 = vpop.permute.xlu0 %5474  ;;  %4883 = vmatprep.mubr.msk.f32.mxu0 %vm330_vm0, %v2486_v33  ;;  %v5481_v54 = vunpack.i.l.bf16 %v5480_v23  ;;  %v5482_v63 = vunpack.i.h.bf16 %v5480_v23  ;;  %v4904_v33 = vld [vmem:[%s7799_s3 + $0x258] sm:$0xff]  ;;  %v4903_v23 = vld [vmem:[%s7799_s3 + $0x250] sm:$0xff] }
 0x419   : > { %v5476_v34 = vunpack.i.l.bf16 %v5475_v49  ;;  %v5477_v52 = vunpack.i.h.bf16 %v5475_v49  ;;  %3097 = vmatpush1.msra.mxu1 %v4904_v33 }
 0x41a   : > { %3098 = vmatprep.subr.mxu1 %v5690_v1 }
 0x41b   : > { %v2616_v53 = vsel %vm330_vm0, %v2446_v56, %v5476_v34  ;;  %v2617_v5 = vsel %vm330_vm0, %v2447_v11, %v5477_v52  ;;  %3099 = vmatpush1.msra.mxu1 %v4903_v23  ;;  %v4901_v34 = vld [vmem:[%s7799_s3 + $0x240] sm:$0xff]  ;;  %v4899_v56 = vld [vmem:[%s7799_s3 + $0x230] sm:$0xff]  ;;  %v4898_v52 = vld [vmem:[%s7799_s3 + $0x228] sm:$0xff] }
 0x41c   : > { %v2626_v41 = vsel %vm1241_vm3, %v2616_v53, %v5481_v54  ;;  %v2627_v8 = vsel %vm1241_vm3, %v2617_v5, %v5482_v63  ;;  %3100 = vmatprep.subr.mxu1 %v5690_v1  ;;  %v4900_v54 = vld [vmem:[%s7799_s3 + $0x238] sm:$0xff]  ;;  %v4897_v53 = vld [vmem:[%s7799_s3 + $0x220] sm:$0xff]  ;;  %v4894_v63 = vld [vmem:[%s7799_s3 + $0x208] sm:$0xff] }
 0x41d   : > { %v4892_v11 = vld [vmem:[%s7799_s3 + $0x1f8] sm:$0xff] }
 0x41f   : > { %v5485_v62 = vpop.permute.xlu0 %5484 }
 0x420   : > { %v5486_v24 = vunpack.i.l.bf16 %v5485_v62  ;;  %v5487_v3 = vunpack.i.h.bf16 %v5485_v62  ;;  %v4896_v62 = vld [vmem:[%s7799_s3 + $0x218] sm:$0xff] }
 0x422   : > { %v2636_v58 = vsel %vm1262_vm4, %v2626_v41, %v5486_v24  ;;  %v2637_v48 = vsel %vm1262_vm4, %v2627_v8, %v5487_v3  ;;  %v4895_v24 = vld [vmem:[%s7799_s3 + $0x210] sm:$0xff]  ;;  %v4893_v41 = vld [vmem:[%s7799_s3 + $0x200] sm:$0xff] }
 0x423   : > { %2786 = vmatmul.mubr.f32.gmra.mxu0 %v2636_v58  ;;  %v6868_v3 = vld [vmem:[%s7800_s4 + $0x2] ss:$0 sm:$0xff] }
 0x424   : > { %4884 = vmatprep.mubr.msk.f32.mxu0 %vm330_vm0, %v2487_v14 }
 0x427   : > { %v5490_v7 = vpop.permute.xlu1 %5489  ;;  %2791 = vmatmul.mubr.f32.gmra.mxu0 %v2637_v48 }
 0x428   : > { %4885 = vmatprep.mubr.msk.f32.mxu0 %vm330_vm0, %v2488_v6  ;;  %v5491_v31 = vunpack.i.l.bf16 %v5490_v7  ;;  %v5495_v29 = vpop.permute.xlu0 %5494  ;;  %v5492_v18 = vunpack.i.h.bf16 %v5490_v7 }
 0x429   : > { %v5496_v13 = vunpack.i.l.bf16 %v5495_v29  ;;  %v5497_v20 = vunpack.i.h.bf16 %v5495_v29  ;;  %v4891_v29 = vld [vmem:[%s7799_s3 + $0x1f0] sm:$0xff] }
 0x42a   : > { %v2618_v47 = vsel %vm330_vm0, %v2448_v17, %v5491_v31  ;;  %v2619_v60 = vsel %vm330_vm0, %v2449_v55, %v5492_v18  ;;  %v4889_v17 = vld [vmem:[%s7799_s3 + $0x1e0] sm:$0xff]  ;;  %v4908_v18 = vld [vmem:[%s7799_s3 + $0x278] sm:$0xff] }
 0x42b   : > { %v2628_v16 = vsel %vm1241_vm3, %v2618_v47, %v5496_v13  ;;  %v2629_v35 = vsel %vm1241_vm3, %v2619_v60, %v5497_v20  ;;  %v4890_v13 = vld [vmem:[%s7799_s3 + $0x1e8] sm:$0xff]  ;;  %v4907_v47 = vld [vmem:[%s7799_s3 + $0x270] sm:$0xff] }
 0x42d   : > { %v2519_v25 = vpop.permute.xlu0 %2518 }
 0x42e   : > { %v2620_v21 = vsel %vm330_vm0, %v2450_v40, %v2519_v25  ;;  %v4905_v40 = vld [vmem:[%s7799_s3 + $0x260] sm:$0xff] }
 0x430   : > { %v5500_v19 = vpop.permute.xlu1 %5499 }
 0x431   : > { %v5501_v9 = vunpack.i.l.bf16 %v5500_v19  ;;  %v5502_v22 = vunpack.i.h.bf16 %v5500_v19 }
 0x433   : > { %v2638_v57 = vsel %vm1262_vm4, %v2628_v16, %v5501_v9  ;;  %v2599_v12 = vpop.permute.xlu0 %2598  ;;  %v2639_v36 = vsel %vm1262_vm4, %v2629_v35, %v5502_v22 }
 0x434   : > { %v2559_v32 = vpop.permute.xlu1 %2558  ;;  %2796 = vmatmul.mubr.f32.gmra.mxu0 %v2638_v57 }
 0x435   : > { %4886 = vmatprep.mubr.msk.f32.mxu0 %vm330_vm0, %v2489_v26  ;;  %v2630_v37 = vsel %vm1241_vm3, %v2620_v21, %v2559_v32  ;;  %v4906_v26 = vld [vmem:[%s7799_s3 + $0x268] sm:$0xff] }
 0x436   : > { %v2640_v45 = vsel %vm1262_vm4, %v2630_v37, %v2599_v12 }
 0x437   : > { %v2561_v44 = vpop.permute.xlu0 %2560 }
 0x438   : > { %v2521_v42 = vpop.permute.xlu1 %2520  ;;  %2801 = vmatmul.mubr.f32.gmra.mxu0 %v2639_v36 }
 0x439   : > { %4887 = vmatprep.mubr.msk.f32.mxu0 %vm330_vm0, %v2490_v38  ;;  %v2621_v30 = vsel %vm330_vm0, %v2451_v0, %v2521_v42 }
 0x43a   : > { %v2631_v46 = vsel %vm1241_vm3, %v2621_v30, %v2561_v44 }
 0x43c   : > { %v2601_v50 = vpop.permute.xlu1 %2600  ;;  %2806 = vmatmul.mubr.f32.gmra.mxu0 %v2640_v45 }
 0x43d   : > { %4888 = vmatprep.mubr.msk.f32.mxu0 %vm330_vm0, %v6766_v2  ;;  %v2641_v49 = vsel %vm1262_vm4, %v2631_v46, %v2601_v50  ;;  %v4902_v2 = vld [vmem:[%s7799_s3 + $0x248] sm:$0xff] }
 0x43e   : > { %3101 = vmatpush1.msra.mxu1 %v4902_v2 }
 0x43f   : > { %3102 = vmatprep.subr.mxu1 %v5690_v1 }
 0x440   : > { %2811 = vmatmul.mubr.f32.gmra.mxu0 %v2641_v49  ;;  %3103 = vmatpush1.msra.mxu1 %v4901_v34 }
 0x441   : > { %3104 = vmatprep.subr.mxu1 %v5690_v1 }
 0x442   : > { %3105 = vmatpush1.msra.mxu1 %v4900_v54 }
 0x443   : > { %3106 = vmatprep.subr.mxu1 %v5690_v1 }
 0x444   : > { %3107 = vmatpush1.msra.mxu1 %v4899_v56 }
 0x445   : > { %3108 = vmatprep.subr.mxu1 %v5690_v1 }
 0x446   : > { %3109 = vmatpush1.msra.mxu1 %v4898_v52 }
 0x447   : > { %3110 = vmatprep.subr.mxu1 %v5690_v1 }
 0x448   : > { %3111 = vmatpush1.msra.mxu1 %v4897_v53 }
 0x449   : > { %3112 = vmatprep.subr.mxu1 %v5690_v1 }
 0x44a   : > { %3113 = vmatpush1.msra.mxu1 %v4896_v62 }
 0x44b   : > { %3114 = vmatprep.subr.mxu1 %v5690_v1 }
 0x44c   : > { %3115 = vmatpush1.msra.mxu1 %v4895_v24 }
 0x44d   : > { %3116 = vmatprep.subr.mxu1 %v5690_v1 }
 0x44e   : > { %3117 = vmatpush1.msra.mxu1 %v4894_v63 }
 0x44f   : > { %3118 = vmatprep.subr.mxu1 %v5690_v1 }
 0x450   : > { %3119 = vmatpush1.msra.mxu1 %v4893_v41 }
 0x451   : > { %3120 = vmatprep.subr.mxu1 %v5690_v1 }
 0x452   : > { %3121 = vmatpush1.msra.mxu1 %v4892_v11 }
 0x453   : > { %3122 = vmatprep.subr.mxu1 %v5690_v1 }
 0x454   : > { %3123 = vmatpush1.msra.mxu1 %v4891_v29 }
 0x455   : > { %3124 = vmatprep.subr.mxu1 %v5690_v1 }
 0x456   : > { %3125 = vmatpush1.msra.mxu1 %v4890_v13 }
 0x457   : > { %3126 = vmatprep.subr.mxu1 %v5690_v1 }
 0x458   : > { %3127 = vmatpush1.msra.mxu1 %v4889_v17 }
 0x459   : > { %3152 = vmatprep.subr.mxu1 %v5690_v1 }
 0x45a   : > { %3153 = vmatpush2.msra.mxu1 %v4908_v18 }
 0x45b   : > { %3154 = vmatprep.subr.mxu1 %v5690_v1 }
 0x45c   : > { %3155 = vmatpush2.msra.mxu1 %v4907_v47 }
 0x45d   : > { %3156 = vmatprep.subr.mxu1 %v5690_v1 }
 0x45e   : > { %3157 = vmatpush2.msra.mxu1 %v4906_v26 }
 0x45f   : > { %3158 = vmatprep.subr.mxu1 %v5690_v1 }
 0x460   : > { %3159 = vmatpush2.msra.mxu1 %v4905_v40 }
 0x461   : > { %3682 = vmatprep.subr.mxu1 %v5690_v1 }
 0x4c3   : > { %v2767_v58 = vpop.f32.mrf.mxu0 }
 0x4c4   : > { %v2768_v5 = vadd.f32 %v6868_v3, %v2767_v58 }
 0x4c5   : > { %v2769_v14 = vpop.f32.mrf.mxu0 }
 0x4c6   : > { %v2816_v8 = vmax.f32 %v2768_v5, 0.0 }
 0x4c7   : > { %v2772_v48 = vpop.f32.mrf.mxu0 }
 0x4c8   : > { %2827 = vst.msk [vmem:[#allocation2 + $0x2] sm:$0xff] %vm330_vm0, %v2816_v8  ;;  %v2773_v7 = vadd.f32 %v6868_v3, %v2772_v48 }
 0x4c9   : > { %v2774_v6 = vpop.f32.mrf.mxu0 }
 0x4ca   : > { %v2817_v31 = vmax.f32 %v2773_v7, 0.0 }
 0x4cc   : > { %2828 = vst.msk [vmem:[#allocation2 + $0xa] sm:$0xff] %vm330_vm0, %v2817_v31 }
 0x4cf   : > { %v2857_v19 = vld [vmem:[#allocation2 + $0x2] sm:$0xff] }
 0x4d0   : > { %v2847_v25 = vld [vmem:[#allocation2 + $0x1] sm:$0xff] }
 0x4d3   : > { %v2777_v9 = vpop.f32.mrf.mxu0  ;;  %v2877_v20 = vld [vmem:[#allocation2 + $0x4] sm:$0xff] }
 0x4d4   : > { %v2858_v16 = vld [vmem:[#allocation2 + $0xa] sm:$0xff]  ;;  %v2778_v22 = vadd.f32 %v6868_v3, %v2777_v9  ;;  %4911 = vmatprep.mubr.msk.f32.mxu1 %vm330_vm0, %v2877_v20 }
 0x4d5   : > { %v2848_v55 = vld [vmem:[#allocation2 + $0x9] sm:$0xff]  ;;  %v5508_v57 = vpack.i.bf16 %v2858_v16, %v2857_v19  ;;  %v2779_v32 = vpop.f32.mrf.mxu0 }
 0x4d6   : > { %v5503_v60 = vpack.i.bf16 %v2848_v55, %v2847_v25  ;;  %v2818_v12 = vmax.f32 %v2778_v22, 0.0  ;;  %v2867_v42 = vld [vmem:[#allocation2 + $0x3] sm:$0xff] }
 0x4d7   : > { %5509 = vrot.lane.b32.xlu1 %v5508_v57, %s5691_s22  ;;  %v2782_v35 = vpop.f32.mrf.mxu0 }
 0x4d8   : > { %5504 = vrot.lane.b32.xlu0 %v5503_v60, %s5692_s23  ;;  %2829 = vst.msk [vmem:[#allocation2 + $0x12] sm:$0xff] %vm330_vm0, %v2818_v12  ;;  %v2783_v21 = vadd.f32 %v6868_v3, %v2782_v35 }
 0x4d9   : > { %v2784_v36 = vpop.f32.mrf.mxu0 }
 0x4da   : > { %v2819_v37 = vmax.f32 %v2783_v21, 0.0 }
 0x4dc   : > { %2830 = vst.msk [vmem:[#allocation2 + $0x1a] sm:$0xff] %vm330_vm0, %v2819_v37 }
 0x4df   : > { %v2868_v38 = vld [vmem:[#allocation2 + $0xb] sm:$0xff] }
 0x4e0   : > { %v5513_v0 = vpack.i.bf16 %v2868_v38, %v2867_v42  ;;  %v2849_v30 = vld [vmem:[#allocation2 + $0x11] sm:$0xff] }
 0x4e1   : > { %v2859_v50 = vld [vmem:[#allocation2 + $0x12] sm:$0xff] }
 0x4e2   : > { %5514 = vrot.lane.b32.xlu0 %v5513_v0, %s5693_s28 }
 0x4e3   : > { %v2787_v44 = vpop.f32.mrf.mxu0  ;;  %v2850_v45 = vld [vmem:[#allocation2 + $0x19] sm:$0xff] }
 0x4e4   : > { %v2860_v46 = vld [vmem:[#allocation2 + $0x1a] sm:$0xff]  ;;  %v2788_v49 = vadd.f32 %v6868_v3, %v2787_v44  ;;  %v5518_v33 = vpack.i.bf16 %v2850_v45, %v2849_v30 }
 0x4e5   : > { %v5523_v23 = vpack.i.bf16 %v2860_v46, %v2859_v50  ;;  %v2789_v2 = vpop.f32.mrf.mxu0  ;;  %v2869_v62 = vld [vmem:[#allocation2 + $0x13] sm:$0xff] }
 0x4e6   : > { %v2820_v34 = vmax.f32 %v2788_v49, 0.0  ;;  %5519 = vrot.lane.b32.xlu1 %v5518_v33, %s5692_s23  ;;  %v2837_v2 = vld [vmem:[#allocation2] sm:$0xff] }
 0x4e7   : > { %5524 = vrot.lane.b32.xlu0 %v5523_v23, %s5691_s22  ;;  %v2792_v54 = vpop.f32.mrf.mxu0 }
 0x4e8   : > { %2831 = vst.msk [vmem:[#allocation2 + $0x22] sm:$0xff] %vm330_vm0, %v2820_v34  ;;  %v2793_v56 = vadd.f32 %v6868_v3, %v2792_v54 }
 0x4e9   : > { %v2794_v52 = vpop.f32.mrf.mxu0 }
 0x4ea   : > { %v2821_v53 = vmax.f32 %v2793_v56, 0.0 }
 0x4ec   : > { %2832 = vst.msk [vmem:[#allocation2 + $0x2a] sm:$0xff] %vm330_vm0, %v2821_v53 }
 0x4ef   : > { %v2870_v24 = vld [vmem:[#allocation2 + $0x1b] sm:$0xff] }
 0x4f0   : > { %v5528_v63 = vpack.i.bf16 %v2870_v24, %v2869_v62  ;;  %v2861_v41 = vld [vmem:[#allocation2 + $0x22] sm:$0xff] }
 0x4f1   : > { %v2851_v5 = vld [vmem:[#allocation2 + $0x21] sm:$0xff] }
 0x4f2   : > { %5529 = vrot.lane.b32.xlu1 %v5528_v63, %s5693_s28  ;;  %v2838_v24 = vld [vmem:[#allocation2 + $0x8] sm:$0xff] }
 0x4f3   : > { %v2862_v58 = vld [vmem:[#allocation2 + $0x2a] sm:$0xff] }
 0x4f4   : > { %v2797_v11 = vpop.f32.mrf.mxu0  ;;  %v2852_v14 = vld [vmem:[#allocation2 + $0x29] sm:$0xff]  ;;  %v5538_v48 = vpack.i.bf16 %v2862_v58, %v2861_v41 }
 0x4f5   : > { %v2798_v8 = vadd.f32 %v6868_v3, %v2797_v11  ;;  %v5533_v7 = vpack.i.bf16 %v2852_v14, %v2851_v5  ;;  %v2871_v16 = vld [vmem:[#allocation2 + $0x23] sm:$0xff]  ;;  %v2878_v58 = vld [vmem:[#allocation2 + $0xc] sm:$0xff] }
 0x4f6   : > { %v2799_v6 = vpop.f32.mrf.mxu0  ;;  %5539 = vrot.lane.b32.xlu1 %v5538_v48, %s5691_s22  ;;  %v2879_v48 = vld [vmem:[#allocation2 + $0x14] sm:$0xff] }
 0x4f7   : > { %v2822_v31 = vmax.f32 %v2798_v8, 0.0  ;;  %5534 = vrot.lane.b32.xlu0 %v5533_v7, %s5692_s23 }
 0x4f8   : > { %v2802_v29 = vpop.f32.mrf.mxu0 }
 0x4f9   : > { %2833 = vst.msk [vmem:[#allocation2 + $0x32] sm:$0xff] %vm330_vm0, %v2822_v31  ;;  %v2803_v13 = vadd.f32 %v6868_v3, %v2802_v29  ;;  %v2839_v29 = vld [vmem:[#allocation2 + $0x10] sm:$0xff] }
 0x4fa   : > { %v2804_v17 = vpop.f32.mrf.mxu0 }
 0x4fb   : > { %v2823_v18 = vmax.f32 %v2803_v13, 0.0 }
 0x4fc   : > { %v2807_v47 = vpop.f32.mrf.mxu0 }
 0x4fd   : > { %2834 = vst.msk [vmem:[#allocation2 + $0x3a] sm:$0xff] %vm330_vm0, %v2823_v18  ;;  %v2808_v19 = vadd.f32 %v6868_v3, %v2807_v47 }
 0x4fe   : > { %v2809_v25 = vpop.f32.mrf.mxu0 }
 0x4ff   : > { %v2824_v9 = vmax.f32 %v2808_v19, 0.0 }
 0x500   : > { %v2812_v20 = vpop.f32.mrf.mxu0  ;;  %v2872_v55 = vld [vmem:[#allocation2 + $0x2b] sm:$0xff] }
 0x501   : > { %2835 = vst.msk [vmem:[#allocation2 + $0x42] sm:$0xff] %vm330_vm0, %v2824_v9  ;;  %v2813_v22 = vadd.f32 %v6868_v3, %v2812_v20  ;;  %v5543_v57 = vpack.i.bf16 %v2872_v55, %v2871_v16  ;;  %v2853_v26 = vld [vmem:[#allocation2 + $0x31] sm:$0xff] }
 0x502   : > { %v2814_v60 = vpop.f32.mrf.mxu0  ;;  %v2863_v40 = vld [vmem:[#allocation2 + $0x32] sm:$0xff] }
 0x503   : > { %v2825_v32 = vmax.f32 %v2813_v22, 0.0  ;;  %5544 = vrot.lane.b32.xlu0 %v5543_v57, %s5693_s28  ;;  %v2840_v9 = vld [vmem:[#allocation2 + $0x18] sm:$0xff] }
 0x504   : > { %v2854_v12 = vld [vmem:[#allocation2 + $0x39] sm:$0xff] }
 0x505   : > { %v2864_v35 = vld [vmem:[#allocation2 + $0x3a] sm:$0xff]  ;;  %2836 = vst.msk [vmem:[#allocation2 + $0x4a] sm:$0x3f] %vm2440_vm5, %v2825_v32  ;;  %v5548_v21 = vpack.i.bf16 %v2854_v12, %v2853_v26  ;;  %v2881_v26 = vld [vmem:[#allocation2 + $0x24] sm:$0xff] }
 0x506   : > { %v5553_v36 = vpack.i.bf16 %v2864_v35, %v2863_v40  ;;  %v2873_v37 = vld [vmem:[#allocation2 + $0x33] sm:$0xff]  ;;  %v2880_v22 = vld [vmem:[#allocation2 + $0x1c] sm:$0xff] }
 0x507   : > { %5549 = vrot.lane.b32.xlu1 %v5548_v21, %s5692_s23  ;;  %v2841_v21 = vld [vmem:[#allocation2 + $0x20] sm:$0xff] }
 0x508   : > { %5554 = vrot.lane.b32.xlu0 %v5553_v36, %s5691_s22  ;;  %v2874_v42 = vld [vmem:[#allocation2 + $0x3b] sm:$0xff] }
 0x509   : > { %v5558_v3 = vpack.i.bf16 %v2874_v42, %v2873_v37  ;;  %v2855_v38 = vld [vmem:[#allocation2 + $0x41] sm:$0xff] }
 0x50a   : > { %v2865_v0 = vld [vmem:[#allocation2 + $0x42] sm:$0xff] }
 0x50b   : > { %5559 = vrot.lane.b32.xlu1 %v5558_v3, %s5693_s28 }
 0x50c   : > { %2913 = vrot.lane.b32.xlu0 %v2855_v38, %s5692_s23  ;;  %v2875_v30 = vld [vmem:[#allocation2 + $0x43] sm:$0xff]  ;;  %v2876_v50 = vld [vmem:[#allocation2 + $0x4b] sm:$0x3f] }
 0x50d   : > { %v2856_v44 = vld [vmem:[#allocation2 + $0x49] sm:$0x3f] }
 0x50e   : > { %v2866_v45 = vld [vmem:[#allocation2 + $0x4a] sm:$0x3f] }
 0x50f   : > { %2953 = vrot.lane.b32.xlu1 %v2865_v0, %s5691_s22 }
 0x510   : > { %2993 = vrot.lane.b32.xlu0 %v2875_v30, %s5693_s28  ;;  %v2842_v30 = vld [vmem:[#allocation2 + $0x28] sm:$0xff] }
 0x513   : > { %2915 = vrot.lane.b32.xlu1 %v2856_v44, %s5692_s23 }
 0x514   : > { %2955 = vrot.lane.b32.xlu0 %v2866_v45, %s5691_s22 }
 0x517   : > { %2995 = vrot.lane.b32.xlu1 %v2876_v50, %s5693_s28 }
 0x549   : > { %v5510_v49 = vpop.permute.xlu1 %5509 }
 0x54a   : > { %v5505_v46 = vpop.permute.xlu0 %5504  ;;  %v5511_v23 = vunpack.i.l.bf16 %v5510_v49  ;;  %v5512_v53 = vunpack.i.h.bf16 %v5510_v49 }
 0x54b   : > { %v5506_v33 = vunpack.i.l.bf16 %v5505_v46  ;;  %v5507_v34 = vunpack.i.h.bf16 %v5505_v46 }
 0x54d   : > { %v3007_v54 = vsel %vm330_vm0, %v2837_v2, %v5506_v33  ;;  %v3008_v11 = vsel %vm330_vm0, %v2838_v24, %v5507_v34  ;;  %v2882_v33 = vld [vmem:[#allocation2 + $0x2c] sm:$0xff] }
 0x54e   : > { %v3017_v62 = vsel %vm1241_vm3, %v3007_v54, %v5511_v23  ;;  %v3018_v5 = vsel %vm1241_vm3, %v3008_v11, %v5512_v53  ;;  %v2843_v54 = vld [vmem:[#allocation2 + $0x30] sm:$0xff] }
 0x554   : > { %v5515_v56 = vpop.permute.xlu0 %5514 }
 0x555   : > { %v5516_v52 = vunpack.i.l.bf16 %v5515_v56  ;;  %v5517_v63 = vunpack.i.h.bf16 %v5515_v56 }
 0x557   : > { %v3027_v41 = vsel %vm1262_vm4, %v3017_v62, %v5516_v52  ;;  %v3028_v14 = vsel %vm1262_vm4, %v3018_v5, %v5517_v63  ;;  %v2883_v63 = vld [vmem:[#allocation2 + $0x34] sm:$0xff] }
 0x558   : > { %3161 = vmatmul.mubr.f32.vlgmr.msra.gmra.mxu1 %v3027_v41  ;;  %v5520_v8 = vpop.permute.xlu1 %5519  ;;  %v2844_v5 = vld [vmem:[#allocation2 + $0x38] sm:$0xff] }
 0x559   : > { %4912 = vmatprep.mubr.msk.f32.mxu1 %vm330_vm0, %v2878_v58  ;;  %v5521_v7 = vunpack.i.l.bf16 %v5520_v8  ;;  %v5525_v6 = vpop.permute.xlu0 %5524  ;;  %v5522_v13 = vunpack.i.h.bf16 %v5520_v8 }
 0x55a   : > { %v5526_v31 = vunpack.i.l.bf16 %v5525_v6  ;;  %v5527_v19 = vunpack.i.h.bf16 %v5525_v6  ;;  %v2884_v6 = vld [vmem:[#allocation2 + $0x3c] sm:$0xff] }
 0x55b   : > { %v3009_v17 = vsel %vm330_vm0, %v2839_v29, %v5521_v7  ;;  %v3010_v55 = vsel %vm330_vm0, %v2840_v9, %v5522_v13  ;;  %v2845_v29 = vld [vmem:[#allocation2 + $0x40] sm:$0xff]  ;;  %v2846_v9 = vld [vmem:[#allocation2 + $0x48] sm:$0x3f] }
 0x55c   : > { %3166 = vmatmul.mubr.f32.gmra.mxu1 %v3028_v14  ;;  %v3019_v25 = vsel %vm1241_vm3, %v3009_v17, %v5526_v31  ;;  %v3020_v57 = vsel %vm1241_vm3, %v3010_v55, %v5527_v19 }
 0x55d   : > { %4913 = vmatprep.mubr.msk.f32.mxu1 %vm330_vm0, %v2879_v48 }
 0x564   : > { %v5530_v18 = vpop.permute.xlu1 %5529 }
 0x565   : > { %v5531_v47 = vunpack.i.l.bf16 %v5530_v18  ;;  %v5532_v20 = vunpack.i.h.bf16 %v5530_v18 }
 0x567   : > { %v3029_v16 = vsel %vm1262_vm4, %v3019_v25, %v5531_v47  ;;  %v3030_v60 = vsel %vm1262_vm4, %v3020_v57, %v5532_v20  ;;  %v2885_v25 = vld [vmem:[#allocation2 + $0x44] sm:$0xff]  ;;  %v2886_v57 = vld [vmem:[#allocation2 + $0x4c] sm:$0x3f] }
 0x568   : > { %3171 = vmatmul.mubr.f32.gmra.mxu1 %v3029_v16  ;;  %v5540_v12 = vpop.permute.xlu1 %5539 }
 0x569   : > { %4914 = vmatprep.mubr.msk.f32.mxu1 %vm330_vm0, %v2880_v22  ;;  %v5535_v32 = vpop.permute.xlu0 %5534  ;;  %v5541_v35 = vunpack.i.l.bf16 %v5540_v12  ;;  %v5542_v38 = vunpack.i.h.bf16 %v5540_v12  ;;  %v4935_v12 = vld [vmem:[%s7799_s3 + $0x2f0] sm:$0xff] }
 0x56a   : > { %v5536_v40 = vunpack.i.l.bf16 %v5535_v32  ;;  %v5537_v36 = vunpack.i.h.bf16 %v5535_v32 }
 0x56c   : > { %3176 = vmatmul.mubr.f32.gmra.mxu1 %v3030_v60  ;;  %v3011_v37 = vsel %vm330_vm0, %v2841_v21, %v5536_v40  ;;  %v3012_v50 = vsel %vm330_vm0, %v2842_v30, %v5537_v36  ;;  %v4934_v40 = vld [vmem:[%s7799_s3 + $0x2e8] sm:$0xff]  ;;  %v4932_v21 = vld [vmem:[%s7799_s3 + $0x2d8] sm:$0xff]  ;;  %v4931_v36 = vld [vmem:[%s7799_s3 + $0x2d0] sm:$0xff] }
 0x56d   : > { %4915 = vmatprep.mubr.msk.f32.mxu1 %vm330_vm0, %v2881_v26  ;;  %v3021_v0 = vsel %vm1241_vm3, %v3011_v37, %v5541_v35  ;;  %v3022_v34 = vsel %vm1241_vm3, %v3012_v50, %v5542_v38  ;;  %v4936_v26 = vld [vmem:[%s7799_s3 + $0x2f8] sm:$0xff]  ;;  %v4933_v35 = vld [vmem:[%s7799_s3 + $0x2e0] sm:$0xff]  ;;  %v4930_v37 = vld [vmem:[%s7799_s3 + $0x2c8] sm:$0xff] }
 0x56e   : > { %3438 = vmatpush1.msra.mxu0 %v4936_v26  ;;  %v4927_v38 = vld [vmem:[%s7799_s3 + $0x2b0] sm:$0xff]  ;;  %v4925_v30 = vld [vmem:[%s7799_s3 + $0x2a0] sm:$0xff] }
 0x56f   : > { %3439 = vmatprep.subr.mxu0 %v5690_v1  ;;  %v7035_v50 = vld [vmem:[%s7800_s4 + $0x3] ss:$0 sm:$0xff] }
 0x570   : > { %3440 = vmatpush1.msra.mxu0 %v4935_v12 }
 0x571   : > { %3441 = vmatprep.subr.mxu0 %v5690_v1 }
 0x572   : > { %3442 = vmatpush1.msra.mxu0 %v4934_v40 }
 0x573   : > { %3443 = vmatprep.subr.mxu0 %v5690_v1 }
 0x574   : > { %3444 = vmatpush1.msra.mxu0 %v4933_v35 }
 0x575   : > { %v5545_v42 = vpop.permute.xlu0 %5544  ;;  %3445 = vmatprep.subr.mxu0 %v5690_v1 }
 0x576   : > { %v5546_v3 = vunpack.i.l.bf16 %v5545_v42  ;;  %v5547_v44 = vunpack.i.h.bf16 %v5545_v42  ;;  %3446 = vmatpush1.msra.mxu0 %v4932_v21  ;;  %v4929_v42 = vld [vmem:[%s7799_s3 + $0x2c0] sm:$0xff] }
 0x577   : > { %3447 = vmatprep.subr.mxu0 %v5690_v1 }
 0x578   : > { %v3031_v45 = vsel %vm1262_vm4, %v3021_v0, %v5546_v3  ;;  %v3032_v52 = vsel %vm1262_vm4, %v3022_v34, %v5547_v44  ;;  %3448 = vmatpush1.msra.mxu0 %v4931_v36  ;;  %v4928_v3 = vld [vmem:[%s7799_s3 + $0x2b8] sm:$0xff]  ;;  %v4926_v0 = vld [vmem:[%s7799_s3 + $0x2a8] sm:$0xff] }
 0x579   : > { %v5550_v46 = vpop.permute.xlu1 %5549  ;;  %3181 = vmatmul.mubr.f32.gmra.mxu1 %v3031_v45  ;;  %3449 = vmatprep.subr.mxu0 %v5690_v1  ;;  %v4924_v44 = vld [vmem:[%s7799_s3 + $0x298] sm:$0xff]  ;;  %v4923_v45 = vld [vmem:[%s7799_s3 + $0x290] sm:$0xff] }
 0x57a   : > { %v5555_v49 = vpop.permute.xlu0 %5554  ;;  %v5551_v23 = vunpack.i.l.bf16 %v5550_v46  ;;  %4916 = vmatprep.mubr.msk.f32.mxu1 %vm330_vm0, %v2882_v33  ;;  %v5552_v56 = vunpack.i.h.bf16 %v5550_v46  ;;  %3450 = vmatpush1.msra.mxu0 %v4930_v37 }
 0x57b   : > { %v5556_v2 = vunpack.i.l.bf16 %v5555_v49  ;;  %v5557_v11 = vunpack.i.h.bf16 %v5555_v49  ;;  %3451 = vmatprep.subr.mxu0 %v5690_v1 }
 0x57c   : > { %v3013_v53 = vsel %vm330_vm0, %v2843_v54, %v5551_v23  ;;  %v3014_v48 = vsel %vm330_vm0, %v2844_v5, %v5552_v56  ;;  %3452 = vmatpush1.msra.mxu0 %v4929_v42 }
 0x57d   : > { %v5560_v62 = vpop.permute.xlu1 %5559  ;;  %3186 = vmatmul.mubr.f32.gmra.mxu1 %v3032_v52  ;;  %v3023_v58 = vsel %vm1241_vm3, %v3013_v53, %v5556_v2  ;;  %v3024_v13 = vsel %vm1241_vm3, %v3014_v48, %v5557_v11  ;;  %3453 = vmatprep.subr.mxu0 %v5690_v1 }
 0x57e   : > { %v2914_v24 = vpop.permute.xlu0 %2913  ;;  %v5561_v41 = vunpack.i.l.bf16 %v5560_v62  ;;  %4917 = vmatprep.mubr.msk.f32.mxu1 %vm330_vm0, %v2883_v63  ;;  %v5562_v14 = vunpack.i.h.bf16 %v5560_v62  ;;  %3454 = vmatpush1.msra.mxu0 %v4928_v3 }
 0x57f   : > { %v3015_v17 = vsel %vm330_vm0, %v2845_v29, %v2914_v24  ;;  %3455 = vmatprep.subr.mxu0 %v5690_v1 }
 0x580   : > { %v3033_v8 = vsel %vm1262_vm4, %v3023_v58, %v5561_v41  ;;  %v3034_v18 = vsel %vm1262_vm4, %v3024_v13, %v5562_v14  ;;  %3456 = vmatpush1.msra.mxu0 %v4927_v38 }
 0x581   : > { %v2954_v7 = vpop.permute.xlu1 %2953  ;;  %3191 = vmatmul.mubr.f32.gmra.mxu1 %v3033_v8  ;;  %3457 = vmatprep.subr.mxu0 %v5690_v1 }
 0x582   : > { %v2994_v31 = vpop.permute.xlu0 %2993  ;;  %4918 = vmatprep.mubr.msk.f32.mxu1 %vm330_vm0, %v2884_v6  ;;  %v3025_v47 = vsel %vm1241_vm3, %v3015_v17, %v2954_v7  ;;  %3458 = vmatpush1.msra.mxu0 %v4926_v0 }
 0x583   : > { %v3035_v55 = vsel %vm1262_vm4, %v3025_v47, %v2994_v31  ;;  %3459 = vmatprep.subr.mxu0 %v5690_v1 }
 0x584   : > { %3460 = vmatpush1.msra.mxu0 %v4925_v30 }
 0x585   : > { %v2916_v19 = vpop.permute.xlu1 %2915  ;;  %3196 = vmatmul.mubr.f32.gmra.mxu1 %v3034_v18  ;;  %3461 = vmatprep.subr.mxu0 %v5690_v1 }
 0x586   : > { %4919 = vmatprep.mubr.msk.f32.mxu1 %vm330_vm0, %v2885_v25  ;;  %v3016_v20 = vsel %vm330_vm0, %v2846_v9, %v2916_v19  ;;  %v2956_v16 = vpop.permute.xlu0 %2955  ;;  %3462 = vmatpush1.msra.mxu0 %v4924_v44 }
 0x587   : > { %v3026_v60 = vsel %vm1241_vm3, %v3016_v20, %v2956_v16  ;;  %3463 = vmatprep.subr.mxu0 %v5690_v1 }
 0x588   : > { %3464 = vmatpush1.msra.mxu0 %v4923_v45 }
 0x589   : > { %v2996_v22 = vpop.permute.xlu1 %2995  ;;  %3201 = vmatmul.mubr.f32.gmra.mxu1 %v3035_v55  ;;  %3465 = vmatprep.subr.mxu0 %v5690_v1 }
 0x58a   : > { %4920 = vmatprep.mubr.msk.f32.mxu1 %vm330_vm0, %v2886_v57  ;;  %v3036_v32 = vsel %vm1262_vm4, %v3026_v60, %v2996_v22 }
 0x58d   : > { %3206 = vmatmul.mubr.f32.gmra.mxu1 %v3036_v32 }
 0x618   : > { %v3162_v46 = vpop.f32.mrf.mxu1 }
 0x619   : > { %v3163_v49 = vadd.f32 %v7035_v50, %v3162_v46 }
 0x61a   : > { %v3164_v33 = vpop.f32.mrf.mxu1 }
 0x61b   : > { %v3211_v23 = vadd.f32 %v3163_v49, %v6644_v28 }
 0x61c   : > { %v3167_v2 = vpop.f32.mrf.mxu1 }
 0x61d   : > { %v3221_v34 = vmax.f32 %v3211_v23, 0.0  ;;  %v3168_v54 = vadd.f32 %v7035_v50, %v3167_v2 }
 0x61e   : > { %v3169_v56 = vpop.f32.mrf.mxu1 }
 0x61f   : > { %3231 = vst.msk [vmem:[#allocation2 + $0x2] sm:$0xff] %vm330_vm0, %v3221_v34  ;;  %v3212_v52 = vadd.f32 %v3168_v54, %v6652_v51  ;;  %v4921_v54 = vld [vmem:[%s7799_s3 + $0x280] sm:$0xff] }
 0x621   : > { %v3222_v53 = vmax.f32 %v3212_v52, 0.0 }
 0x623   : > { %3232 = vst.msk [vmem:[#allocation2 + $0xa] sm:$0xff] %vm330_vm0, %v3222_v53 }
 0x628   : > { %v3172_v62 = vpop.f32.mrf.mxu1 }
 0x629   : > { %v3173_v24 = vadd.f32 %v7035_v50, %v3172_v62 }
 0x62a   : > { %v3174_v63 = vpop.f32.mrf.mxu1  ;;  %v3241_v51 = vld [vmem:[#allocation2 + $0x2] ss:$2 sm:$0xff]  ;;  %v3246_v48 = vld [vmem:[#allocation2 + $0x3] ss:$2 sm:$0xff] }
 0x62b   : > { %v3213_v41 = vadd.f32 %v3173_v24, %v6676_v15  ;;  %v3251_v7 = vmax.f32 %v3241_v51, %v3246_v48  ;;  %v4938_v51 = vld [vmem:[%s7799_s3 + $0x308] sm:$0xff] }
 0x62c   : > { %v3177_v11 = vpop.f32.mrf.mxu1 }
 0x62d   : > { %v3223_v28 = vmax.f32 %v3213_v41, 0.0  ;;  %v3178_v58 = vadd.f32 %v7035_v50, %v3177_v11 }
 0x62e   : > { %v3179_v5 = vpop.f32.mrf.mxu1 }
 0x62f   : > { %3233 = vst.msk [vmem:[#allocation2 + $0x12] sm:$0xff] %vm330_vm0, %v3223_v28  ;;  %v3214_v14 = vadd.f32 %v3178_v58, %v6699_v4  ;;  %v4939_v28 = vld [vmem:[%s7799_s3 + $0x310] sm:$0xff] }
 0x631   : > { %v3224_v8 = vmax.f32 %v3214_v14, 0.0 }
 0x633   : > { %3234 = vst.msk [vmem:[#allocation2 + $0x1a] sm:$0xff] %vm330_vm0, %v3224_v8 }
 0x636   : > { %v3256_v6 = vld [vmem:[#allocation2 + $0x4] ss:$2 sm:$0xff]  ;;  %v3266_v13 = vld [vmem:[#allocation2 + $0x5] ss:$2 sm:$0xff] }
 0x637   : > { %v3261_v31 = vmax.f32 %v3251_v7, %v3256_v6  ;;  %v3276_v47 = vld [vmem:[#allocation2 + $0x6] ss:$2 sm:$0xff] }
 0x639   : > { %v3182_v29 = vpop.f32.mrf.mxu1  ;;  %v3271_v17 = vmax.f32 %v3261_v31, %v3266_v13 }
 0x63a   : > { %v3183_v15 = vadd.f32 %v7035_v50, %v3182_v29  ;;  %v3242_v32 = vld [vmem:[#allocation2 + $0x12] ss:$2 sm:$0xff] }
 0x63b   : > { %v3184_v18 = vpop.f32.mrf.mxu1  ;;  %v7051_v25 = vmax.f32 %v3271_v17, %v3276_v47 }
 0x63c   : > { %v3215_v19 = vadd.f32 %v3183_v15, %v6712_v10  ;;  %v3247_v10 = vld [vmem:[#allocation2 + $0x13] ss:$2 sm:$0xff] }
 0x63d   : > { %v3187_v4 = vpop.f32.mrf.mxu1  ;;  %3287 = vst.msk [vmem:[#allocation2 + $0x2] sm:$0xff] %vm330_vm0, %v7051_v25  ;;  %v3252_v35 = vmax.f32 %v3242_v32, %v3247_v10  ;;  %v4937_v18 = vld [vmem:[%s7799_s3 + $0x300] sm:$0xff] }
 0x63e   : > { %v3225_v9 = vmax.f32 %v3215_v19, 0.0  ;;  %v3188_v20 = vadd.f32 %v7035_v50, %v3187_v4 }
 0x63f   : > { %v3189_v16 = vpop.f32.mrf.mxu1 }
 0x640   : > { %3235 = vst.msk [vmem:[#allocation2 + $0x22] sm:$0xff] %vm330_vm0, %v3225_v9  ;;  %v3216_v55 = vadd.f32 %v3188_v20, %v6724_v43 }
 0x641   : > { %v3192_v22 = vpop.f32.mrf.mxu1 }
 0x642   : > { %v3226_v57 = vmax.f32 %v3216_v55, 0.0  ;;  %v3193_v60 = vadd.f32 %v7035_v50, %v3192_v22 }
 0x643   : > { %v3194_v26 = vpop.f32.mrf.mxu1 }
 0x644   : > { %3236 = vst.msk [vmem:[#allocation2 + $0x2a] sm:$0xff] %vm330_vm0, %v3226_v57  ;;  %v3217_v12 = vadd.f32 %v3193_v60, %v6735_v27  ;;  %v3298_v7 = vld [vmem:[#allocation2 + $0x1] sm:$0xff] }
 0x645   : > { %v3197_v40 = vpop.f32.mrf.mxu1 }
 0x646   : > { %v3227_v21 = vmax.f32 %v3217_v12, 0.0  ;;  %v3198_v36 = vadd.f32 %v7035_v50, %v3197_v40 }
 0x647   : > { %v3257_v37 = vld [vmem:[#allocation2 + $0x14] ss:$2 sm:$0xff]  ;;  %v3199_v42 = vpop.f32.mrf.mxu1  ;;  %v3267_v38 = vld [vmem:[#allocation2 + $0x15] ss:$2 sm:$0xff] }
 0x648   : > { %v3262_v3 = vmax.f32 %v3252_v35, %v3257_v37  ;;  %3237 = vst.msk [vmem:[#allocation2 + $0x32] sm:$0xff] %vm330_vm0, %v3227_v21  ;;  %v3218_v43 = vadd.f32 %v3198_v36, %v6746_v59  ;;  %v3277_v46 = vld [vmem:[#allocation2 + $0x16] ss:$2 sm:$0xff]  ;;  %v4922_v59 = vld [vmem:[%s7799_s3 + $0x288] sm:$0xff] }
 0x649   : > { %v3202_v0 = vpop.f32.mrf.mxu1  ;;  %3466 = vmatpush1.msra.mxu0 %v4922_v59 }
 0x64a   : > { %v3272_v30 = vmax.f32 %v3262_v3, %v3267_v38  ;;  %v3228_v44 = vmax.f32 %v3218_v43, 0.0  ;;  %v3203_v45 = vadd.f32 %v7035_v50, %v3202_v0  ;;  %3467 = vmatprep.subr.mxu0 %v5690_v1 }
 0x64b   : > { %v3243_v27 = vld [vmem:[#allocation2 + $0x22] ss:$2 sm:$0xff]  ;;  %v3248_v49 = vld [vmem:[#allocation2 + $0x23] ss:$2 sm:$0xff]  ;;  %v3204_v33 = vpop.f32.mrf.mxu1  ;;  %3468 = vmatpush1.msra.mxu0 %v4921_v54 }
 0x64c   : > { %v7065_v23 = vmax.f32 %v3272_v30, %v3277_v46  ;;  %3238 = vst.msk [vmem:[#allocation2 + $0x3a] sm:$0xff] %vm330_vm0, %v3228_v44  ;;  %v3219_v2 = vadd.f32 %v3203_v45, %v6752_v39  ;;  %v3253_v56 = vmax.f32 %v3243_v27, %v3248_v49  ;;  %v4940_v39 = vld [vmem:[%s7799_s3 + $0x318] sm:$0xff]  ;;  %3493 = vmatprep.subr.mxu0 %v5690_v1  ;;  %v3293_v54 = vld [vmem:[#allocation2] sm:$0xff] }
 0x64d   : > { %v3207_v34 = vpop.f32.mrf.mxu1  ;;  %3494 = vmatpush2.msra.mxu0 %v4940_v39 }
 0x64e   : > { %v3229_v52 = vmax.f32 %v3219_v2, 0.0  ;;  %v3208_v53 = vadd.f32 %v7035_v50, %v3207_v34  ;;  %3288 = vst.msk [vmem:[#allocation2 + $0xa] sm:$0xff] %vm330_vm0, %v7065_v23  ;;  %3495 = vmatprep.subr.mxu0 %v5690_v1 }
 0x64f   : > { %v3258_v62 = vld [vmem:[#allocation2 + $0x24] ss:$2 sm:$0xff]  ;;  %v3268_v24 = vld [vmem:[#allocation2 + $0x25] ss:$2 sm:$0xff]  ;;  %v3209_v41 = vpop.f32.mrf.mxu1  ;;  %3496 = vmatpush2.msra.mxu0 %v4939_v28 }
 0x650   : > { %v3278_v63 = vld [vmem:[#allocation2 + $0x26] ss:$2 sm:$0xff]  ;;  %v3263_v11 = vmax.f32 %v3253_v56, %v3258_v62  ;;  %3239 = vst.msk [vmem:[#allocation2 + $0x42] sm:$0xff] %vm330_vm0, %v3229_v52  ;;  %v3220_v50 = vadd.f32 %v3208_v53, %v6758_v61  ;;  %3497 = vmatprep.subr.mxu0 %v5690_v1 }
 0x651   : > { %3286 = vst.msk [vmem:[#allocation2 + $0x27] sm:$0x3] %vm859_vm2, %v5690_v1  ;;  %v3303_v61 = vld [vmem:[#allocation2 + $0x2] sm:$0xff]  ;;  %3498 = vmatpush2.msra.mxu0 %v4938_v51 }
 0x652   : > { %v3273_v58 = vmax.f32 %v3263_v11, %v3268_v24  ;;  %v3230_v5 = vmax.f32 %v3220_v50, 0.0  ;;  %3499 = vmatprep.subr.mxu0 %v5690_v1 }
 0x653   : > { %v3244_v14 = vld [vmem:[#allocation2 + $0x32] ss:$2 sm:$0xff]  ;;  %v3249_v8 = vld [vmem:[#allocation2 + $0x33] ss:$2 sm:$0xff]  ;;  %3500 = vmatpush2.msra.mxu0 %v4937_v18 }
 0x654   : > { %v7094_v48 = vmax.f32 %v3273_v58, %v3278_v63  ;;  %3240 = vst.msk [vmem:[#allocation2 + $0x4a] sm:$0x3f] %vm2440_vm5, %v3230_v5  ;;  %v3254_v13 = vmax.f32 %v3244_v14, %v3249_v8  ;;  %3917 = vmatprep.subr.mxu0 %v5690_v1 }
 0x655   : > { %v3313_v6 = vld [vmem:[#allocation2 + $0x4] sm:$0xff] }
 0x656   : > { %v3304_v31 = vld [vmem:[#allocation2 + $0xa] sm:$0xff]  ;;  %4943 = vmatprep.mubr.msk.f32.mxu0 %vm330_vm0, %v3313_v6  ;;  %3289 = vst.msk [vmem:[#allocation2 + $0x12] sm:$0xff] %vm330_vm0, %v7094_v48 }
 0x657   : > { %v3299_v29 = vld [vmem:[#allocation2 + $0x9] sm:$0xff]  ;;  %v5568_v15 = vpack.i.bf16 %v3304_v31, %v3303_v61  ;;  %v3259_v47 = vld [vmem:[#allocation2 + $0x34] ss:$2 sm:$0xff]  ;;  %v3269_v4 = vld [vmem:[#allocation2 + $0x35] ss:$2 sm:$0xff] }
 0x658   : > { %v5563_v17 = vpack.i.bf16 %v3299_v29, %v3298_v7  ;;  %v3264_v19 = vmax.f32 %v3254_v13, %v3259_v47  ;;  %v3279_v20 = vld [vmem:[#allocation2 + $0x36] ss:$2 sm:$0xff]  ;;  %v3294_v63 = vld [vmem:[#allocation2 + $0x8] sm:$0xff] }
 0x659   : > { %5569 = vrot.lane.b32.xlu1 %v5568_v15, %s5691_s22  ;;  %v3308_v32 = vld [vmem:[#allocation2 + $0x3] sm:$0xff] }
 0x65a   : > { %5564 = vrot.lane.b32.xlu0 %v5563_v17, %s5692_s23  ;;  %v3274_v9 = vmax.f32 %v3264_v19, %v3269_v4 }
 0x65b   : > { %v3245_v16 = vld [vmem:[#allocation2 + $0x42] ss:$2 sm:$0x1f]  ;;  %v3250_v55 = vld [vmem:[#allocation2 + $0x43] ss:$2 sm:$0x1f] }
 0x65c   : > { %v7108_v22 = vmax.f32 %v3274_v9, %v3279_v20  ;;  %v3255_v57 = vmax.f32 %v3245_v16, %v3250_v55  ;;  %v3260_v60 = vld [vmem:[#allocation2 + $0x44] ss:$2 sm:$0x1f]  ;;  %v3270_v40 = vld [vmem:[#allocation2 + $0x45] ss:$2 sm:$0x1f] }
 0x65d   : > { %v3309_v10 = vld [vmem:[#allocation2 + $0xb] sm:$0xff] }
 0x65e   : > { %3290 = vst.msk [vmem:[#allocation2 + $0x1a] sm:$0xff] %vm330_vm0, %v7108_v22  ;;  %v3265_v26 = vmax.f32 %v3255_v57, %v3260_v60  ;;  %v5573_v12 = vpack.i.bf16 %v3309_v10, %v3308_v32  ;;  %v3280_v21 = vld [vmem:[#allocation2 + $0x46] ss:$2 sm:$0x1f]  ;;  %v3300_v37 = vld [vmem:[#allocation2 + $0x11] sm:$0xff] }
 0x65f   : > { %v3305_v3 = vld [vmem:[#allocation2 + $0x12] sm:$0xff] }
 0x660   : > { %v3275_v35 = vmax.f32 %v3265_v26, %v3270_v40  ;;  %5574 = vrot.lane.b32.xlu0 %v5573_v12, %s5693_s28  ;;  %v3314_v28 = vld [vmem:[#allocation2 + $0xc] sm:$0xff]  ;;  %v4963_v40 = vld [vmem:[%s7799_s3 + $0x398] sm:$0xff] }
 0x661   : > { %v3295_v29 = vld [vmem:[#allocation2 + $0x10] sm:$0xff]  ;;  %3683 = vmatpush1.msra.mxu1 %v4963_v40 }
 0x662   : > { %v7113_v36 = vmax.f32 %v3275_v35, %v3280_v21  ;;  %v4962_v35 = vld [vmem:[%s7799_s3 + $0x390] sm:$0xff]  ;;  %3684 = vmatprep.subr.mxu1 %v5690_v1  ;;  %v4961_v21 = vld [vmem:[%s7799_s3 + $0x388] sm:$0xff] }
 0x663   : > { %3685 = vmatpush1.msra.mxu1 %v4962_v35 }
 0x664   : > { %3292 = vst.msk [vmem:[#allocation2 + $0x22] sm:$0x1f] %vm3291_vm6, %v7113_v36  ;;  %3686 = vmatprep.subr.mxu1 %v5690_v1 }
 0x665   : > { %v3301_v42 = vld [vmem:[#allocation2 + $0x19] sm:$0xff]  ;;  %3687 = vmatpush1.msra.mxu1 %v4961_v21 }
 0x666   : > { %v3306_v43 = vld [vmem:[#allocation2 + $0x1a] sm:$0xff]  ;;  %v5578_v38 = vpack.i.bf16 %v3301_v42, %v3300_v37  ;;  %3688 = vmatprep.subr.mxu1 %v5690_v1 }
 0x667   : > { %v5583_v0 = vpack.i.bf16 %v3306_v43, %v3305_v3  ;;  %v3310_v30 = vld [vmem:[#allocation2 + $0x13] sm:$0xff]  ;;  %v4960_v37 = vld [vmem:[%s7799_s3 + $0x380] sm:$0xff]  ;;  %v4957_v43 = vld [vmem:[%s7799_s3 + $0x368] sm:$0xff] }
 0x668   : > { %5579 = vrot.lane.b32.xlu1 %v5578_v38, %s5692_s23  ;;  %v3315_v51 = vld [vmem:[#allocation2 + $0x14] sm:$0xff]  ;;  %3689 = vmatpush1.msra.mxu1 %v4960_v37  ;;  %v4956_v38 = vld [vmem:[%s7799_s3 + $0x360] sm:$0xff] }
 0x669   : > { %5584 = vrot.lane.b32.xlu0 %v5583_v0, %s5691_s22  ;;  %v3296_v13 = vld [vmem:[#allocation2 + $0x18] sm:$0xff]  ;;  %3690 = vmatprep.subr.mxu1 %v5690_v1  ;;  %v4958_v3 = vld [vmem:[%s7799_s3 + $0x370] sm:$0xff] }
 0x66a   : > { %v4959_v42 = vld [vmem:[%s7799_s3 + $0x378] sm:$0xff] }
 0x66b   : > { %v3311_v44 = vld [vmem:[#allocation2 + $0x1b] sm:$0xff]  ;;  %v3312_v45 = vld [vmem:[#allocation2 + $0x23] sm:$0x1f]  ;;  %3691 = vmatpush1.msra.mxu1 %v4959_v42 }
 0x66c   : > { %3367 = vrot.lane.b32.xlu1 %v3310_v30, %s5693_s28  ;;  %v3317_v46 = vld [vmem:[#allocation2 + $0x24] sm:$0x1f]  ;;  %v3316_v9 = vld [vmem:[#allocation2 + $0x1c] sm:$0xff]  ;;  %3692 = vmatprep.subr.mxu1 %v5690_v1  ;;  %v4954_v30 = vld [vmem:[%s7799_s3 + $0x350] sm:$0xff] }
 0x66d   : > { %3369 = vrot.lane.b32.xlu0 %v3311_v44, %s5693_s28  ;;  %3532 = vst.msk [vmem:[#allocation2 + $0x27] sm:$0x3] %vm859_vm2, %v5690_v1  ;;  %v3302_v27 = vld [vmem:[#allocation2 + $0x21] sm:$0x1f]  ;;  %3693 = vmatpush1.msra.mxu1 %v4958_v3  ;;  %v4955_v0 = vld [vmem:[%s7799_s3 + $0x358] sm:$0xff]  ;;  %v4953_v44 = vld [vmem:[%s7799_s3 + $0x348] sm:$0xff] }
 0x66e   : > { %v3307_v49 = vld [vmem:[#allocation2 + $0x22] sm:$0x1f]  ;;  %3694 = vmatprep.subr.mxu1 %v5690_v1 }
 0x66f   : > { %v3297_v16 = vld [vmem:[#allocation2 + $0x20] sm:$0x1f]  ;;  %3695 = vmatpush1.msra.mxu1 %v4957_v43 }
 0x670   : > { %3331 = vrot.lane.b32.xlu1 %v3302_v27, %s5692_s23  ;;  %3696 = vmatprep.subr.mxu1 %v5690_v1  ;;  %v4950_v27 = vld [vmem:[%s7799_s3 + $0x330] sm:$0xff] }
 0x671   : > { %3351 = vrot.lane.b32.xlu0 %v3307_v49, %s5691_s22  ;;  %3697 = vmatpush1.msra.mxu1 %v4956_v38  ;;  %v4949_v49 = vld [vmem:[%s7799_s3 + $0x328] sm:$0xff] }
 0x672   : > { %3698 = vmatprep.subr.mxu1 %v5690_v1 }
 0x673   : > { %3699 = vmatpush1.msra.mxu1 %v4955_v0 }
 0x674   : > { %3371 = vrot.lane.b32.xlu1 %v3312_v45, %s5693_s28  ;;  %3700 = vmatprep.subr.mxu1 %v5690_v1  ;;  %v4952_v45 = vld [vmem:[%s7799_s3 + $0x340] sm:$0xff] }
 0x675   : > { %3701 = vmatpush1.msra.mxu1 %v4954_v30 }
 0x676   : > { %3702 = vmatprep.subr.mxu1 %v5690_v1 }
 0x677   : > { %3703 = vmatpush1.msra.mxu1 %v4953_v44 }
 0x678   : > { %3704 = vmatprep.subr.mxu1 %v5690_v1 }
 0x679   : > { %3705 = vmatpush1.msra.mxu1 %v4952_v45 }
 0x67a   : > { %3706 = vmatprep.subr.mxu1 %v5690_v1 }
 0x6cb   : > { %v5570_v2 = vpop.permute.xlu1 %5569 }
 0x6cc   : > { %v5565_v33 = vpop.permute.xlu0 %5564  ;;  %v5571_v59 = vunpack.i.l.bf16 %v5570_v2  ;;  %v5572_v62 = vunpack.i.h.bf16 %v5570_v2  ;;  %v4942_v2 = vld [vmem:[%s7800_s4 + $0x4] ss:$0 sm:$0xff] }
 0x6cd   : > { %v5566_v34 = vunpack.i.l.bf16 %v5565_v33  ;;  %v5567_v56 = vunpack.i.h.bf16 %v5565_v33  ;;  %v4948_v33 = vld [vmem:[%s7799_s3 + $0x320] sm:$0xff] }
 0x6cf   : > { %v3378_v52 = vsel %vm330_vm0, %v3293_v54, %v5566_v34  ;;  %v3379_v50 = vsel %vm330_vm0, %v3294_v63, %v5567_v56  ;;  %v4966_v63 = vld [vmem:[%s7799_s3 + $0x3b0] sm:$0xff] }
 0x6d0   : > { %v3383_v24 = vsel %vm1241_vm3, %v3378_v52, %v5571_v59  ;;  %v3384_v58 = vsel %vm1241_vm3, %v3379_v50, %v5572_v62 }
 0x6d2   : > { %v5575_v53 = vpop.permute.xlu0 %5574 }
 0x6d3   : > { %v5576_v39 = vunpack.i.l.bf16 %v5575_v53  ;;  %v5577_v41 = vunpack.i.h.bf16 %v5575_v53 }
 0x6d5   : > { %v3388_v11 = vsel %vm1262_vm4, %v3383_v24, %v5576_v39  ;;  %v3389_v5 = vsel %vm1262_vm4, %v3384_v58, %v5577_v41  ;;  %v4967_v24 = vld [vmem:[%s7799_s3 + $0x3b8] sm:$0xff] }
 0x6d6   : > { %3502 = vmatmul.mubr.f32.vlgmr.msra.gmra.mxu0 %v3388_v11  ;;  %v4965_v11 = vld [vmem:[%s7799_s3 + $0x3a8] sm:$0xff] }
 0x6d7   : > { %4944 = vmatprep.mubr.msk.f32.mxu0 %vm330_vm0, %v3314_v28 }
 0x6da   : > { %v5580_v14 = vpop.permute.xlu1 %5579  ;;  %3507 = vmatmul.mubr.f32.gmra.mxu0 %v3389_v5  ;;  %v4964_v5 = vld [vmem:[%s7799_s3 + $0x3a0] sm:$0xff] }
 0x6db   : > { %v5585_v8 = vpop.permute.xlu0 %5584  ;;  %v5582_v61 = vunpack.i.h.bf16 %v5580_v14  ;;  %v5581_v7 = vunpack.i.l.bf16 %v5580_v14  ;;  %4945 = vmatprep.mubr.msk.f32.mxu0 %vm330_vm0, %v3315_v51 }
 0x6dc   : > { %v5586_v6 = vunpack.i.l.bf16 %v5585_v8  ;;  %v5587_v31 = vunpack.i.h.bf16 %v5585_v8 }
 0x6dd   : > { %v3380_v15 = vsel %vm330_vm0, %v3295_v29, %v5581_v7  ;;  %v3381_v17 = vsel %vm330_vm0, %v3296_v13, %v5582_v61 }
 0x6de   : > { %v3368_v18 = vpop.permute.xlu1 %3367  ;;  %v3385_v19 = vsel %vm1241_vm3, %v3380_v15, %v5586_v6  ;;  %v3386_v20 = vsel %vm1241_vm3, %v3381_v17, %v5587_v31 }
 0x6df   : > { %v3370_v47 = vpop.permute.xlu0 %3369  ;;  %v3390_v4 = vsel %vm1262_vm4, %v3385_v19, %v3368_v18 }
 0x6e0   : > { %3512 = vmatmul.mubr.f32.gmra.mxu0 %v3390_v4  ;;  %v3391_v32 = vsel %vm1262_vm4, %v3386_v20, %v3370_v47 }
 0x6e1   : > { %4946 = vmatprep.mubr.msk.f32.mxu0 %vm330_vm0, %v3316_v9 }
 0x6e2   : > { %v3332_v55 = vpop.permute.xlu1 %3331 }
 0x6e3   : > { %v3382_v57 = vsel %vm330_vm0, %v3297_v16, %v3332_v55  ;;  %v3352_v60 = vpop.permute.xlu0 %3351 }
 0x6e4   : > { %3517 = vmatmul.mubr.f32.gmra.mxu0 %v3391_v32  ;;  %v3387_v10 = vsel %vm1241_vm3, %v3382_v57, %v3352_v60 }
 0x6e5   : > { %4947 = vmatprep.mubr.msk.f32.mxu0 %vm330_vm0, %v3317_v46  ;;  %v4951_v46 = vld [vmem:[%s7799_s3 + $0x338] sm:$0xff] }
 0x6e6   : > { %v3372_v26 = vpop.permute.xlu1 %3371  ;;  %3707 = vmatpush1.msra.mxu1 %v4951_v46 }
 0x6e7   : > { %v3392_v12 = vsel %vm1262_vm4, %v3387_v10, %v3372_v26  ;;  %3708 = vmatprep.subr.mxu1 %v5690_v1 }
 0x6e8   : > { %3522 = vmatmul.mubr.f32.gmra.mxu0 %v3392_v12  ;;  %3709 = vmatpush1.msra.mxu1 %v4950_v27 }
 0x6e9   : > { %3710 = vmatprep.subr.mxu1 %v5690_v1 }
 0x6ea   : > { %3711 = vmatpush1.msra.mxu1 %v4949_v49 }
 0x6eb   : > { %3712 = vmatprep.subr.mxu1 %v5690_v1 }
 0x6ec   : > { %3713 = vmatpush1.msra.mxu1 %v4948_v33 }
 0x6ed   : > { %3738 = vmatprep.subr.mxu1 %v5690_v1 }
 0x6ee   : > { %3739 = vmatpush2.msra.mxu1 %v4967_v24 }
 0x6ef   : > { %3740 = vmatprep.subr.mxu1 %v5690_v1 }
 0x6f0   : > { %3741 = vmatpush2.msra.mxu1 %v4966_v63 }
 0x6f1   : > { %3742 = vmatprep.subr.mxu1 %v5690_v1 }
 0x6f2   : > { %3743 = vmatpush2.msra.mxu1 %v4965_v11 }
 0x6f3   : > { %3744 = vmatprep.subr.mxu1 %v5690_v1 }
 0x6f4   : > { %3745 = vmatpush2.msra.mxu1 %v4964_v5 }
 0x6f5   : > { %4102 = vmatprep.subr.mxu1 %v5690_v1 }
 0x796   : > { %v3503_v34 = vpop.f32.mrf.mxu0 }
 0x797   : > { %v3504_v59 = vadd.f32 %v4942_v2, %v3503_v34 }
 0x798   : > { %v3505_v54 = vpop.f32.mrf.mxu0 }
 0x799   : > { %v3527_v56 = vmax.f32 %v3504_v59, 0.0 }
 0x79a   : > { %v3508_v52 = vpop.f32.mrf.mxu0 }
 0x79b   : > { %3533 = vst.msk [vmem:[#allocation2 + $0x2] sm:$0xff] %vm330_vm0, %v3527_v56  ;;  %v3509_v53 = vadd.f32 %v4942_v2, %v3508_v52 }
 0x79c   : > { %v3510_v39 = vpop.f32.mrf.mxu0 }
 0x79d   : > { %v3528_v62 = vmax.f32 %v3509_v53, 0.0 }
 0x79f   : > { %3534 = vst.msk [vmem:[#allocation2 + $0xa] sm:$0xff] %vm330_vm0, %v3528_v62 }
 0x7a0   : > { %v3513_v41 = vpop.f32.mrf.mxu0 }
 0x7a1   : > { %v3514_v50 = vadd.f32 %v4942_v2, %v3513_v41 }
 0x7a2   : > { %v3515_v28 = vpop.f32.mrf.mxu0  ;;  %v3548_v51 = vld [vmem:[#allocation2 + $0x2] sm:$0xff] }
 0x7a3   : > { %v3529_v58 = vmax.f32 %v3514_v50, 0.0  ;;  %v3543_v61 = vld [vmem:[#allocation2 + $0x1] sm:$0xff] }
 0x7a4   : > { %v3518_v14 = vpop.f32.mrf.mxu0  ;;  %v3538_v0 = vld [vmem:[#allocation2] sm:$0xff] }
 0x7a5   : > { %3535 = vst.msk [vmem:[#allocation2 + $0x12] sm:$0xff] %vm330_vm0, %v3529_v58  ;;  %v3519_v8 = vadd.f32 %v4942_v2, %v3518_v14 }
 0x7a6   : > { %v3520_v7 = vpop.f32.mrf.mxu0  ;;  %v3558_v6 = vld [vmem:[#allocation2 + $0x4] sm:$0xff] }
 0x7a7   : > { %v3549_v31 = vld [vmem:[#allocation2 + $0xa] sm:$0xff]  ;;  %v3530_v13 = vmax.f32 %v3519_v8, 0.0  ;;  %4970 = vmatprep.mubr.msk.f32.mxu1 %vm330_vm0, %v3558_v6 }
 0x7a8   : > { %v3544_v29 = vld [vmem:[#allocation2 + $0x9] sm:$0xff]  ;;  %v5593_v15 = vpack.i.bf16 %v3549_v31, %v3548_v51  ;;  %v3523_v18 = vpop.f32.mrf.mxu0 }
 0x7a9   : > { %v5588_v17 = vpack.i.bf16 %v3544_v29, %v3543_v61  ;;  %3536 = vst.msk [vmem:[#allocation2 + $0x1a] sm:$0xff] %vm330_vm0, %v3530_v13  ;;  %v3524_v47 = vadd.f32 %v4942_v2, %v3523_v18  ;;  %v3553_v9 = vld [vmem:[#allocation2 + $0x3] sm:$0xff] }
 0x7aa   : > { %5594 = vrot.lane.b32.xlu1 %v5593_v15, %s5691_s22  ;;  %v3525_v19 = vpop.f32.mrf.mxu0  ;;  %v3539_v33 = vld [vmem:[#allocation2 + $0x8] sm:$0xff] }
 0x7ab   : > { %5589 = vrot.lane.b32.xlu0 %v5588_v17, %s5692_s23  ;;  %v3531_v4 = vmax.f32 %v3524_v47, 0.0 }
 0x7ac   : > { %v3554_v20 = vld [vmem:[#allocation2 + $0xb] sm:$0xff] }
 0x7ad   : > { %3537 = vst.msk [vmem:[#allocation2 + $0x22] sm:$0x1f] %vm3291_vm6, %v3531_v4  ;;  %v5598_v16 = vpack.i.bf16 %v3554_v20, %v3553_v9  ;;  %v3545_v55 = vld [vmem:[#allocation2 + $0x11] sm:$0xff] }
 0x7ae   : > { %v3550_v60 = vld [vmem:[#allocation2 + $0x12] sm:$0xff] }
 0x7af   : > { %5599 = vrot.lane.b32.xlu0 %v5598_v16, %s5693_s28  ;;  %v3559_v52 = vld [vmem:[#allocation2 + $0xc] sm:$0xff]  ;;  %v4990_v9 = vld [vmem:[%s7799_s3 + $0x438] sm:$0xff] }
 0x7b0   : > { %v3546_v57 = vld [vmem:[#allocation2 + $0x19] sm:$0xff]  ;;  %v3540_v63 = vld [vmem:[#allocation2 + $0x10] sm:$0xff]  ;;  %3918 = vmatpush1.msra.mxu0 %v4990_v9  ;;  %v4988_v16 = vld [vmem:[%s7799_s3 + $0x428] sm:$0xff] }
 0x7b1   : > { %v3551_v32 = vld [vmem:[#allocation2 + $0x1a] sm:$0xff]  ;;  %v5603_v10 = vpack.i.bf16 %v3546_v57, %v3545_v55  ;;  %v4989_v20 = vld [vmem:[%s7799_s3 + $0x430] sm:$0xff]  ;;  %3919 = vmatprep.subr.mxu0 %v5690_v1 }
 0x7b2   : > { %v5608_v26 = vpack.i.bf16 %v3551_v32, %v3550_v60  ;;  %v3555_v12 = vld [vmem:[#allocation2 + $0x13] sm:$0xff]  ;;  %3920 = vmatpush1.msra.mxu0 %v4989_v20  ;;  %v4987_v55 = vld [vmem:[%s7799_s3 + $0x420] sm:$0xff]  ;;  %v4984_v32 = vld [vmem:[%s7799_s3 + $0x408] sm:$0xff] }
 0x7b3   : > { %5604 = vrot.lane.b32.xlu1 %v5603_v10, %s5692_s23  ;;  %v3560_v58 = vld [vmem:[#allocation2 + $0x14] sm:$0xff]  ;;  %3921 = vmatprep.subr.mxu0 %v5690_v1  ;;  %v4983_v10 = vld [vmem:[%s7799_s3 + $0x400] sm:$0xff] }
 0x7b4   : > { %5609 = vrot.lane.b32.xlu0 %v5608_v26, %s5691_s22  ;;  %v3556_v40 = vld [vmem:[#allocation2 + $0x1b] sm:$0xff]  ;;  %v3557_v37 = vld [vmem:[#allocation2 + $0x23] sm:$0x1f]  ;;  %3922 = vmatpush1.msra.mxu0 %v4988_v16  ;;  %v4985_v60 = vld [vmem:[%s7799_s3 + $0x410] sm:$0xff] }
 0x7b5   : > { %v3547_v35 = vld [vmem:[#allocation2 + $0x21] sm:$0x1f]  ;;  %v3541_v14 = vld [vmem:[#allocation2 + $0x18] sm:$0xff]  ;;  %3923 = vmatprep.subr.mxu0 %v5690_v1  ;;  %v4993_v16 = vld [vmem:[%s7799_s3 + $0x450] sm:$0xff] }
 0x7b6   : > { %v3552_v21 = vld [vmem:[#allocation2 + $0x22] sm:$0x1f]  ;;  %v4986_v57 = vld [vmem:[%s7799_s3 + $0x418] sm:$0xff]  ;;  %3924 = vmatpush1.msra.mxu0 %v4987_v55  ;;  %v4992_v55 = vld [vmem:[%s7799_s3 + $0x448] sm:$0xff] }
 0x7b7   : > { %3612 = vrot.lane.b32.xlu1 %v3555_v12, %s5693_s28  ;;  %v3561_v6 = vld [vmem:[#allocation2 + $0x1c] sm:$0xff]  ;;  %v3562_v47 = vld [vmem:[#allocation2 + $0x24] sm:$0x1f]  ;;  %3925 = vmatprep.subr.mxu0 %v5690_v1  ;;  %v4981_v12 = vld [vmem:[%s7799_s3 + $0x3f0] sm:$0xff] }
 0x7b8   : > { %3614 = vrot.lane.b32.xlu0 %v3556_v40, %s5693_s28  ;;  %v3542_v29 = vld [vmem:[#allocation2 + $0x20] sm:$0x1f]  ;;  %3926 = vmatpush1.msra.mxu0 %v4986_v57  ;;  %v4982_v26 = vld [vmem:[%s7799_s3 + $0x3f8] sm:$0xff]  ;;  %v4980_v40 = vld [vmem:[%s7799_s3 + $0x3e8] sm:$0xff] }
 0x7b9   : > { %3927 = vmatprep.subr.mxu0 %v5690_v1 }
 0x7ba   : > { %3928 = vmatpush1.msra.mxu0 %v4985_v60 }
 0x7bb   : > { %3576 = vrot.lane.b32.xlu1 %v3547_v35, %s5692_s23  ;;  %3929 = vmatprep.subr.mxu0 %v5690_v1  ;;  %v4979_v35 = vld [vmem:[%s7799_s3 + $0x3e0] sm:$0xff] }
 0x7bc   : > { %3596 = vrot.lane.b32.xlu0 %v3552_v21, %s5691_s22  ;;  %3930 = vmatpush1.msra.mxu0 %v4984_v32  ;;  %v4978_v21 = vld [vmem:[%s7799_s3 + $0x3d8] sm:$0xff] }
 0x7bd   : > { %3931 = vmatprep.subr.mxu0 %v5690_v1 }
 0x7be   : > { %3932 = vmatpush1.msra.mxu0 %v4983_v10 }
 0x7bf   : > { %3616 = vrot.lane.b32.xlu1 %v3557_v37, %s5693_s28  ;;  %3933 = vmatprep.subr.mxu0 %v5690_v1  ;;  %v4977_v37 = vld [vmem:[%s7799_s3 + $0x3d0] sm:$0xff] }
 0x7c0   : > { %3934 = vmatpush1.msra.mxu0 %v4982_v26 }
 0x7c1   : > { %3935 = vmatprep.subr.mxu0 %v5690_v1 }
 0x7c2   : > { %3936 = vmatpush1.msra.mxu0 %v4981_v12  ;;  %v4991_v12 = vld [vmem:[%s7799_s3 + $0x440] sm:$0xff] }
 0x7c3   : > { %3937 = vmatprep.subr.mxu0 %v5690_v1 }
 0x7c4   : > { %3938 = vmatpush1.msra.mxu0 %v4980_v40 }
 0x7c5   : > { %3939 = vmatprep.subr.mxu0 %v5690_v1 }
 0x7c6   : > { %3940 = vmatpush1.msra.mxu0 %v4979_v35 }
 0x7c7   : > { %3941 = vmatprep.subr.mxu0 %v5690_v1 }
 0x7c8   : > { %3942 = vmatpush1.msra.mxu0 %v4978_v21 }
 0x7c9   : > { %3943 = vmatprep.subr.mxu0 %v5690_v1 }
 0x7ca   : > { %3944 = vmatpush1.msra.mxu0 %v4977_v37 }
 0x7cb   : > { %3945 = vmatprep.subr.mxu0 %v5690_v1 }
 0x81c   : > { %v5595_v3 = vpop.permute.xlu1 %5594 }
 0x81d   : > { %v5590_v42 = vpop.permute.xlu0 %5589  ;;  %v5596_v38 = vunpack.i.l.bf16 %v5595_v3  ;;  %v5597_v27 = vunpack.i.h.bf16 %v5595_v3  ;;  %v4975_v3 = vld [vmem:[%s7799_s3 + $0x3c0] sm:$0xff] }
 0x81e   : > { %v5591_v43 = vunpack.i.l.bf16 %v5590_v42  ;;  %v5592_v30 = vunpack.i.h.bf16 %v5590_v42  ;;  %v4976_v42 = vld [vmem:[%s7799_s3 + $0x3c8] sm:$0xff] }
 0x81f   : > { %3946 = vmatpush1.msra.mxu0 %v4976_v42 }
 0x820   : > { %v3623_v44 = vsel %vm330_vm0, %v3538_v0, %v5591_v43  ;;  %v3624_v59 = vsel %vm330_vm0, %v3539_v33, %v5592_v30  ;;  %3947 = vmatprep.subr.mxu0 %v5690_v1  ;;  %v4994_v43 = vld [vmem:[%s7799_s3 + $0x458] sm:$0xff] }
 0x821   : > { %v5600_v45 = vpop.permute.xlu0 %5599  ;;  %v3628_v49 = vsel %vm1241_vm3, %v3623_v44, %v5596_v38  ;;  %v3629_v24 = vsel %vm1241_vm3, %v3624_v59, %v5597_v27  ;;  %3948 = vmatpush1.msra.mxu0 %v4975_v3  ;;  %v4969_v38 = vld [vmem:[%s7800_s4 + $0x5] ss:$0 sm:$0xff] }
 0x822   : > { %v5601_v46 = vunpack.i.l.bf16 %v5600_v45  ;;  %v5602_v2 = vunpack.i.h.bf16 %v5600_v45  ;;  %3973 = vmatprep.subr.mxu0 %v5690_v1 }
 0x823   : > { %3974 = vmatpush2.msra.mxu0 %v4994_v43 }
 0x824   : > { %v3633_v34 = vsel %vm1262_vm4, %v3628_v49, %v5601_v46  ;;  %v3634_v41 = vsel %vm1262_vm4, %v3629_v24, %v5602_v2  ;;  %3975 = vmatprep.subr.mxu0 %v5690_v1 }
 0x825   : > { %v5605_v54 = vpop.permute.xlu1 %5604  ;;  %3747 = vmatmul.mubr.f32.vlgmr.msra.gmra.mxu1 %v3633_v34  ;;  %3976 = vmatpush2.msra.mxu0 %v4993_v16  ;;  %v4996_v16 = vld [vmem:[%s7800_s4 + $0x6] ss:$0 sm:$0xff] }
 0x826   : > { %v5610_v56 = vpop.permute.xlu0 %5609  ;;  %v5607_v53 = vunpack.i.h.bf16 %v5605_v54  ;;  %v5606_v39 = vunpack.i.l.bf16 %v5605_v54  ;;  %4971 = vmatprep.mubr.msk.f32.mxu1 %vm330_vm0, %v3559_v52  ;;  %3977 = vmatprep.subr.mxu0 %v5690_v1 }
 0x827   : > { %v5611_v62 = vunpack.i.l.bf16 %v5610_v56  ;;  %v5612_v50 = vunpack.i.h.bf16 %v5610_v56  ;;  %3978 = vmatpush2.msra.mxu0 %v4992_v55 }
 0x828   : > { %v3625_v11 = vsel %vm330_vm0, %v3540_v63, %v5606_v39  ;;  %v3626_v51 = vsel %vm330_vm0, %v3541_v14, %v5607_v53  ;;  %3979 = vmatprep.subr.mxu0 %v5690_v1 }
 0x829   : > { %v3613_v28 = vpop.permute.xlu1 %3612  ;;  %3752 = vmatmul.mubr.f32.gmra.mxu1 %v3634_v41  ;;  %v3630_v5 = vsel %vm1241_vm3, %v3625_v11, %v5611_v62  ;;  %v3631_v31 = vsel %vm1241_vm3, %v3626_v51, %v5612_v50  ;;  %3980 = vmatpush2.msra.mxu0 %v4991_v12 }
 0x82a   : > { %v3615_v8 = vpop.permute.xlu0 %3614  ;;  %4972 = vmatprep.mubr.msk.f32.mxu1 %vm330_vm0, %v3560_v58  ;;  %v3635_v61 = vsel %vm1262_vm4, %v3630_v5, %v3613_v28  ;;  %4255 = vmatprep.subr.mxu0 %v5690_v1 }
 0x82b   : > { %v3636_v17 = vsel %vm1262_vm4, %v3631_v31, %v3615_v8 }
 0x82d   : > { %v3577_v7 = vpop.permute.xlu1 %3576  ;;  %3757 = vmatmul.mubr.f32.gmra.mxu1 %v3635_v61 }
 0x82e   : > { %4973 = vmatprep.mubr.msk.f32.mxu1 %vm330_vm0, %v3561_v6  ;;  %v3627_v13 = vsel %vm330_vm0, %v3542_v29, %v3577_v7  ;;  %v3597_v15 = vpop.permute.xlu0 %3596 }
 0x82f   : > { %v3632_v19 = vsel %vm1241_vm3, %v3627_v13, %v3597_v15 }
 0x831   : > { %v3617_v18 = vpop.permute.xlu1 %3616  ;;  %3762 = vmatmul.mubr.f32.gmra.mxu1 %v3636_v17 }
 0x832   : > { %4974 = vmatprep.mubr.msk.f32.mxu1 %vm330_vm0, %v3562_v47  ;;  %v3637_v4 = vsel %vm1262_vm4, %v3632_v19, %v3617_v18 }
 0x835   : > { %3767 = vmatmul.mubr.f32.gmra.mxu1 %v3637_v4 }
 0x8e5   : > { %v3748_v0 = vpop.f32.mrf.mxu1 }
 0x8e6   : > { %v3749_v30 = vadd.f32 %v4969_v38, %v3748_v0 }
 0x8e7   : > { %v3750_v44 = vpop.f32.mrf.mxu1 }
 0x8e8   : > { %v3772_v45 = vadd.f32 %v3749_v30, %v7051_v25 }
 0x8e9   : > { %v3753_v46 = vpop.f32.mrf.mxu1 }
 0x8ea   : > { %v3777_v27 = vmax.f32 %v3772_v45, 0.0  ;;  %v3754_v49 = vadd.f32 %v4969_v38, %v3753_v46 }
 0x8eb   : > { %v3755_v33 = vpop.f32.mrf.mxu1 }
 0x8ec   : > { %3782 = vst.msk [vmem:[#allocation2 + $0x2] sm:$0xff] %vm330_vm0, %v3777_v27  ;;  %v3773_v2 = vadd.f32 %v3754_v49, %v7065_v23 }
 0x8ed   : > { %v3758_v34 = vpop.f32.mrf.mxu1 }
 0x8ee   : > { %v3778_v59 = vmax.f32 %v3773_v2, 0.0  ;;  %v3759_v54 = vadd.f32 %v4969_v38, %v3758_v34 }
 0x8ef   : > { %v3760_v56 = vpop.f32.mrf.mxu1 }
 0x8f0   : > { %3783 = vst.msk [vmem:[#allocation2 + $0xa] sm:$0xff] %vm330_vm0, %v3778_v59  ;;  %v3774_v52 = vadd.f32 %v3759_v54, %v7094_v48 }
 0x8f1   : > { %v3763_v53 = vpop.f32.mrf.mxu1 }
 0x8f2   : > { %v3779_v39 = vmax.f32 %v3774_v52, 0.0  ;;  %v3764_v62 = vadd.f32 %v4969_v38, %v3763_v53 }
 0x8f3   : > { %v3765_v25 = vpop.f32.mrf.mxu1 }
 0x8f4   : > { %3784 = vst.msk [vmem:[#allocation2 + $0x12] sm:$0xff] %vm330_vm0, %v3779_v39  ;;  %v3775_v24 = vadd.f32 %v3764_v62, %v7108_v22 }
 0x8f5   : > { %v3768_v63 = vpop.f32.mrf.mxu1 }
 0x8f6   : > { %v3780_v41 = vmax.f32 %v3775_v24, 0.0  ;;  %v3769_v11 = vadd.f32 %v4969_v38, %v3768_v63 }
 0x8f7   : > { %v3770_v23 = vpop.f32.mrf.mxu1  ;;  %v3787_v50 = vld [vmem:[#allocation2 + $0x2] ss:$2 sm:$0xff]  ;;  %v3790_v28 = vld [vmem:[#allocation2 + $0x3] ss:$2 sm:$0xff] }
 0x8f8   : > { %3785 = vst.msk [vmem:[#allocation2 + $0x1a] sm:$0xff] %vm330_vm0, %v3780_v41  ;;  %v3776_v58 = vadd.f32 %v3769_v11, %v7113_v36  ;;  %v3793_v48 = vmax.f32 %v3787_v50, %v3790_v28 }
 0x8fa   : > { %v3781_v5 = vmax.f32 %v3776_v58, 0.0 }
 0x8fb   : > { %v3796_v14 = vld [vmem:[#allocation2 + $0x4] ss:$2 sm:$0xff]  ;;  %v3802_v51 = vld [vmem:[#allocation2 + $0x5] ss:$2 sm:$0xff] }
 0x8fc   : > { %3786 = vst.msk [vmem:[#allocation2 + $0x22] sm:$0x1f] %vm3291_vm6, %v3781_v5  ;;  %v3799_v8 = vmax.f32 %v3793_v48, %v3796_v14  ;;  %v3808_v6 = vld [vmem:[#allocation2 + $0x6] ss:$2 sm:$0xff] }
 0x8fe   : > { %v3805_v61 = vmax.f32 %v3799_v8, %v3802_v51  ;;  %v5015_v8 = vld [vmem:[%s7799_s3 + $0x4d8] sm:$0xff]  ;;  %v5014_v51 = vld [vmem:[%s7799_s3 + $0x4d0] sm:$0xff] }
 0x8ff   : > { %v3788_v7 = vld [vmem:[#allocation2 + $0x12] ss:$2 sm:$0xff]  ;;  %v3791_v22 = vld [vmem:[#allocation2 + $0x13] ss:$2 sm:$0xff]  ;;  %4103 = vmatpush1.msra.mxu1 %v5015_v8 }
 0x900   : > { %v7344_v31 = vmax.f32 %v3805_v61, %v3808_v6  ;;  %v3794_v29 = vmax.f32 %v3788_v7, %v3791_v22  ;;  %4104 = vmatprep.subr.mxu1 %v5690_v1  ;;  %v5013_v61 = vld [vmem:[%s7799_s3 + $0x4c8] sm:$0xff]  ;;  %v5012_v7 = vld [vmem:[%s7799_s3 + $0x4c0] sm:$0xff]  ;;  %v5011_v22 = vld [vmem:[%s7799_s3 + $0x4b8] sm:$0xff] }
 0x901   : > { %4105 = vmatpush1.msra.mxu1 %v5014_v51  ;;  %v5010_v6 = vld [vmem:[%s7799_s3 + $0x4b0] sm:$0xff] }
 0x902   : > { %3815 = vst.msk [vmem:[#allocation2 + $0x2] sm:$0xff] %vm330_vm0, %v7344_v31  ;;  %4106 = vmatprep.subr.mxu1 %v5690_v1 }
 0x903   : > { %v3797_v13 = vld [vmem:[#allocation2 + $0x14] ss:$2 sm:$0xff]  ;;  %v3792_v17 = vld [vmem:[#allocation2 + $0x23] ss:$2 sm:$0x1]  ;;  %4107 = vmatpush1.msra.mxu1 %v5013_v61 }
 0x904   : > { %v3800_v15 = vmax.f32 %v3794_v29, %v3797_v13  ;;  %3814 = vst.msk [vmem:[#allocation2 + $0x13] sm:$0x3] %vm859_vm2, %v5690_v1  ;;  %v3789_v36 = vld [vmem:[#allocation2 + $0x22] ss:$2 sm:$0x1]  ;;  %4108 = vmatprep.subr.mxu1 %v5690_v1  ;;  %v5009_v29 = vld [vmem:[%s7799_s3 + $0x4a8] sm:$0xff] }
 0x905   : > { %v3803_v18 = vld [vmem:[#allocation2 + $0x15] ss:$2 sm:$0xff]  ;;  %v3795_v47 = vmax.f32 %v3789_v36, %v3792_v17  ;;  %v3798_v4 = vld [vmem:[#allocation2 + $0x24] ss:$2 sm:$0x1]  ;;  %4109 = vmatpush1.msra.mxu1 %v5012_v7  ;;  %v5005_v17 = vld [vmem:[%s7799_s3 + $0x488] sm:$0xff] }
 0x906   : > { %v3806_v19 = vmax.f32 %v3800_v15, %v3803_v18  ;;  %v3809_v9 = vld [vmem:[#allocation2 + $0x16] ss:$2 sm:$0xff]  ;;  %v3804_v60 = vld [vmem:[#allocation2 + $0x25] ss:$2 sm:$0x1]  ;;  %4110 = vmatprep.subr.mxu1 %v5690_v1 }
 0x907   : > { %v3801_v20 = vmax.f32 %v3795_v47, %v3798_v4  ;;  %v3810_v10 = vld [vmem:[#allocation2 + $0x26] ss:$2 sm:$0x1]  ;;  %4111 = vmatpush1.msra.mxu1 %v5011_v22  ;;  %v5007_v15 = vld [vmem:[%s7799_s3 + $0x498] sm:$0xff]  ;;  %v5006_v36 = vld [vmem:[%s7799_s3 + $0x490] sm:$0xff] }
 0x908   : > { %v7356_v57 = vmax.f32 %v3806_v19, %v3809_v9  ;;  %4112 = vmatprep.subr.mxu1 %v5690_v1  ;;  %v5008_v13 = vld [vmem:[%s7799_s3 + $0x4a0] sm:$0xff]  ;;  %v5003_v47 = vld [vmem:[%s7799_s3 + $0x478] sm:$0xff]  ;;  %v5002_v19 = vld [vmem:[%s7799_s3 + $0x470] sm:$0xff] }
 0x909   : > { %v3807_v32 = vmax.f32 %v3801_v20, %v3804_v60  ;;  %v3825_v40 = vld [vmem:[#allocation2 + $0x2] sm:$0xff]  ;;  %4113 = vmatpush1.msra.mxu1 %v5010_v6  ;;  %v5019_v20 = vld [vmem:[%s7799_s3 + $0x4f8] sm:$0xff]  ;;  %v5018_v60 = vld [vmem:[%s7799_s3 + $0x4f0] sm:$0xff] }
 0x90a   : > { %3816 = vst.msk [vmem:[#allocation2 + $0xa] sm:$0xff] %vm330_vm0, %v7356_v57  ;;  %v3822_v35 = vld [vmem:[#allocation2 + $0x1] sm:$0xff]  ;;  %4114 = vmatprep.subr.mxu1 %v5690_v1 }
 0x90b   : > { %v7361_v26 = vmax.f32 %v3807_v32, %v3810_v10  ;;  %v3830_v38 = vld [vmem:[#allocation2 + $0x13] sm:$0x1]  ;;  %v3833_v30 = vld [vmem:[#allocation2 + $0x14] sm:$0x1]  ;;  %v3819_v56 = vld [vmem:[#allocation2] sm:$0xff]  ;;  %4115 = vmatpush1.msra.mxu1 %v5009_v29 }
 0x90c   : > { %4116 = vmatprep.subr.mxu1 %v5690_v1  ;;  %v5004_v18 = vld [vmem:[%s7799_s3 + $0x480] sm:$0xff]  ;;  %v5001_v4 = vld [vmem:[%s7799_s3 + $0x468] sm:$0xff]  ;;  %v5040_v29 = vld [vmem:[%s7799_s3 + $0x578] sm:$0xff] }
 0x90d   : > { %3818 = vst.msk [vmem:[#allocation2 + $0x12] sm:$0x1] %vm3817_vm7, %v7361_v26  ;;  %4117 = vmatpush1.msra.mxu1 %v5008_v13  ;;  %v5000_v9 = vld [vmem:[%s7799_s3 + $0x460] sm:$0xff]  ;;  %v5017_v32 = vld [vmem:[%s7799_s3 + $0x4e8] sm:$0xff]  ;;  %v5039_v13 = vld [vmem:[%s7799_s3 + $0x570] sm:$0xff] }
 0x90e   : > { %4118 = vmatprep.subr.mxu1 %v5690_v1 }
 0x90f   : > { %4119 = vmatpush1.msra.mxu1 %v5007_v15  ;;  %v5038_v15 = vld [vmem:[%s7799_s3 + $0x568] sm:$0xff] }
 0x910   : > { %4120 = vmatprep.subr.mxu1 %v5690_v1 }
 0x911   : > { %v3831_v21 = vld [vmem:[#allocation2 + $0x4] sm:$0xff]  ;;  %v3824_v27 = vld [vmem:[#allocation2 + $0x11] sm:$0x1]  ;;  %v3821_v11 = vld [vmem:[#allocation2 + $0x10] sm:$0x1]  ;;  %4121 = vmatpush1.msra.mxu1 %v5006_v36 }
 0x912   : > { %v3826_v37 = vld [vmem:[#allocation2 + $0xa] sm:$0xff]  ;;  %4997 = vmatprep.mubr.msk.f32.mxu0 %vm330_vm0, %v3831_v21  ;;  %4122 = vmatprep.subr.mxu1 %v5690_v1  ;;  %v5037_v36 = vld [vmem:[%s7799_s3 + $0x560] sm:$0xff] }
 0x913   : > { %v3823_v42 = vld [vmem:[#allocation2 + $0x9] sm:$0xff]  ;;  %v5618_v3 = vpack.i.bf16 %v3826_v37, %v3825_v40  ;;  %4123 = vmatpush1.msra.mxu1 %v5005_v17  ;;  %v5016_v37 = vld [vmem:[%s7799_s3 + $0x4e0] sm:$0xff]  ;;  %v5036_v17 = vld [vmem:[%s7799_s3 + $0x558] sm:$0xff] }
 0x914   : > { %v5613_v43 = vpack.i.bf16 %v3823_v42, %v3822_v35  ;;  %v3832_v0 = vld [vmem:[#allocation2 + $0xc] sm:$0xff]  ;;  %v3828_v45 = vld [vmem:[#allocation2 + $0x3] sm:$0xff]  ;;  %4124 = vmatprep.subr.mxu1 %v5690_v1 }
 0x915   : > { %5619 = vrot.lane.b32.xlu1 %v5618_v3, %s5691_s22  ;;  %4000 = vst.msk [vmem:[#allocation2 + $0x13] sm:$0x3] %vm859_vm2, %v5690_v1  ;;  %v3829_v44 = vld [vmem:[#allocation2 + $0xb] sm:$0xff]  ;;  %4125 = vmatpush1.msra.mxu1 %v5004_v18 }
 0x916   : > { %5614 = vrot.lane.b32.xlu0 %v5613_v43, %s5692_s23  ;;  %v3827_v46 = vld [vmem:[#allocation2 + $0x12] sm:$0x1]  ;;  %v3820_v52 = vld [vmem:[#allocation2 + $0x8] sm:$0xff]  ;;  %4126 = vmatprep.subr.mxu1 %v5690_v1 }
 0x917   : > { %4127 = vmatpush1.msra.mxu1 %v5003_v47  ;;  %v5035_v18 = vld [vmem:[%s7799_s3 + $0x550] sm:$0xff]  ;;  %v5034_v47 = vld [vmem:[%s7799_s3 + $0x548] sm:$0xff] }
 0x918   : > { %4128 = vmatprep.subr.mxu1 %v5690_v1 }
 0x919   : > { %3863 = vrot.lane.b32.xlu1 %v3829_v44, %s5693_s28  ;;  %4129 = vmatpush1.msra.mxu1 %v5002_v19  ;;  %v5033_v19 = vld [vmem:[%s7799_s3 + $0x540] sm:$0xff] }
 0x91a   : > { %3861 = vrot.lane.b32.xlu0 %v3828_v45, %s5693_s28  ;;  %4130 = vmatprep.subr.mxu1 %v5690_v1 }
 0x91b   : > { %4131 = vmatpush1.msra.mxu1 %v5001_v4  ;;  %v5032_v4 = vld [vmem:[%s7799_s3 + $0x538] sm:$0xff] }
 0x91c   : > { %4132 = vmatprep.subr.mxu1 %v5690_v1 }
 0x91d   : > { %3853 = vrot.lane.b32.xlu1 %v3827_v46, %s5691_s22  ;;  %4133 = vmatpush1.msra.mxu1 %v5000_v9  ;;  %v5031_v9 = vld [vmem:[%s7799_s3 + $0x530] sm:$0xff] }
 0x91e   : > { %3841 = vrot.lane.b32.xlu0 %v3824_v27, %s5692_s23  ;;  %4158 = vmatprep.subr.mxu1 %v5690_v1 }
 0x91f   : > { %4159 = vmatpush2.msra.mxu1 %v5019_v20  ;;  %v5030_v20 = vld [vmem:[%s7799_s3 + $0x528] sm:$0xff] }
 0x920   : > { %4160 = vmatprep.subr.mxu1 %v5690_v1 }
 0x921   : > { %4161 = vmatpush2.msra.mxu1 %v5018_v60  ;;  %v5027_v60 = vld [vmem:[%s7799_s3 + $0x510] sm:$0xff] }
 0x922   : > { %3865 = vrot.lane.b32.xlu0 %v3830_v38, %s5693_s28  ;;  %4162 = vmatprep.subr.mxu1 %v5690_v1 }
 0x923   : > { %4163 = vmatpush2.msra.mxu1 %v5017_v32  ;;  %v5026_v32 = vld [vmem:[%s7799_s3 + $0x508] sm:$0xff] }
 0x924   : > { %4164 = vmatprep.subr.mxu1 %v5690_v1 }
 0x925   : > { %4165 = vmatpush2.msra.mxu1 %v5016_v37 }
 0x926   : > { %4380 = vmatprep.subr.mxu1 %v5690_v1 }
 0x987   : > { %v5620_v49 = vpop.permute.xlu1 %5619 }
 0x988   : > { %v5615_v33 = vpop.permute.xlu0 %5614  ;;  %v5621_v2 = vunpack.i.l.bf16 %v5620_v49  ;;  %v5622_v54 = vunpack.i.h.bf16 %v5620_v49 }
 0x989   : > { %v5617_v34 = vunpack.i.h.bf16 %v5615_v33  ;;  %v5616_v59 = vunpack.i.l.bf16 %v5615_v33 }
 0x98b   : > { %v3870_v53 = vsel %vm330_vm0, %v3819_v56, %v5616_v59  ;;  %v3871_v39 = vsel %vm330_vm0, %v3820_v52, %v5617_v34  ;;  %v3864_v62 = vpop.permute.xlu1 %3863 }
 0x98c   : > { %v3862_v25 = vpop.permute.xlu0 %3861  ;;  %v3873_v24 = vsel %vm1241_vm3, %v3870_v53, %v5621_v2  ;;  %v3874_v41 = vsel %vm1241_vm3, %v3871_v39, %v5622_v54  ;;  %v4015_v54 = vld [vmem:[#allocation2 + $0x13] sm:$0x1] }
 0x98d   : > { %v3876_v63 = vsel %vm1262_vm4, %v3873_v24, %v3862_v25  ;;  %v3877_v58 = vsel %vm1262_vm4, %v3874_v41, %v3864_v62 }
 0x98e   : > { %3982 = vmatmul.mubr.f32.vlgmr.msra.gmra.mxu0 %v3876_v63 }
 0x98f   : > { %4998 = vmatprep.mubr.msk.f32.mxu0 %vm330_vm0, %v3832_v0  ;;  %v3854_v50 = vpop.permute.xlu1 %3853  ;;  %4256 = vmatpush1.msra.mxu0 %v5040_v29  ;;  %v5056_v29 = vld [vmem:[%s7799_s3 + $0x5e0] sm:$0xff] }
 0x990   : > { %v3842_v23 = vpop.permute.xlu0 %3841  ;;  %4257 = vmatprep.subr.mxu0 %v5690_v1 }
 0x991   : > { %v3872_v28 = vsel %vm330_vm0, %v3821_v11, %v3842_v23  ;;  %4258 = vmatpush1.msra.mxu0 %v5039_v13  ;;  %v5055_v13 = vld [vmem:[%s7799_s3 + $0x5d8] sm:$0xff] }
 0x992   : > { %3987 = vmatmul.mubr.f32.gmra.mxu0 %v3877_v58  ;;  %v3875_v48 = vsel %vm1241_vm3, %v3872_v28, %v3854_v50  ;;  %4259 = vmatprep.subr.mxu0 %v5690_v1 }
 0x993   : > { %4999 = vmatprep.mubr.msk.f32.mxu0 %vm330_vm0, %v3833_v30  ;;  %4260 = vmatpush1.msra.mxu0 %v5038_v15  ;;  %v5054_v15 = vld [vmem:[%s7799_s3 + $0x5d0] sm:$0xff] }
 0x994   : > { %v3866_v5 = vpop.permute.xlu0 %3865  ;;  %4261 = vmatprep.subr.mxu0 %v5690_v1 }
 0x995   : > { %v3878_v14 = vsel %vm1262_vm4, %v3875_v48, %v3866_v5  ;;  %v4018_v5 = vld [vmem:[#allocation2 + $0x14] sm:$0x1]  ;;  %4262 = vmatpush1.msra.mxu0 %v5037_v36  ;;  %v5053_v36 = vld [vmem:[%s7799_s3 + $0x5c8] sm:$0xff] }
 0x996   : > { %3992 = vmatmul.mubr.f32.gmra.mxu0 %v3878_v14  ;;  %4263 = vmatprep.subr.mxu0 %v5690_v1 }
 0x997   : > { %4264 = vmatpush1.msra.mxu0 %v5036_v17  ;;  %v5052_v17 = vld [vmem:[%s7799_s3 + $0x5c0] sm:$0xff] }
 0x998   : > { %4265 = vmatprep.subr.mxu0 %v5690_v1 }
 0x999   : > { %4266 = vmatpush1.msra.mxu0 %v5035_v18  ;;  %v5051_v18 = vld [vmem:[%s7799_s3 + $0x5b8] sm:$0xff] }
 0x99a   : > { %4267 = vmatprep.subr.mxu0 %v5690_v1 }
 0x99b   : > { %4268 = vmatpush1.msra.mxu0 %v5034_v47  ;;  %v5050_v47 = vld [vmem:[%s7799_s3 + $0x5b0] sm:$0xff] }
 0x99c   : > { %4269 = vmatprep.subr.mxu0 %v5690_v1 }
 0x99d   : > { %4270 = vmatpush1.msra.mxu0 %v5033_v19  ;;  %v5049_v19 = vld [vmem:[%s7799_s3 + $0x5a8] sm:$0xff] }
 0x99e   : > { %4271 = vmatprep.subr.mxu0 %v5690_v1 }
 0x99f   : > { %4272 = vmatpush1.msra.mxu0 %v5032_v4  ;;  %v5048_v4 = vld [vmem:[%s7799_s3 + $0x5a0] sm:$0xff] }
 0x9a0   : > { %4273 = vmatprep.subr.mxu0 %v5690_v1 }
 0x9a1   : > { %4274 = vmatpush1.msra.mxu0 %v5031_v9  ;;  %v5067_v9 = vld [vmem:[%s7799_s3 + $0x638] sm:$0xff] }
 0x9a2   : > { %4275 = vmatprep.subr.mxu0 %v5690_v1 }
 0x9a3   : > { %4276 = vmatpush1.msra.mxu0 %v5030_v20  ;;  %v5046_v20 = vld [vmem:[%s7800_s4 + $0x8] ss:$0 sm:$0xff] }
 0x9a4   : > { %4277 = vmatprep.subr.mxu0 %v5690_v1 }
 0xa4e   : > { %v3983_v55 = vpop.f32.mrf.mxu0 }
 0xa4f   : > { %v3984_v10 = vadd.f32 %v4996_v16, %v3983_v55  ;;  %v5028_v55 = vld [vmem:[%s7799_s3 + $0x518] sm:$0xff] }
 0xa50   : > { %v3985_v12 = vpop.f32.mrf.mxu0 }
 0xa51   : > { %v3997_v40 = vmax.f32 %v3984_v10, 0.0  ;;  %v5025_v10 = vld [vmem:[%s7799_s3 + $0x500] sm:$0xff]  ;;  %v5044_v12 = vld [vmem:[%s7799_s3 + $0x598] sm:$0xff] }
 0xa52   : > { %v3988_v35 = vpop.f32.mrf.mxu0 }
 0xa53   : > { %4001 = vst.msk [vmem:[#allocation2 + $0x2] sm:$0xff] %vm330_vm0, %v3997_v40  ;;  %v3989_v21 = vadd.f32 %v4996_v16, %v3988_v35  ;;  %v5021_v40 = vld [vmem:[%s7800_s4 + $0x7] ss:$0 sm:$0xff] }
 0xa54   : > { %v3990_v42 = vpop.f32.mrf.mxu0 }
 0xa55   : > { %v3998_v3 = vmax.f32 %v3989_v21, 0.0 }
 0xa56   : > { %v3993_v43 = vpop.f32.mrf.mxu0 }
 0xa57   : > { %4002 = vst.msk [vmem:[#allocation2 + $0xa] sm:$0xff] %vm330_vm0, %v3998_v3  ;;  %v3994_v38 = vadd.f32 %v4996_v16, %v3993_v43  ;;  %v5029_v16 = vld [vmem:[%s7799_s3 + $0x520] sm:$0xff] }
 0xa58   : > { %v3995_v0 = vpop.f32.mrf.mxu0  ;;  %4278 = vmatpush1.msra.mxu0 %v5029_v16 }
 0xa59   : > { %v3999_v30 = vmax.f32 %v3994_v38, 0.0  ;;  %4279 = vmatprep.subr.mxu0 %v5690_v1 }
 0xa5a   : > { %v4010_v44 = vld [vmem:[#allocation2 + $0x2] sm:$0xff]  ;;  %4280 = vmatpush1.msra.mxu0 %v5028_v55 }
 0xa5b   : > { %v4007_v45 = vld [vmem:[#allocation2 + $0x1] sm:$0xff]  ;;  %4003 = vst.msk [vmem:[#allocation2 + $0x12] sm:$0x1] %vm3817_vm7, %v3999_v30  ;;  %4034 = vrot.lane.b32.xlu0 %v4010_v44, %s5691_s22  ;;  %4281 = vmatprep.subr.mxu0 %v5690_v1 }
 0xa5c   : > { %4022 = vrot.lane.b32.xlu1 %v4007_v45, %s5692_s23  ;;  %v4004_v53 = vld [vmem:[#allocation2] sm:$0xff]  ;;  %4282 = vmatpush1.msra.mxu0 %v5027_v60  ;;  %v5066_v60 = vld [vmem:[%s7799_s3 + $0x630] sm:$0xff] }
 0xa5d   : > { %4283 = vmatprep.subr.mxu0 %v5690_v1 }
 0xa5e   : > { %v4016_v46 = vld [vmem:[#allocation2 + $0x4] sm:$0xff]  ;;  %v4009_v59 = vld [vmem:[#allocation2 + $0x11] sm:$0x1]  ;;  %v4006_v14 = vld [vmem:[#allocation2 + $0x10] sm:$0x1]  ;;  %4284 = vmatpush1.msra.mxu0 %v5026_v32 }
 0xa5f   : > { %v4008_v27 = vld [vmem:[#allocation2 + $0x9] sm:$0xff]  ;;  %5022 = vmatprep.mubr.msk.f32.mxu1 %vm330_vm0, %v4016_v46  ;;  %4285 = vmatprep.subr.mxu0 %v5690_v1 }
 0xa60   : > { %v4013_v49 = vld [vmem:[#allocation2 + $0x3] sm:$0xff]  ;;  %4024 = vrot.lane.b32.xlu0 %v4008_v27, %s5692_s23  ;;  %4286 = vmatpush1.msra.mxu0 %v5025_v10 }
 0xa61   : > { %4046 = vrot.lane.b32.xlu1 %v4013_v49, %s5693_s28  ;;  %v4011_v2 = vld [vmem:[#allocation2 + $0xa] sm:$0xff]  ;;  %4311 = vmatprep.subr.mxu0 %v5690_v1 }
 0xa62   : > { %v4014_v33 = vld [vmem:[#allocation2 + $0xb] sm:$0xff]  ;;  %4312 = vmatpush2.msra.mxu0 %v5044_v12 }
 0xa63   : > { %v4012_v34 = vld [vmem:[#allocation2 + $0x12] sm:$0x1]  ;;  %v4005_v11 = vld [vmem:[#allocation2 + $0x8] sm:$0xff]  ;;  %4313 = vmatprep.subr.mxu0 %v5690_v1 }
 0xa64   : > { %4048 = vrot.lane.b32.xlu0 %v4014_v33, %s5693_s28  ;;  %v4017_v41 = vld [vmem:[#allocation2 + $0xc] sm:$0xff] }
 0xa65   : > { %4036 = vrot.lane.b32.xlu1 %v4011_v2, %s5691_s22  ;;  %v5065_v32 = vld [vmem:[%s7799_s3 + $0x628] sm:$0xff] }
 0xa68   : > { %4038 = vrot.lane.b32.xlu0 %v4012_v34, %s5691_s22 }
 0xa69   : > { %4026 = vrot.lane.b32.xlu1 %v4009_v59, %s5692_s23 }
 0xa6d   : > { %4050 = vrot.lane.b32.xlu1 %v4015_v54, %s5693_s28 }
 0xacd   : > { %v4035_v56 = vpop.permute.xlu0 %4034 }
 0xace   : > { %v4023_v52 = vpop.permute.xlu1 %4022 }
 0xacf   : > { %v4055_v39 = vsel %vm330_vm0, %v4004_v53, %v4023_v52  ;;  %v5042_v53 = vld [vmem:[%s7799_s3 + $0x588] sm:$0xff] }
 0xad0   : > { %v4058_v24 = vsel %vm1241_vm3, %v4055_v39, %v4035_v56 }
 0xad2   : > { %v4025_v62 = vpop.permute.xlu0 %4024 }
 0xad3   : > { %v4047_v25 = vpop.permute.xlu1 %4046  ;;  %v4056_v50 = vsel %vm330_vm0, %v4005_v11, %v4025_v62  ;;  %v5041_v62 = vld [vmem:[%s7799_s3 + $0x580] sm:$0xff] }
 0xad4   : > { %v4061_v63 = vsel %vm1262_vm4, %v4058_v24, %v4047_v25 }
 0xad5   : > { %4167 = vmatmul.mubr.f32.vlgmr.msra.gmra.mxu1 %v4061_v63 }
 0xad6   : > { %5023 = vmatprep.mubr.msk.f32.mxu1 %vm330_vm0, %v4017_v41  ;;  %v4049_v23 = vpop.permute.xlu0 %4048 }
 0xad7   : > { %v4037_v28 = vpop.permute.xlu1 %4036 }
 0xad8   : > { %v4059_v58 = vsel %vm1241_vm3, %v4056_v50, %v4037_v28 }
 0xad9   : > { %v4062_v48 = vsel %vm1262_vm4, %v4059_v58, %v4049_v23 }
 0xada   : > { %4172 = vmatmul.mubr.f32.gmra.mxu1 %v4062_v48  ;;  %v4039_v51 = vpop.permute.xlu0 %4038 }
 0xadb   : > { %v4027_v8 = vpop.permute.xlu1 %4026  ;;  %5024 = vmatprep.mubr.msk.f32.mxu1 %vm330_vm0, %v4018_v5 }
 0xadc   : > { %v4057_v61 = vsel %vm330_vm0, %v4006_v14, %v4027_v8  ;;  %v5063_v14 = vld [vmem:[%s7799_s3 + $0x618] sm:$0xff]  ;;  %v5062_v8 = vld [vmem:[%s7799_s3 + $0x610] sm:$0xff] }
 0xadd   : > { %v4060_v22 = vsel %vm1241_vm3, %v4057_v61, %v4039_v51  ;;  %4381 = vmatpush1.msra.mxu1 %v5063_v14  ;;  %v5061_v51 = vld [vmem:[%s7799_s3 + $0x608] sm:$0xff]  ;;  %v5060_v61 = vld [vmem:[%s7799_s3 + $0x600] sm:$0xff] }
 0xade   : > { %4382 = vmatprep.subr.mxu1 %v5690_v1  ;;  %v4620_v14 = vld [vmem:[%s7803_s7] sm:$0xff] }
 0xadf   : > { %v4051_v7 = vpop.permute.xlu1 %4050  ;;  %4383 = vmatpush1.msra.mxu1 %v5062_v8  ;;  %v4462_v8 = vld [vmem:[%s7802_s6] sm:$0x1] }
 0xae0   : > { %v4063_v6 = vsel %vm1262_vm4, %v4060_v22, %v4051_v7  ;;  %4384 = vmatprep.subr.mxu1 %v5690_v1  ;;  %v5059_v7 = vld [vmem:[%s7799_s3 + $0x5f8] sm:$0xff]  ;;  %v5058_v22 = vld [vmem:[%s7799_s3 + $0x5f0] sm:$0xff] }
 0xae1   : > { %4177 = vmatmul.mubr.f32.gmra.mxu1 %v4063_v6  ;;  %v5057_v6 = vld [vmem:[%s7799_s3 + $0x5e8] sm:$0xff] }
 0xae2   : > { %4385 = vmatpush1.msra.mxu1 %v5061_v51 }
 0xae3   : > { %4386 = vmatprep.subr.mxu1 %v5690_v1 }
 0xae4   : > { %4387 = vmatpush1.msra.mxu1 %v5060_v61 }
 0xae5   : > { %4388 = vmatprep.subr.mxu1 %v5690_v1 }
 0xae6   : > { %4389 = vmatpush1.msra.mxu1 %v5059_v7 }
 0xae7   : > { %4390 = vmatprep.subr.mxu1 %v5690_v1 }
 0xae8   : > { %4391 = vmatpush1.msra.mxu1 %v5058_v22 }
 0xae9   : > { %4392 = vmatprep.subr.mxu1 %v5690_v1 }
 0xaea   : > { %4393 = vmatpush1.msra.mxu1 %v5057_v6 }
 0xaeb   : > { %4394 = vmatprep.subr.mxu1 %v5690_v1 }
 0xaec   : > { %4395 = vmatpush1.msra.mxu1 %v5056_v29 }
 0xaed   : > { %4396 = vmatprep.subr.mxu1 %v5690_v1 }
 0xaee   : > { %4397 = vmatpush1.msra.mxu1 %v5055_v13 }
 0xaef   : > { %4398 = vmatprep.subr.mxu1 %v5690_v1 }
 0xaf0   : > { %4399 = vmatpush1.msra.mxu1 %v5054_v15  ;;  %v4624_v15 = vld [vmem:[%s7804_s8] sm:$0x1] }
 0xaf1   : > { %4400 = vmatprep.subr.mxu1 %v5690_v1 }
 0xaf2   : > { %4401 = vmatpush1.msra.mxu1 %v5053_v36 }
 0xaf3   : > { %4402 = vmatprep.subr.mxu1 %v5690_v1 }
 0xaf4   : > { %4403 = vmatpush1.msra.mxu1 %v5052_v17 }
 0xaf5   : > { %4404 = vmatprep.subr.mxu1 %v5690_v1 }
 0xaf6   : > { %4405 = vmatpush1.msra.mxu1 %v5051_v18 }
 0xaf7   : > { %4406 = vmatprep.subr.mxu1 %v5690_v1 }
 0xaf8   : > { %4407 = vmatpush1.msra.mxu1 %v5050_v47 }
 0xaf9   : > { %4408 = vmatprep.subr.mxu1 %v5690_v1 }
 0xafa   : > { %4409 = vmatpush1.msra.mxu1 %v5049_v19 }
 0xafb   : > { %4410 = vmatprep.subr.mxu1 %v5690_v1 }
 0xafc   : > { %4411 = vmatpush1.msra.mxu1 %v5048_v4 }
 0xafd   : > { %4436 = vmatprep.subr.mxu1 %v5690_v1 }
 0xafe   : > { %4437 = vmatpush2.msra.mxu1 %v5067_v9 }
 0xaff   : > { %4438 = vmatprep.subr.mxu1 %v5690_v1 }
 0xb00   : > { %4439 = vmatpush2.msra.mxu1 %v5066_v60 }
 0xb01   : > { %4440 = vmatprep.subr.mxu1 %v5690_v1 }
 0xb02   : > { %4441 = vmatpush2.msra.mxu1 %v5065_v32 }
 0xb03   : > { %4442 = vmatprep.subr.mxu1 %v5690_v1 }
 0xb95   : > { %v4168_v35 = vpop.f32.mrf.mxu1 }
 0xb96   : > { %v4169_v21 = vadd.f32 %v5021_v40, %v4168_v35 }
 0xb97   : > { %v4170_v37 = vpop.f32.mrf.mxu1 }
 0xb98   : > { %v4182_v42 = vadd.f32 %v4169_v21, %v7344_v31 }
 0xb9a   : > { %v4185_v3 = vmax.f32 %v4182_v42, 0.0  ;;  %v4173_v43 = vpop.f32.mrf.mxu1 }
 0xb9b   : > { %v4174_v38 = vadd.f32 %v5021_v40, %v4173_v43 }
 0xb9c   : > { %4188 = vst.msk [vmem:[#allocation2 + $0x2] sm:$0xff] %vm330_vm0, %v4185_v3  ;;  %v4175_v0 = vpop.f32.mrf.mxu1 }
 0xb9d   : > { %v4183_v30 = vadd.f32 %v4174_v38, %v7356_v57  ;;  %v5043_v57 = vld [vmem:[%s7799_s3 + $0x590] sm:$0xff] }
 0xb9e   : > { %4314 = vmatpush2.msra.mxu0 %v5043_v57 }
 0xb9f   : > { %v4186_v44 = vmax.f32 %v4183_v30, 0.0  ;;  %4315 = vmatprep.subr.mxu0 %v5690_v1 }
 0xba0   : > { %4316 = vmatpush2.msra.mxu0 %v5042_v53 }
 0xba1   : > { %4189 = vst.msk [vmem:[#allocation2 + $0xa] sm:$0xff] %vm330_vm0, %v4186_v44  ;;  %v4178_v45 = vpop.f32.mrf.mxu1  ;;  %4317 = vmatprep.subr.mxu0 %v5690_v1 }
 0xba2   : > { %v4179_v46 = vadd.f32 %v5021_v40, %v4178_v45  ;;  %4318 = vmatpush2.msra.mxu0 %v5041_v62  ;;  %v5064_v40 = vld [vmem:[%s7799_s3 + $0x620] sm:$0xff] }
 0xba3   : > { %v4180_v27 = vpop.f32.mrf.mxu1  ;;  %5092 = vmatprep.subr.mxu0 %v5690_v1  ;;  %4443 = vmatpush2.msra.mxu1 %v5064_v40 }
 0xba4   : > { %v4184_v49 = vadd.f32 %v4179_v46, %v7361_v26  ;;  %5103 = vmatprep.subr.mxu1 %v5690_v1  ;;  %v4466_v46 = vld [vmem:[%s7801_s5 + $0x18] sm:$0xff]  ;;  %v4465_v27 = vld [vmem:[%s7801_s5 + $0x10] sm:$0xff] }
 0xba6   : > { %v4187_v33 = vmax.f32 %v4184_v49, 0.0  ;;  %v4544_v49 = vld [vmem:[%s7801_s5 + $0x38] sm:$0xff] }
 0xba8   : > { %4190 = vst.msk [vmem:[#allocation2 + $0x12] sm:$0x1] %vm3817_vm7, %v4187_v33  ;;  %v4191_v31 = vld [vmem:[#allocation2 + $0x2] ss:$2 sm:$0x7f]  ;;  %v4543_v33 = vld [vmem:[%s7801_s5 + $0x30] sm:$0xff] }
 0xba9   : > { %v4192_v2 = vld [vmem:[#allocation2 + $0x3] ss:$2 sm:$0x7f]  ;;  %v4194_v59 = vld [vmem:[#allocation2 + $0x4] ss:$2 sm:$0x7f] }
 0xbaa   : > { %v4193_v34 = vmax.f32 %v4191_v31, %v4192_v2  ;;  %v4196_v56 = vld [vmem:[#allocation2 + $0x5] ss:$2 sm:$0x7f] }
 0xbab   : > { %v4464_v31 = vld [vmem:[%s7801_s5 + $0x8] sm:$0xff] }
 0xbac   : > { %v4195_v54 = vmax.f32 %v4193_v34, %v4194_v59  ;;  %v4542_v2 = vld [vmem:[%s7801_s5 + $0x28] sm:$0xff]  ;;  %v4463_v34 = vld [vmem:[%s7801_s5] sm:$0xff] }
 0xbad   : > { %v4541_v59 = vld [vmem:[%s7801_s5 + $0x20] sm:$0xff] }
 0xbae   : > { %v4197_v52 = vmax.f32 %v4195_v54, %v4196_v56  ;;  %v5069_v54 = vld [vmem:[%s7800_s4 + $0x9] ss:$0 sm:$0xff] }
 0xbaf   : > { %v4198_v39 = vld [vmem:[#allocation2 + $0x6] ss:$2 sm:$0x7f] }
 0xbb0   : > { %v7581_v26 = vmax.f32 %v4197_v52, %v4198_v39  ;;  %4200 = vst.msk [vmem:[#allocation2 + $0x9] sm:$0x3] %vm859_vm2, %v5690_v1 }
 0xbb2   : > { %4202 = vst.msk [vmem:[#allocation2 + $0x2] sm:$0x7f] %vm4201_vm8, %v7581_v26 }
 0xbb9   : > { %v4207_v25 = vld [vmem:[#allocation2 + $0x4] sm:$0x7f] }
 0xbba   : > { %v4205_v24 = vld [vmem:[#allocation2 + $0x2] sm:$0x7f]  ;;  %5047 = vmatprep.mubr.msk.f32.mxu0 %vm330_vm0, %v4207_v25 }
 0xbbb   : > { %v4204_v63 = vld [vmem:[#allocation2 + $0x1] sm:$0x7f]  ;;  %4213 = vrot.lane.b32.xlu1 %v4205_v24, %s5691_s22 }
 0xbbc   : > { %v4206_v41 = vld [vmem:[#allocation2 + $0x3] sm:$0x7f]  ;;  %4209 = vrot.lane.b32.xlu0 %v4204_v63, %s5692_s23 }
 0xbbd   : > { %4326 = vst.msk [vmem:[#allocation2 + $0x9] sm:$0x3] %vm859_vm2, %v5690_v1  ;;  %v4203_v23 = vld [vmem:[#allocation2] sm:$0x7f] }
 0xbc0   : > { %4217 = vrot.lane.b32.xlu0 %v4206_v41, %s5693_s28 }
 0xc2d   : > { %v4214_v50 = vpop.permute.xlu1 %4213 }
 0xc2e   : > { %v4210_v11 = vpop.permute.xlu0 %4209 }
 0xc2f   : > { %v4220_v28 = vsel %vm330_vm0, %v4203_v23, %v4210_v11 }
 0xc30   : > { %v4221_v5 = vsel %vm1241_vm3, %v4220_v28, %v4214_v50 }
 0xc32   : > { %v4218_v58 = vpop.permute.xlu0 %4217 }
 0xc33   : > { %v4222_v48 = vsel %vm1262_vm4, %v4221_v5, %v4218_v58  ;;  %v4622_v5 = vld [vmem:[%s7803_s7 + $0x10] sm:$0xff] }
 0xc34   : > { %4320 = vmatmul.mubr.f32.vlgmr.msra.gmra.mxu0 %v4222_v48  ;;  %v4621_v48 = vld [vmem:[%s7803_s7 + $0x8] sm:$0xff] }
 0xc35   : > { %5093 = vmatpush3.msra.mxu0 %v4466_v46  ;;  %5100 = vmatprep.mubr.msk.f32.mxu0 %vm5694_vm9, %v5690_v1 }
 0xc36   : > { %5094 = vmatprep.subr.mxu0 %v5690_v1 }
 0xc37   : > { %5095 = vmatpush3.msra.mxu0 %v4465_v27 }
 0xc38   : > { %5096 = vmatprep.subr.mxu0 %v5690_v1 }
 0xc39   : > { %5097 = vmatpush3.msra.mxu0 %v4464_v31 }
 0xc3a   : > { %5098 = vmatprep.subr.mxu0 %v5690_v1 }
 0xc3b   : > { %5099 = vmatpush3.msra.mxu0 %v4463_v34 }
 0xc3c   : > { %5114 = vmatprep.subr.mxu0 %v5690_v1 }
 0xcf4   : > { %v4321_v16 = vpop.f32.mrf.mxu0 }
 0xcf5   : > { %v4322_v55 = vadd.f32 %v5046_v20, %v4321_v16 }
 0xcf6   : > { %v4323_v10 = vpop.f32.mrf.mxu0 }
 0xcf7   : > { %v4325_v12 = vmax.f32 %v4322_v55, 0.0 }
 0xcf9   : > { %4327 = vst.msk [vmem:[#allocation2 + $0x2] sm:$0x7f] %vm4201_vm8, %v4325_v12 }
 0xd00   : > { %v4332_v35 = vld [vmem:[#allocation2 + $0x4] sm:$0x7f] }
 0xd01   : > { %v4330_v21 = vld [vmem:[#allocation2 + $0x2] sm:$0x7f]  ;;  %5070 = vmatprep.mubr.msk.f32.mxu1 %vm330_vm0, %v4332_v35 }
 0xd02   : > { %v4329_v37 = vld [vmem:[#allocation2 + $0x1] sm:$0x7f]  ;;  %4338 = vrot.lane.b32.xlu0 %v4330_v21, %s5691_s22  ;;  %s5627_s22 = scalar_lea.vmem %s4725_s14, 16 }
 0xd03   : > { %4334 = vrot.lane.b32.xlu1 %v4329_v37, %s5692_s23  ;;  %v4331_v42 = vld [vmem:[#allocation2 + $0x3] sm:$0x7f]  ;;  %p5628_p11 = scmp.ne.s32.totalorder %s4725_s14, %s5627_s22  ;;  %s5695_s23 = smov [#allocation3]  }
 0xd04   : > { %v4328_v43 = vld [vmem:[#allocation2] sm:$0x7f] }
 0xd05   : > { %p5629_p12 = pnand %p5628_p11, %p5784_p5 }
 0xd07   : > { %4342 = vrot.lane.b32.xlu1 %v4331_v42, %s5693_s28  ;;  %p5630_p13 = pneg %p5629_p12  ;;  %s5631_s28 = sshll.u32 %s5695_s23, 4  ;;  %s5632_s28 = int_to_ptr.vmem [resolvable:$false] %s5631_s28 }
 0xd08   : > { %s5633_s13 = scalar_lea.vmem %s5632_s28, 32  ;;  %p5634_p0 = scmp.lt.s32.totalorder %s4725_s14, %s5632_s28 }
 0xd09   : > { %p5635_p1 = scmp.lt.s32.totalorder %s5633_s13, %s5627_s22 }
 0xd0b   : > { %p5636_p2 = por %p5635_p1, %p5634_p0 }
 0xd0d   : > { %p5637_p3 = pnand %p5636_p2, %p5630_p13 }
 0xd74   : > { %v4339_v38 = vpop.permute.xlu0 %4338 }
 0xd75   : > { %v4335_v3 = vpop.permute.xlu1 %4334 }
 0xd76   : > { %v4345_v0 = vsel %vm330_vm0, %v4328_v43, %v4335_v3 }
 0xd77   : > { %v4346_v44 = vsel %vm1241_vm3, %v4345_v0, %v4339_v38 }
 0xd79   : > { %v4343_v30 = vpop.permute.xlu1 %4342 }
 0xd7a   : > { %v4347_v45 = vsel %vm1262_vm4, %v4346_v44, %v4343_v30 }
 0xd7b   : > { %4445 = vmatmul.mubr.f32.vlgmr.msra.gmra.mxu1 %v4347_v45 }
 0xd7c   : > { %5104 = vmatpush3.msra.mxu1 %v4544_v49  ;;  %5111 = vmatprep.mubr.msk.f32.mxu1 %vm5694_vm9, %v5690_v1 }
 0xd7d   : > { %5105 = vmatprep.subr.mxu1 %v5690_v1 }
 0xd7e   : > { %5106 = vmatpush3.msra.mxu1 %v4543_v33 }
 0xd7f   : > { %5107 = vmatprep.subr.mxu1 %v5690_v1 }
 0xd80   : > { %5108 = vmatpush3.msra.mxu1 %v4542_v2 }
 0xd81   : > { %5109 = vmatprep.subr.mxu1 %v5690_v1 }
 0xd82   : > { %5110 = vmatpush3.msra.mxu1 %v4541_v59 }
 0xe3b   : > { %v4446_v56 = vpop.f32.mrf.mxu1 }
 0xe3c   : > { %v4447_v52 = vadd.f32 %v5069_v54, %v4446_v56 }
 0xe3d   : > { %v4448_v57 = vpop.f32.mrf.mxu1 }
 0xe3e   : > { %v4450_v53 = vadd.f32 %v4447_v52, %v7581_v26  ;;  %v4623_v26 = vld [vmem:[%s7803_s7 + $0x18] sm:$0xff] }
 0xe40   : > { %v4451_v39 = vmax.f32 %v4450_v53, 0.0 }
 0xe42   : > { %4452 = vst.msk [vmem:[#allocation2 + $0x2] sm:$0x7f] %vm4201_vm8, %v4451_v39 }
 0xe49   : > { %v4453_v62 = vld [vmem:[#allocation2 + $0x2] ss:$2 sm:$0x3]  ;;  %v4454_v25 = vld [vmem:[#allocation2 + $0x3] ss:$2 sm:$0x3] }
 0xe4a   : > { %v4455_v24 = vmax.f32 %v4453_v62, %v4454_v25  ;;  %v4456_v63 = vld [vmem:[#allocation2 + $0x4] ss:$2 sm:$0x3]  ;;  %v4458_v11 = vld [vmem:[#allocation2 + $0x5] ss:$2 sm:$0x3] }
 0xe4b   : > { %v4460_v50 = vld [vmem:[#allocation2 + $0x6] ss:$2 sm:$0x3] }
 0xe4c   : > { %v4457_v41 = vmax.f32 %v4455_v24, %v4456_v63 }
 0xe4e   : > { %v4459_v23 = vmax.f32 %v4457_v41, %v4458_v11 }
 0xe50   : > { %v4461_v28 = vmax.f32 %v4459_v23, %v4460_v50 }
 0xe52   : > { %5101 = vmatmul.mubr.msk.f32.vlgmr.msra.gmra.mxu0 %vm330_vm0, %v4461_v28  ;;  %v4545_v58 = vrot.slane %v4461_v28, 1 }
 0xe53   : > { %5122 = vmatprep.mubr.msk.f32.mxu0 %vm5694_vm9, %v5690_v1  ;;  %5115 = vmatpush3.msra.mxu0 %v4623_v26 }
 0xe54   : > { %5112 = vmatmul.mubr.msk.f32.vlgmr.msra.gmra.mxu1 %vm330_vm0, %v4545_v58  ;;  %5116 = vmatprep.subr.mxu0 %v5690_v1 }
 0xe55   : > { %5117 = vmatpush3.msra.mxu0 %v4622_v5 }
 0xe56   : > { %5118 = vmatprep.subr.mxu0 %v5690_v1 }
 0xe57   : > { %5119 = vmatpush3.msra.mxu0 %v4621_v48 }
 0xe58   : > { %5120 = vmatprep.subr.mxu0 %v5690_v1 }
 0xe59   : > { %5121 = vmatpush3.msra.mxu0 %v4620_v14 }
 0xf12   : > { %v4536_v51 = vpop.f32.mrf.mxu0 }
 0xf13   : > { %v4540_v61 = vadd.f32 %v4536_v51, %v4462_v8 }
 0xf14   : > { %v5102_v7 = vpop.f32.mrf.mxu0  ;;  %v4614_v22 = vpop.f32.mrf.mxu1 }
 0xf15   : > { %v4618_v6 = vadd.f32 %v4614_v22, %v4540_v61 }
 0xf16   : > { %v5113_v29 = vpop.f32.mrf.mxu1 }
 0xf17   : > { %v4619_v13 = vmax.f32 %v4618_v6, 0.0 }
 0xf19   : > { %5123 = vmatmul.mubr.msk.f32.vlgmr.msra.gmra.mxu0 %vm330_vm0, %v4619_v13 }
 0xfd9   : > { %v4694_v1 = vpop.f32.mrf.mxu0 }
 0xfda   : > { %v4695_v36 = vadd.f32 %v4694_v1, %v4624_v15 }
 0xfdb   : > { %v5124_v17 = vpop.f32.mrf.mxu0 }
 0xfdc   : > { %v4699_v18 = vsel %vm4698_vm10, %v4695_v36, -inf }
 0xfdd   : > { %4700 = vmax.xlane.f32.xlu0 %v4699_v18 }
0x1066   : > { %v4701_v47 = vpop.xlane.xlu0 %4700 }
0x1067   : > { %v4702_v19 = vsub.f32 %v4695_v36, %v4701_v47 }
0x1069   : > { %v4703_v4 = vmul.f32 1.442695, %v4702_v19 }
0x106b   : > { %5623 = vpow2.f32 %v4703_v4 }
0x1078   : > { %v5624_v9 = vpop.eup %5623 }
0x1079   : > { %v4705_v20 = vsel %vm4698_vm10, %v5624_v9, 0.0 }
0x107a   : > { %4706 = vadd.xlane.f32.xlu1 %v4705_v20 }
0x1103   : > { %v4707_v16 = vpop.xlane.xlu1 %4706 }
0x1104   : > { %5625 = vrcp.f32 %v4707_v16 }
0x1111   : > { %v5626_v55 = vpop.eup %5625 }
0x1112   : > { %v4709_v60 = vmul.f32 %v5626_v55, %v5624_v9 }
0x1114   : > { %4710 = vst.msk [vmem:[%s324_s29] sm:$0x1] %vm4698_vm10, %v4709_v60 }
0x1115   : > { %5640 = shalt.err (!%p5637_p3)
}
0x1116   : > { %s5641_s25 = scalar_lea.hbm %s4722_s21, 16  ;;  %s5645_s29 = scalar_lea.hbm %s7805_s9, 32 }
0x1117   : > { %p5642_p4 = scmp.ne.s32.totalorder %s4722_s21, %s5641_s25  ;;  %p5646_p9 = scmp.lt.s32.totalorder %s4722_s21, %s7805_s9 }
0x1118   : > { %p5647_p10 = scmp.lt.s32.totalorder %s5645_s29, %s5641_s25 }
0x1119   : > { %p5643_p7 = pnand %p5642_p4, %p5784_p5 }
0x111a   : > { %p5648_p11 = por %p5647_p10, %p5646_p9 }
0x111b   : > { %p5644_p8 = pneg %p5643_p7 }
0x111d   : > { %p5649_p12 = pnand %p5648_p11, %p5644_p8 }
0x111f   : > { %5652 = shalt.err (!%p5649_p12)
}
0x1120   : > { %5126 = dma.vmem_to_hbm [thread:$0]  (%p5784_p5), %s4725_s14, 16, %s4722_s21, %s4712_s24  }
0x1121 PF: > { %p5132_p13 = scmp.ge.s32.totalorder %s5687_s12, 2  ;;  %s4736_s22 = sand.u32 1, %s5675_s30  }
0x1122   : > { %s4737_s23 = scalar_lea.sflag [#allocation4], %s4736_s22 }
0x1123   : > { %p5129_p0 = pnand %p5132_p13, %p5788_p6 }
0x1125   : > { %p5130_p1 = pneg %p5129_p0 }
0x1127   : > { %5670 = dma.done.wait (%p5130_p1), %s4737_s23, 16  }
0x1128   : > { %5672 = vsyncadd (%p5130_p1), %s4737_s23, 4294967280  ;;  %p19_p2 = scmp.ge.s32.totalorder %s5771_s15, 4   ;;  %s7808_s30 = smov %s5679_s10 }
0x1129   : > { %s7809_s10 = smov %s5683_s11  ;;  %s7810_s11 = smov %s5782_s18 }
0x112a   : > { %s7811_s12 = smov %s5771_s15  ;;  %21 = sbr.rel (!%p19_p2) target bundleno = 3 (0x3), region = 163 }
0x112f   :  { %4741 = vsyncpa [#allocation4], 1 }
0x1130   :  { %4743 = vsyncpa [#allocation4 + $0x1], 1 }

</bundles_post_ra>
